<compile_context>
chip_gen: v5e
topology: v5e:2x2
jax: 0.10.0
libtpu: 0.0.40
codegen_flags: <defaults>
</compile_context>

<pallas_src>
import math
import functools

import jax
import jax.numpy as jnp
from jax import lax
from jax.experimental import pallas as pl
from jax.experimental.pallas import tpu as pltpu

HEADS = 8


def _layer_norm(t, g, b):
    mu = jnp.mean(t, axis=-1, keepdims=True)
    var = jnp.mean((t - mu) ** 2, axis=-1, keepdims=True)
    return (t - mu) * lax.rsqrt(var + 1e-5) * g + b


# ----------------------------------------------------------------------------
# Fully fused decoder-layer kernel (per batch row):
#   x = x + LN1( MHA_self(x, tgt_mask) )
#   x = x + LN2( MHA_cross(x, feature, src_mask) )      (emits attention probs)
#   x = x + W2( relu( W1( LN3(x) ) ) )
# ----------------------------------------------------------------------------
def _decoder_layer_kernel(
        x_ref, feat_ref, tmask_ref, smask_ref,
        sa_qkv_w, sa_qkv_b, sa_o_w, sa_o_b, ln1_g, ln1_b,
        ca_q_w, ca_q_b, ca_kv_w, ca_kv_b, ca_o_w, ca_o_b, ln2_g, ln2_b,
        ff_g, ff_b, ff1_w, ff1_b, ff2_w, ff2_b,
        out_ref, attn_ref, *, heads, scale, mxu_dtype):
    x = x_ref[0].astype(jnp.float32)            # (T, D)  residual, stays resident
    feat = feat_ref[0].astype(jnp.float32)      # (S, D)
    T, D = x.shape
    dk = D // heads

    def mm(a, w_ref, b_ref):                    # fused matmul + bias, f32 accumulate
        return (jnp.dot(a.astype(mxu_dtype), w_ref[...].astype(mxu_dtype),
                        preferred_element_type=jnp.float32) + b_ref[...])

    def mha_heads(q, k, v, bias, wo_ref, bo_ref, emit_ref):
        # q is pre-scaled; per-head context is accumulated straight into Wo (no concat).
        wo = wo_ref[...]
        acc = jnp.zeros((q.shape[0], D), jnp.float32)
        for h in range(heads):                  # static, unrolled head loop
            sl = slice(h * dk, (h + 1) * dk)
            s = lax.dot_general(q[:, sl], k[:, sl], (((1,), (1,)), ((), ())),
                                preferred_element_type=jnp.float32) + bias
            s = s - jnp.max(s, axis=-1, keepdims=True)
            e = jnp.exp(s)
            denom = jnp.sum(e, axis=-1, keepdims=True)
            if emit_ref is not None:
                p = e / denom                   # exact: these probs are returned
                kl = s.shape[-1]
                emit_ref[0, :, h * kl:(h + 1) * kl] = p.astype(emit_ref.dtype)
            else:
                p = e * pl.reciprocal(denom, approx=True)   # EUP, probs are discarded
            ctx = jnp.dot(p.astype(mxu_dtype), v[:, sl],
                          preferred_element_type=jnp.float32)            # (T, dk)
            acc = acc + jnp.dot(ctx.astype(mxu_dtype), wo[sl, :].astype(mxu_dtype),
                                preferred_element_type=jnp.float32)      # (T, D)
        return acc + bo_ref[...]

    # ---- sublayer 1: self attention ----
    qkv = mm(x, sa_qkv_w, sa_qkv_b)             # one fat (T, 3D) projection matmul
    q = (qkv[:, :D] * scale).astype(mxu_dtype)
    k = qkv[:, D:2 * D].astype(mxu_dtype)
    v = qkv[:, 2 * D:].astype(mxu_dtype)
    bias = jnp.where(tmask_ref[0] == 0, jnp.float32(-65500.0), jnp.float32(0.0))
    att_out = mha_heads(q, k, v, bias, sa_o_w, sa_o_b, None)
    x = x + _layer_norm(att_out, ln1_g[...], ln1_b[...])

    # ---- sublayer 2: cross attention ----
    qc = mm(x, ca_q_w, ca_q_b)                  # (T, D)
    kvc = mm(feat, ca_kv_w, ca_kv_b)            # (S, 2D) fused K|V projection
    q = (qc * scale).astype(mxu_dtype)
    k = kvc[:, :D].astype(mxu_dtype)
    v = kvc[:, D:].astype(mxu_dtype)
    bias = jnp.where(smask_ref[0] == 0, jnp.float32(-65500.0), jnp.float32(0.0))
    src_out = mha_heads(q, k, v, bias, ca_o_w, ca_o_b, attn_ref)
    x = x + _layer_norm(src_out, ln2_g[...], ln2_b[...])

    # ---- sublayer 3: pre-norm feed forward ----
    ln = _layer_norm(x, ff_g[...], ff_b[...])
    hdn = jnp.maximum(mm(ln, ff1_w, ff1_b), 0.0)
    y = mm(hdn, ff2_w, ff2_b)
    out_ref[0] = (x + y).astype(out_ref.dtype)


# ----------------------------------------------------------------------------
# Parameter prep (runs ONCE, outside jit): concatenate projection weights.
# ----------------------------------------------------------------------------
def prepare_kernel_params(p):
    return {
        "sa_qkv_w": jnp.concatenate([p["sa_q"]["w"], p["sa_k"]["w"], p["sa_v"]["w"]], 1),
        "sa_qkv_b": jnp.concatenate([p["sa_q"]["b"], p["sa_k"]["b"], p["sa_v"]["b"]], 1),
        "sa_o_w": p["sa_out"]["w"], "sa_o_b": p["sa_out"]["b"],
        "ln1_g": p["norm1_g"], "ln1_b": p["norm1_b"],
        "ca_q_w": p["ca_q"]["w"], "ca_q_b": p["ca_q"]["b"],
        "ca_kv_w": jnp.concatenate([p["ca_k"]["w"], p["ca_v"]["w"]], 1),
        "ca_kv_b": jnp.concatenate([p["ca_k"]["b"], p["ca_v"]["b"]], 1),
        "ca_o_w": p["ca_out"]["w"], "ca_o_b": p["ca_out"]["b"],
        "ln2_g": p["norm2_g"], "ln2_b": p["norm2_b"],
        "ff_g": p["ff_norm_g"], "ff_b": p["ff_norm_b"],
        "ff1_w": p["ff_w1"]["w"], "ff1_b": p["ff_w1"]["b"],
        "ff2_w": p["ff_w2"]["w"], "ff2_b": p["ff_w2"]["b"],
    }


# ----------------------------------------------------------------------------
# DecoderLayer forward: one pallas_call over grid=(B,).
# ----------------------------------------------------------------------------
def decoder_layer_forward(kp, x, feature, src_mask, tgt_mask, pos, query_pos,
                          query_sine_embed, heads=HEADS, mxu_dtype=jnp.float32):
    # pos / query_pos / query_sine_embed are accepted but unused by this forward.
    del pos, query_pos, query_sine_embed
    B, T, D = x.shape
    S = feature.shape[1]
    dff = kp["ff1_w"].shape[1]
    dk = D // heads

    kernel = functools.partial(_decoder_layer_kernel, heads=heads,
                               scale=1.0 / math.sqrt(dk), mxu_dtype=mxu_dtype)
    res = lambda b: (0, 0)                      # resident weight blocks
    in_specs = [
        pl.BlockSpec((1, T, D), lambda b: (b, 0, 0)),       # x
        pl.BlockSpec((1, S, D), lambda b: (b, 0, 0)),       # feature
        pl.BlockSpec((1, T, T), lambda b: (b, 0, 0)),       # tgt_mask
        pl.BlockSpec((1, T, S), lambda b: (b, 0, 0)),       # src_mask
        pl.BlockSpec((D, 3 * D), res), pl.BlockSpec((1, 3 * D), res),   # sa [Wq|Wk|Wv]
        pl.BlockSpec((D, D), res), pl.BlockSpec((1, D), res),           # sa Wo
        pl.BlockSpec((1, D), res), pl.BlockSpec((1, D), res),           # LN1
        pl.BlockSpec((D, D), res), pl.BlockSpec((1, D), res),           # ca Wq
        pl.BlockSpec((D, 2 * D), res), pl.BlockSpec((1, 2 * D), res),   # ca [Wk|Wv]
        pl.BlockSpec((D, D), res), pl.BlockSpec((1, D), res),           # ca Wo
        pl.BlockSpec((1, D), res), pl.BlockSpec((1, D), res),           # LN2
        pl.BlockSpec((1, D), res), pl.BlockSpec((1, D), res),           # FFN LN
        pl.BlockSpec((D, dff), res), pl.BlockSpec((1, dff), res),       # W1
        pl.BlockSpec((dff, D), res), pl.BlockSpec((1, D), res),         # W2
    ]
    out_specs = [
        pl.BlockSpec((1, T, D), lambda b: (b, 0, 0)),
        pl.BlockSpec((1, T, heads * S), lambda b: (b, 0, 0)),   # lane-dense attn probs
    ]
    out_shape = [
        jax.ShapeDtypeStruct((B, T, D), jnp.float32),
        jax.ShapeDtypeStruct((B, T, heads * S), jnp.float32),
    ]
    out, attn_flat = pl.pallas_call(
        kernel,
        grid=(B,),
        in_specs=in_specs,
        out_specs=out_specs,
        out_shape=out_shape,
        compiler_params=pltpu.CompilerParams(
            dimension_semantics=("parallel",),          # 2 steps -> both v7x TCs
            vmem_limit_bytes=48 * 1024 * 1024),         # headroom inside v7x 64 MiB VMEM
    )(x, feature, tgt_mask, src_mask,
      kp["sa_qkv_w"], kp["sa_qkv_b"], kp["sa_o_w"], kp["sa_o_b"], kp["ln1_g"], kp["ln1_b"],
      kp["ca_q_w"], kp["ca_q_b"], kp["ca_kv_w"], kp["ca_kv_b"], kp["ca_o_w"], kp["ca_o_b"],
      kp["ln2_g"], kp["ln2_b"],
      kp["ff_g"], kp["ff_b"], kp["ff1_w"], kp["ff1_b"], kp["ff2_w"], kp["ff2_b"])

    # lane-dense (B, T, H*S) -> (B, H, T, S) to match the module's return layout
    src_at = attn_flat.reshape(B, T, heads, S).transpose(0, 2, 1, 3)
    return out, src_at


# ----------------------------------------------------------------------------
# Pure-JAX reference (mirrors the PyTorch forward) for a sanity check
# ----------------------------------------------------------------------------
def _ref_ln(t, g, b):
    mu = jnp.mean(t, -1, keepdims=True)
    var = jnp.mean((t - mu) ** 2, -1, keepdims=True)
    return (t - mu) / jnp.sqrt(var + 1e-5) * g + b


def _ref_attention(q, k, v, mask):
    dk = k.shape[-1]
    score = jnp.einsum("bhtd,bhsd->bhts", q, k) / math.sqrt(dk)
    score = jnp.where(mask[:, None] == 0, -65500.0, score)
    p = jax.nn.softmax(score, axis=-1)
    return jnp.einsum("bhts,bhsd->bhtd", p, v), p


def ref_forward(p, x, feature, src_mask, tgt_mask):
    B, T, D = x.shape
    dk = D // HEADS

    def split(t):
        return t.reshape(B, -1, HEADS, dk).transpose(0, 2, 1, 3)

    def merge(t):
        return t.transpose(0, 2, 1, 3).reshape(B, -1, D)

    q = split(x @ p["sa_q"]["w"] + p["sa_q"]["b"])
    k = split(x @ p["sa_k"]["w"] + p["sa_k"]["b"])
    v = split(x @ p["sa_v"]["w"] + p["sa_v"]["b"])
    ctx, _ = _ref_attention(q, k, v, tgt_mask)
    att_out = merge(ctx) @ p["sa_out"]["w"] + p["sa_out"]["b"]
    x = x + _ref_ln(att_out, p["norm1_g"], p["norm1_b"])

    q = split(x @ p["ca_q"]["w"] + p["ca_q"]["b"])
    k = split(feature @ p["ca_k"]["w"] + p["ca_k"]["b"])
    v = split(feature @ p["ca_v"]["w"] + p["ca_v"]["b"])
    ctx, src_at = _ref_attention(q, k, v, src_mask)
    src_out = merge(ctx) @ p["ca_out"]["w"] + p["ca_out"]["b"]
    x = x + _ref_ln(src_out, p["norm2_g"], p["norm2_b"])

    ln = _ref_ln(x, p["ff_norm_g"], p["ff_norm_b"])
    h = jax.nn.relu(ln @ p["ff_w1"]["w"] + p["ff_w1"]["b"])
    return x + h @ p["ff_w2"]["w"] + p["ff_w2"]["b"], src_at


# ----------------------------------------------------------------------------
# Deterministic parameter init
# ----------------------------------------------------------------------------
def init_linear(key, din, dout):
    kw, kb = jax.random.split(key)
    return {"w": jax.random.normal(kw, (din, dout), jnp.float32) * 0.02,
            "b": jax.random.normal(kb, (1, dout), jnp.float32) * 0.02}


def init_params(key, d_model, d_ff):
    names = ["sa_q", "sa_k", "sa_v", "sa_out",
             "ca_q", "ca_k", "ca_v", "ca_out"]
    keys = jax.random.split(key, len(names) + 2)
    p = {n: init_linear(k, d_model, d_model)
         for n, k in zip(names, keys[:len(names)])}
    p["ff_w1"] = init_linear(keys[-2], d_model, d_ff)
    p["ff_w2"] = init_linear(keys[-1], d_ff, d_model)
    for nm in ["norm1", "norm2", "ff_norm"]:
        p[nm + "_g"] = jnp.ones((1, d_model), jnp.float32)
        p[nm + "_b"] = jnp.zeros((1, d_model), jnp.float32)
    return p


# ----------------------------------------------------------------------------
# main
# ----------------------------------------------------------------------------
if __name__ == "__main__":
    B, T, D = 2, 8, 64          # d_model=64, 8 heads -> d_k=8
    S = 16                      # encoder memory length (e.g. H*W = 4*4); H*S = 128 lanes
    d_ff = 128

    key = jax.random.PRNGKey(0)
    kp_, kx, kf, kq, ks, kpos = jax.random.split(key, 6)

    params = init_params(kp_, D, d_ff)
    kernel_params = prepare_kernel_params(params)   # weight concat done ONCE, outside jit

    x = jax.random.normal(kx, (B, T, D), jnp.float32)
    feature = jax.random.normal(kf, (B, S, D), jnp.float32)
    query_pos = jax.random.normal(kq, (B, T, D), jnp.float32)          # unused by forward
    query_sine_embed = jax.random.normal(ks, (B, T, D), jnp.float32)   # unused by forward
    pos = jax.random.normal(kpos, (1, S, D), jnp.float32)              # unused by forward

    tgt_mask = jnp.broadcast_to(jnp.tril(jnp.ones((T, T), jnp.float32)), (B, T, T))
    src_mask = jnp.ones((B, T, S), jnp.float32).at[1, :, S - 2:].set(0.0)

    fwd = jax.jit(decoder_layer_forward)
    out, src_at = fwd(kernel_params, x, feature, src_mask, tgt_mask, pos,
                      query_pos, query_sine_embed)
    jax.block_until_ready((out, src_at))

    # sanity check against a pure-JAX mirror of the PyTorch forward
    ref_out, ref_at = ref_forward(params, x, feature, src_mask, tgt_mask)
    assert out.shape == (B, T, D) and src_at.shape == (B, HEADS, T, S)
    assert float(jnp.max(jnp.abs(out - ref_out))) < 2e-2
    assert float(jnp.max(jnp.abs(src_at - ref_at))) < 2e-2

    print("KERNEL_OK")
</pallas_src>

<mosaic_0001>
module attributes {stable_mosaic.version = 11 : i64} {
  func.func @_decoder_layer_kernel(%arg0: i32, %arg1: memref<1x8x64xf32, #tpu.memory_space<vmem>>, %arg2: memref<1x16x64xf32, #tpu.memory_space<vmem>>, %arg3: memref<1x8x8xf32, #tpu.memory_space<vmem>>, %arg4: memref<1x8x16xf32, #tpu.memory_space<vmem>>, %arg5: memref<64x192xf32, #tpu.memory_space<vmem>>, %arg6: memref<1x192xf32, #tpu.memory_space<vmem>>, %arg7: memref<64x64xf32, #tpu.memory_space<vmem>>, %arg8: memref<1x64xf32, #tpu.memory_space<vmem>>, %arg9: memref<1x64xf32, #tpu.memory_space<vmem>>, %arg10: memref<1x64xf32, #tpu.memory_space<vmem>>, %arg11: memref<64x64xf32, #tpu.memory_space<vmem>>, %arg12: memref<1x64xf32, #tpu.memory_space<vmem>>, %arg13: memref<64x128xf32, #tpu.memory_space<vmem>>, %arg14: memref<1x128xf32, #tpu.memory_space<vmem>>, %arg15: memref<64x64xf32, #tpu.memory_space<vmem>>, %arg16: memref<1x64xf32, #tpu.memory_space<vmem>>, %arg17: memref<1x64xf32, #tpu.memory_space<vmem>>, %arg18: memref<1x64xf32, #tpu.memory_space<vmem>>, %arg19: memref<1x64xf32, #tpu.memory_space<vmem>>, %arg20: memref<1x64xf32, #tpu.memory_space<vmem>>, %arg21: memref<64x128xf32, #tpu.memory_space<vmem>>, %arg22: memref<1x128xf32, #tpu.memory_space<vmem>>, %arg23: memref<128x64xf32, #tpu.memory_space<vmem>>, %arg24: memref<1x64xf32, #tpu.memory_space<vmem>>, %arg25: memref<1x8x64xf32, #tpu.memory_space<vmem>>, %arg26: memref<1x8x128xf32, #tpu.memory_space<vmem>>) attributes {dimension_semantics = [#tpu.dimension_semantics<parallel>], iteration_bounds = array<i64: 2>, scalar_prefetch = 0 : i64, scratch_operands = 0 : i64, tpu.core_type = #tpu.core_type<tc>, window_params = [{transform_indices = @transform_0, window_bounds = array<i64: 1, 8, 64>}, {transform_indices = @transform_1, window_bounds = array<i64: 1, 16, 64>}, {transform_indices = @transform_2, window_bounds = array<i64: 1, 8, 8>}, {transform_indices = @transform_3, window_bounds = array<i64: 1, 8, 16>}, {pipeline_mode = #tpu.pipeline_mode<synchronous>, transform_indices = @transform_4, window_bounds = array<i64: 64, 192>}, {pipeline_mode = #tpu.pipeline_mode<synchronous>, transform_indices = @transform_5, window_bounds = array<i64: 1, 192>}, {pipeline_mode = #tpu.pipeline_mode<synchronous>, transform_indices = @transform_6, window_bounds = array<i64: 64, 64>}, {pipeline_mode = #tpu.pipeline_mode<synchronous>, transform_indices = @transform_7, window_bounds = array<i64: 1, 64>}, {pipeline_mode = #tpu.pipeline_mode<synchronous>, transform_indices = @transform_8, window_bounds = array<i64: 1, 64>}, {pipeline_mode = #tpu.pipeline_mode<synchronous>, transform_indices = @transform_9, window_bounds = array<i64: 1, 64>}, {pipeline_mode = #tpu.pipeline_mode<synchronous>, transform_indices = @transform_10, window_bounds = array<i64: 64, 64>}, {pipeline_mode = #tpu.pipeline_mode<synchronous>, transform_indices = @transform_11, window_bounds = array<i64: 1, 64>}, {pipeline_mode = #tpu.pipeline_mode<synchronous>, transform_indices = @transform_12, window_bounds = array<i64: 64, 128>}, {pipeline_mode = #tpu.pipeline_mode<synchronous>, transform_indices = @transform_13, window_bounds = array<i64: 1, 128>}, {pipeline_mode = #tpu.pipeline_mode<synchronous>, transform_indices = @transform_14, window_bounds = array<i64: 64, 64>}, {pipeline_mode = #tpu.pipeline_mode<synchronous>, transform_indices = @transform_15, window_bounds = array<i64: 1, 64>}, {pipeline_mode = #tpu.pipeline_mode<synchronous>, transform_indices = @transform_16, window_bounds = array<i64: 1, 64>}, {pipeline_mode = #tpu.pipeline_mode<synchronous>, transform_indices = @transform_17, window_bounds = array<i64: 1, 64>}, {pipeline_mode = #tpu.pipeline_mode<synchronous>, transform_indices = @transform_18, window_bounds = array<i64: 1, 64>}, {pipeline_mode = #tpu.pipeline_mode<synchronous>, transform_indices = @transform_19, window_bounds = array<i64: 1, 64>}, {pipeline_mode = #tpu.pipeline_mode<synchronous>, transform_indices = @transform_20, window_bounds = array<i64: 64, 128>}, {pipeline_mode = #tpu.pipeline_mode<synchronous>, transform_indices = @transform_21, window_bounds = array<i64: 1, 128>}, {pipeline_mode = #tpu.pipeline_mode<synchronous>, transform_indices = @transform_22, window_bounds = array<i64: 128, 64>}, {pipeline_mode = #tpu.pipeline_mode<synchronous>, transform_indices = @transform_23, window_bounds = array<i64: 1, 64>}, {transform_indices = @transform_24, window_bounds = array<i64: 1, 8, 64>}, {transform_indices = @transform_25, window_bounds = array<i64: 1, 8, 128>}]} {
    %c0 = arith.constant 0 : index
    %c0_0 = arith.constant 0 : index
    %c0_1 = arith.constant 0 : index
    %0 = vector.load %arg1[%c0, %c0_0, %c0_1] : memref<1x8x64xf32, #tpu.memory_space<vmem>>, vector<1x8x64xf32>
    %1 = vector.shape_cast %0 : vector<1x8x64xf32> to vector<8x64xf32>
    %c0_2 = arith.constant 0 : index
    %c0_3 = arith.constant 0 : index
    %c0_4 = arith.constant 0 : index
    %2 = vector.load %arg2[%c0_2, %c0_3, %c0_4] : memref<1x16x64xf32, #tpu.memory_space<vmem>>, vector<1x16x64xf32>
    %3 = vector.shape_cast %2 : vector<1x16x64xf32> to vector<16x64xf32>
    %c0_5 = arith.constant 0 : index
    %c0_6 = arith.constant 0 : index
    %4 = vector.load %arg5[%c0_5, %c0_6] : memref<64x192xf32, #tpu.memory_space<vmem>>, vector<64x192xf32>
    %cst = arith.constant dense<0.000000e+00> : vector<8x192xf32>
    %5 = tpu.matmul %1, %4, %cst {dimension_numbers = #tpu.dot_dimension_numbers<[1], [0], [0], [1], [0, 0, 1, 1], [], []>} : vector<8x64xf32>, vector<64x192xf32>, vector<8x192xf32> -> vector<8x192xf32>
    %c0_7 = arith.constant 0 : index
    %c0_8 = arith.constant 0 : index
    %6 = vector.load %arg6[%c0_7, %c0_8] : memref<1x192xf32, #tpu.memory_space<vmem>>, vector<1x192xf32>
    %7 = vector.broadcast %6 : vector<1x192xf32> to vector<8x192xf32>
    %8 = arith.addf %5, %7 : vector<8x192xf32>
    %9 = vector.extract_strided_slice %8 {offsets = [0, 0], sizes = [8, 64], strides = [1, 1]} : vector<8x192xf32> to vector<8x64xf32>
    %cst_9 = arith.constant 0.353553385 : f32
    %10 = vector.broadcast %cst_9 : f32 to vector<8x64xf32>
    %11 = arith.mulf %9, %10 : vector<8x64xf32>
    %12 = vector.extract_strided_slice %8 {offsets = [0, 64], sizes = [8, 64], strides = [1, 1]} : vector<8x192xf32> to vector<8x64xf32>
    %13 = vector.extract_strided_slice %8 {offsets = [0, 128], sizes = [8, 64], strides = [1, 1]} : vector<8x192xf32> to vector<8x64xf32>
    %c0_10 = arith.constant 0 : index
    %c0_11 = arith.constant 0 : index
    %c0_12 = arith.constant 0 : index
    %14 = vector.load %arg3[%c0_10, %c0_11, %c0_12] : memref<1x8x8xf32, #tpu.memory_space<vmem>>, vector<1x8x8xf32>
    %15 = vector.shape_cast %14 : vector<1x8x8xf32> to vector<8x8xf32>
    %cst_13 = arith.constant 0.000000e+00 : f32
    %16 = vector.broadcast %cst_13 : f32 to vector<8x8xf32>
    %17 = arith.cmpf oeq, %15, %16 : vector<8x8xf32>
    %cst_14 = arith.constant -6.550000e+04 : f32
    %cst_15 = arith.constant 0.000000e+00 : f32
    %18 = vector.broadcast %cst_14 : f32 to vector<8x8xf32>
    %19 = vector.broadcast %cst_15 : f32 to vector<8x8xf32>
    %20 = arith.select %17, %18, %19 : vector<8x8xi1>, vector<8x8xf32>
    %c0_16 = arith.constant 0 : index
    %c0_17 = arith.constant 0 : index
    %21 = vector.load %arg7[%c0_16, %c0_17] : memref<64x64xf32, #tpu.memory_space<vmem>>, vector<64x64xf32>
    %cst_18 = arith.constant 0.000000e+00 : f32
    %22 = vector.broadcast %cst_18 : f32 to vector<8x64xf32>
    %23 = vector.extract_strided_slice %11 {offsets = [0, 0], sizes = [8, 8], strides = [1, 1]} : vector<8x64xf32> to vector<8x8xf32>
    %24 = vector.extract_strided_slice %12 {offsets = [0, 0], sizes = [8, 8], strides = [1, 1]} : vector<8x64xf32> to vector<8x8xf32>
    %cst_19 = arith.constant dense<0.000000e+00> : vector<8x8xf32>
    %25 = tpu.matmul %23, %24, %cst_19 {dimension_numbers = #tpu.dot_dimension_numbers<[1], [1], [0], [0], [0, 0, 1, 0], [], []>} : vector<8x8xf32>, vector<8x8xf32>, vector<8x8xf32> -> vector<8x8xf32>
    %26 = arith.addf %25, %20 : vector<8x8xf32>
    %cst_20 = arith.constant dense<0xFF800000> : vector<8xf32>
    %27 = vector.multi_reduction <maximumf>, %26, %cst_20 [1] : vector<8x8xf32> to vector<8xf32>
    %28 = vector.shape_cast %27 : vector<8xf32> to vector<8x1xf32>
    %29 = vector.broadcast %28 : vector<8x1xf32> to vector<8x8xf32>
    %30 = arith.subf %26, %29 : vector<8x8xf32>
    %31 = math.exp %30 : vector<8x8xf32>
    %cst_21 = arith.constant dense<0.000000e+00> : vector<8xf32>
    %32 = vector.multi_reduction <add>, %31, %cst_21 [1] : vector<8x8xf32> to vector<8xf32>
    %33 = vector.shape_cast %32 : vector<8xf32> to vector<8x1xf32>
    %34 = tpu.reciprocal %33 {approx = true} : vector<8x1xf32> -> vector<8x1xf32>
    %35 = vector.broadcast %34 : vector<8x1xf32> to vector<8x8xf32>
    %36 = arith.mulf %31, %35 : vector<8x8xf32>
    %37 = vector.extract_strided_slice %13 {offsets = [0, 0], sizes = [8, 8], strides = [1, 1]} : vector<8x64xf32> to vector<8x8xf32>
    %cst_22 = arith.constant dense<0.000000e+00> : vector<8x8xf32>
    %38 = tpu.matmul %36, %37, %cst_22 {dimension_numbers = #tpu.dot_dimension_numbers<[1], [0], [0], [1], [0, 0, 1, 1], [], []>} : vector<8x8xf32>, vector<8x8xf32>, vector<8x8xf32> -> vector<8x8xf32>
    %39 = vector.extract_strided_slice %21 {offsets = [0, 0], sizes = [8, 64], strides = [1, 1]} : vector<64x64xf32> to vector<8x64xf32>
    %cst_23 = arith.constant dense<0.000000e+00> : vector<8x64xf32>
    %40 = tpu.matmul %38, %39, %cst_23 {dimension_numbers = #tpu.dot_dimension_numbers<[1], [0], [0], [1], [0, 0, 1, 1], [], []>} : vector<8x8xf32>, vector<8x64xf32>, vector<8x64xf32> -> vector<8x64xf32>
    %41 = arith.addf %22, %40 : vector<8x64xf32>
    %42 = vector.extract_strided_slice %11 {offsets = [0, 8], sizes = [8, 8], strides = [1, 1]} : vector<8x64xf32> to vector<8x8xf32>
    %43 = vector.extract_strided_slice %12 {offsets = [0, 8], sizes = [8, 8], strides = [1, 1]} : vector<8x64xf32> to vector<8x8xf32>
    %cst_24 = arith.constant dense<0.000000e+00> : vector<8x8xf32>
    %44 = tpu.matmul %42, %43, %cst_24 {dimension_numbers = #tpu.dot_dimension_numbers<[1], [1], [0], [0], [0, 0, 1, 0], [], []>} : vector<8x8xf32>, vector<8x8xf32>, vector<8x8xf32> -> vector<8x8xf32>
    %45 = arith.addf %44, %20 : vector<8x8xf32>
    %cst_25 = arith.constant dense<0xFF800000> : vector<8xf32>
    %46 = vector.multi_reduction <maximumf>, %45, %cst_25 [1] : vector<8x8xf32> to vector<8xf32>
    %47 = vector.shape_cast %46 : vector<8xf32> to vector<8x1xf32>
    %48 = vector.broadcast %47 : vector<8x1xf32> to vector<8x8xf32>
    %49 = arith.subf %45, %48 : vector<8x8xf32>
    %50 = math.exp %49 : vector<8x8xf32>
    %cst_26 = arith.constant dense<0.000000e+00> : vector<8xf32>
    %51 = vector.multi_reduction <add>, %50, %cst_26 [1] : vector<8x8xf32> to vector<8xf32>
    %52 = vector.shape_cast %51 : vector<8xf32> to vector<8x1xf32>
    %53 = tpu.reciprocal %52 {approx = true} : vector<8x1xf32> -> vector<8x1xf32>
    %54 = vector.broadcast %53 : vector<8x1xf32> to vector<8x8xf32>
    %55 = arith.mulf %50, %54 : vector<8x8xf32>
    %56 = vector.extract_strided_slice %13 {offsets = [0, 8], sizes = [8, 8], strides = [1, 1]} : vector<8x64xf32> to vector<8x8xf32>
    %cst_27 = arith.constant dense<0.000000e+00> : vector<8x8xf32>
    %57 = tpu.matmul %55, %56, %cst_27 {dimension_numbers = #tpu.dot_dimension_numbers<[1], [0], [0], [1], [0, 0, 1, 1], [], []>} : vector<8x8xf32>, vector<8x8xf32>, vector<8x8xf32> -> vector<8x8xf32>
    %58 = vector.extract_strided_slice %21 {offsets = [8, 0], sizes = [8, 64], strides = [1, 1]} : vector<64x64xf32> to vector<8x64xf32>
    %cst_28 = arith.constant dense<0.000000e+00> : vector<8x64xf32>
    %59 = tpu.matmul %57, %58, %cst_28 {dimension_numbers = #tpu.dot_dimension_numbers<[1], [0], [0], [1], [0, 0, 1, 1], [], []>} : vector<8x8xf32>, vector<8x64xf32>, vector<8x64xf32> -> vector<8x64xf32>
    %60 = arith.addf %41, %59 : vector<8x64xf32>
    %61 = vector.extract_strided_slice %11 {offsets = [0, 16], sizes = [8, 8], strides = [1, 1]} : vector<8x64xf32> to vector<8x8xf32>
    %62 = vector.extract_strided_slice %12 {offsets = [0, 16], sizes = [8, 8], strides = [1, 1]} : vector<8x64xf32> to vector<8x8xf32>
    %cst_29 = arith.constant dense<0.000000e+00> : vector<8x8xf32>
    %63 = tpu.matmul %61, %62, %cst_29 {dimension_numbers = #tpu.dot_dimension_numbers<[1], [1], [0], [0], [0, 0, 1, 0], [], []>} : vector<8x8xf32>, vector<8x8xf32>, vector<8x8xf32> -> vector<8x8xf32>
    %64 = arith.addf %63, %20 : vector<8x8xf32>
    %cst_30 = arith.constant dense<0xFF800000> : vector<8xf32>
    %65 = vector.multi_reduction <maximumf>, %64, %cst_30 [1] : vector<8x8xf32> to vector<8xf32>
    %66 = vector.shape_cast %65 : vector<8xf32> to vector<8x1xf32>
    %67 = vector.broadcast %66 : vector<8x1xf32> to vector<8x8xf32>
    %68 = arith.subf %64, %67 : vector<8x8xf32>
    %69 = math.exp %68 : vector<8x8xf32>
    %cst_31 = arith.constant dense<0.000000e+00> : vector<8xf32>
    %70 = vector.multi_reduction <add>, %69, %cst_31 [1] : vector<8x8xf32> to vector<8xf32>
    %71 = vector.shape_cast %70 : vector<8xf32> to vector<8x1xf32>
    %72 = tpu.reciprocal %71 {approx = true} : vector<8x1xf32> -> vector<8x1xf32>
    %73 = vector.broadcast %72 : vector<8x1xf32> to vector<8x8xf32>
    %74 = arith.mulf %69, %73 : vector<8x8xf32>
    %75 = vector.extract_strided_slice %13 {offsets = [0, 16], sizes = [8, 8], strides = [1, 1]} : vector<8x64xf32> to vector<8x8xf32>
    %cst_32 = arith.constant dense<0.000000e+00> : vector<8x8xf32>
    %76 = tpu.matmul %74, %75, %cst_32 {dimension_numbers = #tpu.dot_dimension_numbers<[1], [0], [0], [1], [0, 0, 1, 1], [], []>} : vector<8x8xf32>, vector<8x8xf32>, vector<8x8xf32> -> vector<8x8xf32>
    %77 = vector.extract_strided_slice %21 {offsets = [16, 0], sizes = [8, 64], strides = [1, 1]} : vector<64x64xf32> to vector<8x64xf32>
    %cst_33 = arith.constant dense<0.000000e+00> : vector<8x64xf32>
    %78 = tpu.matmul %76, %77, %cst_33 {dimension_numbers = #tpu.dot_dimension_numbers<[1], [0], [0], [1], [0, 0, 1, 1], [], []>} : vector<8x8xf32>, vector<8x64xf32>, vector<8x64xf32> -> vector<8x64xf32>
    %79 = arith.addf %60, %78 : vector<8x64xf32>
    %80 = vector.extract_strided_slice %11 {offsets = [0, 24], sizes = [8, 8], strides = [1, 1]} : vector<8x64xf32> to vector<8x8xf32>
    %81 = vector.extract_strided_slice %12 {offsets = [0, 24], sizes = [8, 8], strides = [1, 1]} : vector<8x64xf32> to vector<8x8xf32>
    %cst_34 = arith.constant dense<0.000000e+00> : vector<8x8xf32>
    %82 = tpu.matmul %80, %81, %cst_34 {dimension_numbers = #tpu.dot_dimension_numbers<[1], [1], [0], [0], [0, 0, 1, 0], [], []>} : vector<8x8xf32>, vector<8x8xf32>, vector<8x8xf32> -> vector<8x8xf32>
    %83 = arith.addf %82, %20 : vector<8x8xf32>
    %cst_35 = arith.constant dense<0xFF800000> : vector<8xf32>
    %84 = vector.multi_reduction <maximumf>, %83, %cst_35 [1] : vector<8x8xf32> to vector<8xf32>
    %85 = vector.shape_cast %84 : vector<8xf32> to vector<8x1xf32>
    %86 = vector.broadcast %85 : vector<8x1xf32> to vector<8x8xf32>
    %87 = arith.subf %83, %86 : vector<8x8xf32>
    %88 = math.exp %87 : vector<8x8xf32>
    %cst_36 = arith.constant dense<0.000000e+00> : vector<8xf32>
    %89 = vector.multi_reduction <add>, %88, %cst_36 [1] : vector<8x8xf32> to vector<8xf32>
    %90 = vector.shape_cast %89 : vector<8xf32> to vector<8x1xf32>
    %91 = tpu.reciprocal %90 {approx = true} : vector<8x1xf32> -> vector<8x1xf32>
    %92 = vector.broadcast %91 : vector<8x1xf32> to vector<8x8xf32>
    %93 = arith.mulf %88, %92 : vector<8x8xf32>
    %94 = vector.extract_strided_slice %13 {offsets = [0, 24], sizes = [8, 8], strides = [1, 1]} : vector<8x64xf32> to vector<8x8xf32>
    %cst_37 = arith.constant dense<0.000000e+00> : vector<8x8xf32>
    %95 = tpu.matmul %93, %94, %cst_37 {dimension_numbers = #tpu.dot_dimension_numbers<[1], [0], [0], [1], [0, 0, 1, 1], [], []>} : vector<8x8xf32>, vector<8x8xf32>, vector<8x8xf32> -> vector<8x8xf32>
    %96 = vector.extract_strided_slice %21 {offsets = [24, 0], sizes = [8, 64], strides = [1, 1]} : vector<64x64xf32> to vector<8x64xf32>
    %cst_38 = arith.constant dense<0.000000e+00> : vector<8x64xf32>
    %97 = tpu.matmul %95, %96, %cst_38 {dimension_numbers = #tpu.dot_dimension_numbers<[1], [0], [0], [1], [0, 0, 1, 1], [], []>} : vector<8x8xf32>, vector<8x64xf32>, vector<8x64xf32> -> vector<8x64xf32>
    %98 = arith.addf %79, %97 : vector<8x64xf32>
    %99 = vector.extract_strided_slice %11 {offsets = [0, 32], sizes = [8, 8], strides = [1, 1]} : vector<8x64xf32> to vector<8x8xf32>
    %100 = vector.extract_strided_slice %12 {offsets = [0, 32], sizes = [8, 8], strides = [1, 1]} : vector<8x64xf32> to vector<8x8xf32>
    %cst_39 = arith.constant dense<0.000000e+00> : vector<8x8xf32>
    %101 = tpu.matmul %99, %100, %cst_39 {dimension_numbers = #tpu.dot_dimension_numbers<[1], [1], [0], [0], [0, 0, 1, 0], [], []>} : vector<8x8xf32>, vector<8x8xf32>, vector<8x8xf32> -> vector<8x8xf32>
    %102 = arith.addf %101, %20 : vector<8x8xf32>
    %cst_40 = arith.constant dense<0xFF800000> : vector<8xf32>
    %103 = vector.multi_reduction <maximumf>, %102, %cst_40 [1] : vector<8x8xf32> to vector<8xf32>
    %104 = vector.shape_cast %103 : vector<8xf32> to vector<8x1xf32>
    %105 = vector.broadcast %104 : vector<8x1xf32> to vector<8x8xf32>
    %106 = arith.subf %102, %105 : vector<8x8xf32>
    %107 = math.exp %106 : vector<8x8xf32>
    %cst_41 = arith.constant dense<0.000000e+00> : vector<8xf32>
    %108 = vector.multi_reduction <add>, %107, %cst_41 [1] : vector<8x8xf32> to vector<8xf32>
    %109 = vector.shape_cast %108 : vector<8xf32> to vector<8x1xf32>
    %110 = tpu.reciprocal %109 {approx = true} : vector<8x1xf32> -> vector<8x1xf32>
    %111 = vector.broadcast %110 : vector<8x1xf32> to vector<8x8xf32>
    %112 = arith.mulf %107, %111 : vector<8x8xf32>
    %113 = vector.extract_strided_slice %13 {offsets = [0, 32], sizes = [8, 8], strides = [1, 1]} : vector<8x64xf32> to vector<8x8xf32>
    %cst_42 = arith.constant dense<0.000000e+00> : vector<8x8xf32>
    %114 = tpu.matmul %112, %113, %cst_42 {dimension_numbers = #tpu.dot_dimension_numbers<[1], [0], [0], [1], [0, 0, 1, 1], [], []>} : vector<8x8xf32>, vector<8x8xf32>, vector<8x8xf32> -> vector<8x8xf32>
    %115 = vector.extract_strided_slice %21 {offsets = [32, 0], sizes = [8, 64], strides = [1, 1]} : vector<64x64xf32> to vector<8x64xf32>
    %cst_43 = arith.constant dense<0.000000e+00> : vector<8x64xf32>
    %116 = tpu.matmul %114, %115, %cst_43 {dimension_numbers = #tpu.dot_dimension_numbers<[1], [0], [0], [1], [0, 0, 1, 1], [], []>} : vector<8x8xf32>, vector<8x64xf32>, vector<8x64xf32> -> vector<8x64xf32>
    %117 = arith.addf %98, %116 : vector<8x64xf32>
    %118 = vector.extract_strided_slice %11 {offsets = [0, 40], sizes = [8, 8], strides = [1, 1]} : vector<8x64xf32> to vector<8x8xf32>
    %119 = vector.extract_strided_slice %12 {offsets = [0, 40], sizes = [8, 8], strides = [1, 1]} : vector<8x64xf32> to vector<8x8xf32>
    %cst_44 = arith.constant dense<0.000000e+00> : vector<8x8xf32>
    %120 = tpu.matmul %118, %119, %cst_44 {dimension_numbers = #tpu.dot_dimension_numbers<[1], [1], [0], [0], [0, 0, 1, 0], [], []>} : vector<8x8xf32>, vector<8x8xf32>, vector<8x8xf32> -> vector<8x8xf32>
    %121 = arith.addf %120, %20 : vector<8x8xf32>
    %cst_45 = arith.constant dense<0xFF800000> : vector<8xf32>
    %122 = vector.multi_reduction <maximumf>, %121, %cst_45 [1] : vector<8x8xf32> to vector<8xf32>
    %123 = vector.shape_cast %122 : vector<8xf32> to vector<8x1xf32>
    %124 = vector.broadcast %123 : vector<8x1xf32> to vector<8x8xf32>
    %125 = arith.subf %121, %124 : vector<8x8xf32>
    %126 = math.exp %125 : vector<8x8xf32>
    %cst_46 = arith.constant dense<0.000000e+00> : vector<8xf32>
    %127 = vector.multi_reduction <add>, %126, %cst_46 [1] : vector<8x8xf32> to vector<8xf32>
    %128 = vector.shape_cast %127 : vector<8xf32> to vector<8x1xf32>
    %129 = tpu.reciprocal %128 {approx = true} : vector<8x1xf32> -> vector<8x1xf32>
    %130 = vector.broadcast %129 : vector<8x1xf32> to vector<8x8xf32>
    %131 = arith.mulf %126, %130 : vector<8x8xf32>
    %132 = vector.extract_strided_slice %13 {offsets = [0, 40], sizes = [8, 8], strides = [1, 1]} : vector<8x64xf32> to vector<8x8xf32>
    %cst_47 = arith.constant dense<0.000000e+00> : vector<8x8xf32>
    %133 = tpu.matmul %131, %132, %cst_47 {dimension_numbers = #tpu.dot_dimension_numbers<[1], [0], [0], [1], [0, 0, 1, 1], [], []>} : vector<8x8xf32>, vector<8x8xf32>, vector<8x8xf32> -> vector<8x8xf32>
    %134 = vector.extract_strided_slice %21 {offsets = [40, 0], sizes = [8, 64], strides = [1, 1]} : vector<64x64xf32> to vector<8x64xf32>
    %cst_48 = arith.constant dense<0.000000e+00> : vector<8x64xf32>
    %135 = tpu.matmul %133, %134, %cst_48 {dimension_numbers = #tpu.dot_dimension_numbers<[1], [0], [0], [1], [0, 0, 1, 1], [], []>} : vector<8x8xf32>, vector<8x64xf32>, vector<8x64xf32> -> vector<8x64xf32>
    %136 = arith.addf %117, %135 : vector<8x64xf32>
    %137 = vector.extract_strided_slice %11 {offsets = [0, 48], sizes = [8, 8], strides = [1, 1]} : vector<8x64xf32> to vector<8x8xf32>
    %138 = vector.extract_strided_slice %12 {offsets = [0, 48], sizes = [8, 8], strides = [1, 1]} : vector<8x64xf32> to vector<8x8xf32>
    %cst_49 = arith.constant dense<0.000000e+00> : vector<8x8xf32>
    %139 = tpu.matmul %137, %138, %cst_49 {dimension_numbers = #tpu.dot_dimension_numbers<[1], [1], [0], [0], [0, 0, 1, 0], [], []>} : vector<8x8xf32>, vector<8x8xf32>, vector<8x8xf32> -> vector<8x8xf32>
    %140 = arith.addf %139, %20 : vector<8x8xf32>
    %cst_50 = arith.constant dense<0xFF800000> : vector<8xf32>
    %141 = vector.multi_reduction <maximumf>, %140, %cst_50 [1] : vector<8x8xf32> to vector<8xf32>
    %142 = vector.shape_cast %141 : vector<8xf32> to vector<8x1xf32>
    %143 = vector.broadcast %142 : vector<8x1xf32> to vector<8x8xf32>
    %144 = arith.subf %140, %143 : vector<8x8xf32>
    %145 = math.exp %144 : vector<8x8xf32>
    %cst_51 = arith.constant dense<0.000000e+00> : vector<8xf32>
    %146 = vector.multi_reduction <add>, %145, %cst_51 [1] : vector<8x8xf32> to vector<8xf32>
    %147 = vector.shape_cast %146 : vector<8xf32> to vector<8x1xf32>
    %148 = tpu.reciprocal %147 {approx = true} : vector<8x1xf32> -> vector<8x1xf32>
    %149 = vector.broadcast %148 : vector<8x1xf32> to vector<8x8xf32>
    %150 = arith.mulf %145, %149 : vector<8x8xf32>
    %151 = vector.extract_strided_slice %13 {offsets = [0, 48], sizes = [8, 8], strides = [1, 1]} : vector<8x64xf32> to vector<8x8xf32>
    %cst_52 = arith.constant dense<0.000000e+00> : vector<8x8xf32>
    %152 = tpu.matmul %150, %151, %cst_52 {dimension_numbers = #tpu.dot_dimension_numbers<[1], [0], [0], [1], [0, 0, 1, 1], [], []>} : vector<8x8xf32>, vector<8x8xf32>, vector<8x8xf32> -> vector<8x8xf32>
    %153 = vector.extract_strided_slice %21 {offsets = [48, 0], sizes = [8, 64], strides = [1, 1]} : vector<64x64xf32> to vector<8x64xf32>
    %cst_53 = arith.constant dense<0.000000e+00> : vector<8x64xf32>
    %154 = tpu.matmul %152, %153, %cst_53 {dimension_numbers = #tpu.dot_dimension_numbers<[1], [0], [0], [1], [0, 0, 1, 1], [], []>} : vector<8x8xf32>, vector<8x64xf32>, vector<8x64xf32> -> vector<8x64xf32>
    %155 = arith.addf %136, %154 : vector<8x64xf32>
    %156 = vector.extract_strided_slice %11 {offsets = [0, 56], sizes = [8, 8], strides = [1, 1]} : vector<8x64xf32> to vector<8x8xf32>
    %157 = vector.extract_strided_slice %12 {offsets = [0, 56], sizes = [8, 8], strides = [1, 1]} : vector<8x64xf32> to vector<8x8xf32>
    %cst_54 = arith.constant dense<0.000000e+00> : vector<8x8xf32>
    %158 = tpu.matmul %156, %157, %cst_54 {dimension_numbers = #tpu.dot_dimension_numbers<[1], [1], [0], [0], [0, 0, 1, 0], [], []>} : vector<8x8xf32>, vector<8x8xf32>, vector<8x8xf32> -> vector<8x8xf32>
    %159 = arith.addf %158, %20 : vector<8x8xf32>
    %cst_55 = arith.constant dense<0xFF800000> : vector<8xf32>
    %160 = vector.multi_reduction <maximumf>, %159, %cst_55 [1] : vector<8x8xf32> to vector<8xf32>
    %161 = vector.shape_cast %160 : vector<8xf32> to vector<8x1xf32>
    %162 = vector.broadcast %161 : vector<8x1xf32> to vector<8x8xf32>
    %163 = arith.subf %159, %162 : vector<8x8xf32>
    %164 = math.exp %163 : vector<8x8xf32>
    %cst_56 = arith.constant dense<0.000000e+00> : vector<8xf32>
    %165 = vector.multi_reduction <add>, %164, %cst_56 [1] : vector<8x8xf32> to vector<8xf32>
    %166 = vector.shape_cast %165 : vector<8xf32> to vector<8x1xf32>
    %167 = tpu.reciprocal %166 {approx = true} : vector<8x1xf32> -> vector<8x1xf32>
    %168 = vector.broadcast %167 : vector<8x1xf32> to vector<8x8xf32>
    %169 = arith.mulf %164, %168 : vector<8x8xf32>
    %170 = vector.extract_strided_slice %13 {offsets = [0, 56], sizes = [8, 8], strides = [1, 1]} : vector<8x64xf32> to vector<8x8xf32>
    %cst_57 = arith.constant dense<0.000000e+00> : vector<8x8xf32>
    %171 = tpu.matmul %169, %170, %cst_57 {dimension_numbers = #tpu.dot_dimension_numbers<[1], [0], [0], [1], [0, 0, 1, 1], [], []>} : vector<8x8xf32>, vector<8x8xf32>, vector<8x8xf32> -> vector<8x8xf32>
    %172 = vector.extract_strided_slice %21 {offsets = [56, 0], sizes = [8, 64], strides = [1, 1]} : vector<64x64xf32> to vector<8x64xf32>
    %cst_58 = arith.constant dense<0.000000e+00> : vector<8x64xf32>
    %173 = tpu.matmul %171, %172, %cst_58 {dimension_numbers = #tpu.dot_dimension_numbers<[1], [0], [0], [1], [0, 0, 1, 1], [], []>} : vector<8x8xf32>, vector<8x64xf32>, vector<8x64xf32> -> vector<8x64xf32>
    %174 = arith.addf %155, %173 : vector<8x64xf32>
    %c0_59 = arith.constant 0 : index
    %c0_60 = arith.constant 0 : index
    %175 = vector.load %arg8[%c0_59, %c0_60] : memref<1x64xf32, #tpu.memory_space<vmem>>, vector<1x64xf32>
    %176 = vector.broadcast %175 : vector<1x64xf32> to vector<8x64xf32>
    %177 = arith.addf %174, %176 : vector<8x64xf32>
    %c0_61 = arith.constant 0 : index
    %c0_62 = arith.constant 0 : index
    %178 = vector.load %arg9[%c0_61, %c0_62] : memref<1x64xf32, #tpu.memory_space<vmem>>, vector<1x64xf32>
    %c0_63 = arith.constant 0 : index
    %c0_64 = arith.constant 0 : index
    %179 = vector.load %arg10[%c0_63, %c0_64] : memref<1x64xf32, #tpu.memory_space<vmem>>, vector<1x64xf32>
    %cst_65 = arith.constant dense<0.000000e+00> : vector<8xf32>
    %180 = vector.multi_reduction <add>, %177, %cst_65 [1] : vector<8x64xf32> to vector<8xf32>
    %181 = vector.shape_cast %180 : vector<8xf32> to vector<8x1xf32>
    %cst_66 = arith.constant 6.400000e+01 : f32
    %182 = vector.broadcast %cst_66 : f32 to vector<8x1xf32>
    %183 = arith.divf %181, %182 : vector<8x1xf32>
    %184 = vector.broadcast %183 : vector<8x1xf32> to vector<8x64xf32>
    %185 = arith.subf %177, %184 : vector<8x64xf32>
    %186 = arith.mulf %185, %185 : vector<8x64xf32>
    %cst_67 = arith.constant dense<0.000000e+00> : vector<8xf32>
    %187 = vector.multi_reduction <add>, %186, %cst_67 [1] : vector<8x64xf32> to vector<8xf32>
    %188 = vector.shape_cast %187 : vector<8xf32> to vector<8x1xf32>
    %cst_68 = arith.constant 6.400000e+01 : f32
    %189 = vector.broadcast %cst_68 : f32 to vector<8x1xf32>
    %190 = arith.divf %188, %189 : vector<8x1xf32>
    %191 = vector.broadcast %183 : vector<8x1xf32> to vector<8x64xf32>
    %192 = arith.subf %177, %191 : vector<8x64xf32>
    %cst_69 = arith.constant 9.99999974E-6 : f32
    %193 = vector.broadcast %cst_69 : f32 to vector<8x1xf32>
    %194 = arith.addf %190, %193 : vector<8x1xf32>
    %195 = math.rsqrt %194 : vector<8x1xf32>
    %196 = vector.broadcast %195 : vector<8x1xf32> to vector<8x64xf32>
    %197 = arith.mulf %192, %196 : vector<8x64xf32>
    %198 = vector.broadcast %178 : vector<1x64xf32> to vector<8x64xf32>
    %199 = arith.mulf %197, %198 : vector<8x64xf32>
    %200 = vector.broadcast %179 : vector<1x64xf32> to vector<8x64xf32>
    %201 = arith.addf %199, %200 : vector<8x64xf32>
    %202 = arith.addf %1, %201 : vector<8x64xf32>
    %c0_70 = arith.constant 0 : index
    %c0_71 = arith.constant 0 : index
    %203 = vector.load %arg11[%c0_70, %c0_71] : memref<64x64xf32, #tpu.memory_space<vmem>>, vector<64x64xf32>
    %cst_72 = arith.constant dense<0.000000e+00> : vector<8x64xf32>
    %204 = tpu.matmul %202, %203, %cst_72 {dimension_numbers = #tpu.dot_dimension_numbers<[1], [0], [0], [1], [0, 0, 1, 1], [], []>} : vector<8x64xf32>, vector<64x64xf32>, vector<8x64xf32> -> vector<8x64xf32>
    %c0_73 = arith.constant 0 : index
    %c0_74 = arith.constant 0 : index
    %205 = vector.load %arg12[%c0_73, %c0_74] : memref<1x64xf32, #tpu.memory_space<vmem>>, vector<1x64xf32>
    %206 = vector.broadcast %205 : vector<1x64xf32> to vector<8x64xf32>
    %207 = arith.addf %204, %206 : vector<8x64xf32>
    %c0_75 = arith.constant 0 : index
    %c0_76 = arith.constant 0 : index
    %208 = vector.load %arg13[%c0_75, %c0_76] : memref<64x128xf32, #tpu.memory_space<vmem>>, vector<64x128xf32>
    %cst_77 = arith.constant dense<0.000000e+00> : vector<16x128xf32>
    %209 = tpu.matmul %3, %208, %cst_77 {dimension_numbers = #tpu.dot_dimension_numbers<[1], [0], [0], [1], [0, 0, 1, 1], [], []>} : vector<16x64xf32>, vector<64x128xf32>, vector<16x128xf32> -> vector<16x128xf32>
    %c0_78 = arith.constant 0 : index
    %c0_79 = arith.constant 0 : index
    %210 = vector.load %arg14[%c0_78, %c0_79] : memref<1x128xf32, #tpu.memory_space<vmem>>, vector<1x128xf32>
    %211 = vector.broadcast %210 : vector<1x128xf32> to vector<16x128xf32>
    %212 = arith.addf %209, %211 : vector<16x128xf32>
    %cst_80 = arith.constant 0.353553385 : f32
    %213 = vector.broadcast %cst_80 : f32 to vector<8x64xf32>
    %214 = arith.mulf %207, %213 : vector<8x64xf32>
    %215 = vector.extract_strided_slice %212 {offsets = [0, 0], sizes = [16, 64], strides = [1, 1]} : vector<16x128xf32> to vector<16x64xf32>
    %216 = vector.extract_strided_slice %212 {offsets = [0, 64], sizes = [16, 64], strides = [1, 1]} : vector<16x128xf32> to vector<16x64xf32>
    %c0_81 = arith.constant 0 : index
    %c0_82 = arith.constant 0 : index
    %c0_83 = arith.constant 0 : index
    %217 = vector.load %arg4[%c0_81, %c0_82, %c0_83] : memref<1x8x16xf32, #tpu.memory_space<vmem>>, vector<1x8x16xf32>
    %218 = vector.shape_cast %217 : vector<1x8x16xf32> to vector<8x16xf32>
    %cst_84 = arith.constant 0.000000e+00 : f32
    %219 = vector.broadcast %cst_84 : f32 to vector<8x16xf32>
    %220 = arith.cmpf oeq, %218, %219 : vector<8x16xf32>
    %cst_85 = arith.constant -6.550000e+04 : f32
    %cst_86 = arith.constant 0.000000e+00 : f32
    %221 = vector.broadcast %cst_85 : f32 to vector<8x16xf32>
    %222 = vector.broadcast %cst_86 : f32 to vector<8x16xf32>
    %223 = arith.select %220, %221, %222 : vector<8x16xi1>, vector<8x16xf32>
    %c0_87 = arith.constant 0 : index
    %c0_88 = arith.constant 0 : index
    %224 = vector.load %arg15[%c0_87, %c0_88] : memref<64x64xf32, #tpu.memory_space<vmem>>, vector<64x64xf32>
    %cst_89 = arith.constant 0.000000e+00 : f32
    %225 = vector.broadcast %cst_89 : f32 to vector<8x64xf32>
    %226 = vector.extract_strided_slice %214 {offsets = [0, 0], sizes = [8, 8], strides = [1, 1]} : vector<8x64xf32> to vector<8x8xf32>
    %227 = vector.extract_strided_slice %215 {offsets = [0, 0], sizes = [16, 8], strides = [1, 1]} : vector<16x64xf32> to vector<16x8xf32>
    %cst_90 = arith.constant dense<0.000000e+00> : vector<8x16xf32>
    %228 = tpu.matmul %226, %227, %cst_90 {dimension_numbers = #tpu.dot_dimension_numbers<[1], [1], [0], [0], [0, 0, 1, 0], [], []>} : vector<8x8xf32>, vector<16x8xf32>, vector<8x16xf32> -> vector<8x16xf32>
    %229 = arith.addf %228, %223 : vector<8x16xf32>
    %cst_91 = arith.constant dense<0xFF800000> : vector<8xf32>
    %230 = vector.multi_reduction <maximumf>, %229, %cst_91 [1] : vector<8x16xf32> to vector<8xf32>
    %231 = vector.shape_cast %230 : vector<8xf32> to vector<8x1xf32>
    %232 = vector.broadcast %231 : vector<8x1xf32> to vector<8x16xf32>
    %233 = arith.subf %229, %232 : vector<8x16xf32>
    %234 = math.exp %233 : vector<8x16xf32>
    %cst_92 = arith.constant dense<0.000000e+00> : vector<8xf32>
    %235 = vector.multi_reduction <add>, %234, %cst_92 [1] : vector<8x16xf32> to vector<8xf32>
    %236 = vector.shape_cast %235 : vector<8xf32> to vector<8x1xf32>
    %237 = vector.broadcast %236 : vector<8x1xf32> to vector<8x16xf32>
    %238 = arith.divf %234, %237 : vector<8x16xf32>
    %c0_93 = arith.constant 0 : index
    %c0_94 = arith.constant 0 : index
    %c0_95 = arith.constant 0 : index
    %239 = vector.load %arg26[%c0_93, %c0_94, %c0_95] : memref<1x8x128xf32, #tpu.memory_space<vmem>>, vector<1x8x16xf32>
    %240 = vector.shape_cast %239 : vector<1x8x16xf32> to vector<8x16xf32>
    %241 = vector.shape_cast %238 : vector<8x16xf32> to vector<1x8x16xf32>
    tpu.vector_store %arg26[%c0_93, %c0_94, %c0_95], %241 {strides = array<i32>} : memref<1x8x128xf32, #tpu.memory_space<vmem>>, vector<1x8x16xf32>,
    %242 = vector.extract_strided_slice %216 {offsets = [0, 0], sizes = [16, 8], strides = [1, 1]} : vector<16x64xf32> to vector<16x8xf32>
    %cst_96 = arith.constant dense<0.000000e+00> : vector<8x8xf32>
    %243 = tpu.matmul %238, %242, %cst_96 {dimension_numbers = #tpu.dot_dimension_numbers<[1], [0], [0], [1], [0, 0, 1, 1], [], []>} : vector<8x16xf32>, vector<16x8xf32>, vector<8x8xf32> -> vector<8x8xf32>
    %244 = vector.extract_strided_slice %224 {offsets = [0, 0], sizes = [8, 64], strides = [1, 1]} : vector<64x64xf32> to vector<8x64xf32>
    %cst_97 = arith.constant dense<0.000000e+00> : vector<8x64xf32>
    %245 = tpu.matmul %243, %244, %cst_97 {dimension_numbers = #tpu.dot_dimension_numbers<[1], [0], [0], [1], [0, 0, 1, 1], [], []>} : vector<8x8xf32>, vector<8x64xf32>, vector<8x64xf32> -> vector<8x64xf32>
    %246 = arith.addf %225, %245 : vector<8x64xf32>
    %247 = vector.extract_strided_slice %214 {offsets = [0, 8], sizes = [8, 8], strides = [1, 1]} : vector<8x64xf32> to vector<8x8xf32>
    %248 = vector.extract_strided_slice %215 {offsets = [0, 8], sizes = [16, 8], strides = [1, 1]} : vector<16x64xf32> to vector<16x8xf32>
    %cst_98 = arith.constant dense<0.000000e+00> : vector<8x16xf32>
    %249 = tpu.matmul %247, %248, %cst_98 {dimension_numbers = #tpu.dot_dimension_numbers<[1], [1], [0], [0], [0, 0, 1, 0], [], []>} : vector<8x8xf32>, vector<16x8xf32>, vector<8x16xf32> -> vector<8x16xf32>
    %250 = arith.addf %249, %223 : vector<8x16xf32>
    %cst_99 = arith.constant dense<0xFF800000> : vector<8xf32>
    %251 = vector.multi_reduction <maximumf>, %250, %cst_99 [1] : vector<8x16xf32> to vector<8xf32>
    %252 = vector.shape_cast %251 : vector<8xf32> to vector<8x1xf32>
    %253 = vector.broadcast %252 : vector<8x1xf32> to vector<8x16xf32>
    %254 = arith.subf %250, %253 : vector<8x16xf32>
    %255 = math.exp %254 : vector<8x16xf32>
    %cst_100 = arith.constant dense<0.000000e+00> : vector<8xf32>
    %256 = vector.multi_reduction <add>, %255, %cst_100 [1] : vector<8x16xf32> to vector<8xf32>
    %257 = vector.shape_cast %256 : vector<8xf32> to vector<8x1xf32>
    %258 = vector.broadcast %257 : vector<8x1xf32> to vector<8x16xf32>
    %259 = arith.divf %255, %258 : vector<8x16xf32>
    %c0_101 = arith.constant 0 : index
    %c0_102 = arith.constant 0 : index
    %c16 = arith.constant 16 : index
    %260 = vector.load %arg26[%c0_101, %c0_102, %c16] : memref<1x8x128xf32, #tpu.memory_space<vmem>>, vector<1x8x16xf32>
    %261 = vector.shape_cast %260 : vector<1x8x16xf32> to vector<8x16xf32>
    %262 = vector.shape_cast %259 : vector<8x16xf32> to vector<1x8x16xf32>
    tpu.vector_store %arg26[%c0_101, %c0_102, %c16], %262 {strides = array<i32>} : memref<1x8x128xf32, #tpu.memory_space<vmem>>, vector<1x8x16xf32>,
    %263 = vector.extract_strided_slice %216 {offsets = [0, 8], sizes = [16, 8], strides = [1, 1]} : vector<16x64xf32> to vector<16x8xf32>
    %cst_103 = arith.constant dense<0.000000e+00> : vector<8x8xf32>
    %264 = tpu.matmul %259, %263, %cst_103 {dimension_numbers = #tpu.dot_dimension_numbers<[1], [0], [0], [1], [0, 0, 1, 1], [], []>} : vector<8x16xf32>, vector<16x8xf32>, vector<8x8xf32> -> vector<8x8xf32>
    %265 = vector.extract_strided_slice %224 {offsets = [8, 0], sizes = [8, 64], strides = [1, 1]} : vector<64x64xf32> to vector<8x64xf32>
    %cst_104 = arith.constant dense<0.000000e+00> : vector<8x64xf32>
    %266 = tpu.matmul %264, %265, %cst_104 {dimension_numbers = #tpu.dot_dimension_numbers<[1], [0], [0], [1], [0, 0, 1, 1], [], []>} : vector<8x8xf32>, vector<8x64xf32>, vector<8x64xf32> -> vector<8x64xf32>
    %267 = arith.addf %246, %266 : vector<8x64xf32>
    %268 = vector.extract_strided_slice %214 {offsets = [0, 16], sizes = [8, 8], strides = [1, 1]} : vector<8x64xf32> to vector<8x8xf32>
    %269 = vector.extract_strided_slice %215 {offsets = [0, 16], sizes = [16, 8], strides = [1, 1]} : vector<16x64xf32> to vector<16x8xf32>
    %cst_105 = arith.constant dense<0.000000e+00> : vector<8x16xf32>
    %270 = tpu.matmul %268, %269, %cst_105 {dimension_numbers = #tpu.dot_dimension_numbers<[1], [1], [0], [0], [0, 0, 1, 0], [], []>} : vector<8x8xf32>, vector<16x8xf32>, vector<8x16xf32> -> vector<8x16xf32>
    %271 = arith.addf %270, %223 : vector<8x16xf32>
    %cst_106 = arith.constant dense<0xFF800000> : vector<8xf32>
    %272 = vector.multi_reduction <maximumf>, %271, %cst_106 [1] : vector<8x16xf32> to vector<8xf32>
    %273 = vector.shape_cast %272 : vector<8xf32> to vector<8x1xf32>
    %274 = vector.broadcast %273 : vector<8x1xf32> to vector<8x16xf32>
    %275 = arith.subf %271, %274 : vector<8x16xf32>
    %276 = math.exp %275 : vector<8x16xf32>
    %cst_107 = arith.constant dense<0.000000e+00> : vector<8xf32>
    %277 = vector.multi_reduction <add>, %276, %cst_107 [1] : vector<8x16xf32> to vector<8xf32>
    %278 = vector.shape_cast %277 : vector<8xf32> to vector<8x1xf32>
    %279 = vector.broadcast %278 : vector<8x1xf32> to vector<8x16xf32>
    %280 = arith.divf %276, %279 : vector<8x16xf32>
    %c0_108 = arith.constant 0 : index
    %c0_109 = arith.constant 0 : index
    %c32 = arith.constant 32 : index
    %281 = vector.load %arg26[%c0_108, %c0_109, %c32] : memref<1x8x128xf32, #tpu.memory_space<vmem>>, vector<1x8x16xf32>
    %282 = vector.shape_cast %281 : vector<1x8x16xf32> to vector<8x16xf32>
    %283 = vector.shape_cast %280 : vector<8x16xf32> to vector<1x8x16xf32>
    tpu.vector_store %arg26[%c0_108, %c0_109, %c32], %283 {strides = array<i32>} : memref<1x8x128xf32, #tpu.memory_space<vmem>>, vector<1x8x16xf32>,
    %284 = vector.extract_strided_slice %216 {offsets = [0, 16], sizes = [16, 8], strides = [1, 1]} : vector<16x64xf32> to vector<16x8xf32>
    %cst_110 = arith.constant dense<0.000000e+00> : vector<8x8xf32>
    %285 = tpu.matmul %280, %284, %cst_110 {dimension_numbers = #tpu.dot_dimension_numbers<[1], [0], [0], [1], [0, 0, 1, 1], [], []>} : vector<8x16xf32>, vector<16x8xf32>, vector<8x8xf32> -> vector<8x8xf32>
    %286 = vector.extract_strided_slice %224 {offsets = [16, 0], sizes = [8, 64], strides = [1, 1]} : vector<64x64xf32> to vector<8x64xf32>
    %cst_111 = arith.constant dense<0.000000e+00> : vector<8x64xf32>
    %287 = tpu.matmul %285, %286, %cst_111 {dimension_numbers = #tpu.dot_dimension_numbers<[1], [0], [0], [1], [0, 0, 1, 1], [], []>} : vector<8x8xf32>, vector<8x64xf32>, vector<8x64xf32> -> vector<8x64xf32>
    %288 = arith.addf %267, %287 : vector<8x64xf32>
    %289 = vector.extract_strided_slice %214 {offsets = [0, 24], sizes = [8, 8], strides = [1, 1]} : vector<8x64xf32> to vector<8x8xf32>
    %290 = vector.extract_strided_slice %215 {offsets = [0, 24], sizes = [16, 8], strides = [1, 1]} : vector<16x64xf32> to vector<16x8xf32>
    %cst_112 = arith.constant dense<0.000000e+00> : vector<8x16xf32>
    %291 = tpu.matmul %289, %290, %cst_112 {dimension_numbers = #tpu.dot_dimension_numbers<[1], [1], [0], [0], [0, 0, 1, 0], [], []>} : vector<8x8xf32>, vector<16x8xf32>, vector<8x16xf32> -> vector<8x16xf32>
    %292 = arith.addf %291, %223 : vector<8x16xf32>
    %cst_113 = arith.constant dense<0xFF800000> : vector<8xf32>
    %293 = vector.multi_reduction <maximumf>, %292, %cst_113 [1] : vector<8x16xf32> to vector<8xf32>
    %294 = vector.shape_cast %293 : vector<8xf32> to vector<8x1xf32>
    %295 = vector.broadcast %294 : vector<8x1xf32> to vector<8x16xf32>
    %296 = arith.subf %292, %295 : vector<8x16xf32>
    %297 = math.exp %296 : vector<8x16xf32>
    %cst_114 = arith.constant dense<0.000000e+00> : vector<8xf32>
    %298 = vector.multi_reduction <add>, %297, %cst_114 [1] : vector<8x16xf32> to vector<8xf32>
    %299 = vector.shape_cast %298 : vector<8xf32> to vector<8x1xf32>
    %300 = vector.broadcast %299 : vector<8x1xf32> to vector<8x16xf32>
    %301 = arith.divf %297, %300 : vector<8x16xf32>
    %c0_115 = arith.constant 0 : index
    %c0_116 = arith.constant 0 : index
    %c48 = arith.constant 48 : index
    %302 = vector.load %arg26[%c0_115, %c0_116, %c48] : memref<1x8x128xf32, #tpu.memory_space<vmem>>, vector<1x8x16xf32>
    %303 = vector.shape_cast %302 : vector<1x8x16xf32> to vector<8x16xf32>
    %304 = vector.shape_cast %301 : vector<8x16xf32> to vector<1x8x16xf32>
    tpu.vector_store %arg26[%c0_115, %c0_116, %c48], %304 {strides = array<i32>} : memref<1x8x128xf32, #tpu.memory_space<vmem>>, vector<1x8x16xf32>,
    %305 = vector.extract_strided_slice %216 {offsets = [0, 24], sizes = [16, 8], strides = [1, 1]} : vector<16x64xf32> to vector<16x8xf32>
    %cst_117 = arith.constant dense<0.000000e+00> : vector<8x8xf32>
    %306 = tpu.matmul %301, %305, %cst_117 {dimension_numbers = #tpu.dot_dimension_numbers<[1], [0], [0], [1], [0, 0, 1, 1], [], []>} : vector<8x16xf32>, vector<16x8xf32>, vector<8x8xf32> -> vector<8x8xf32>
    %307 = vector.extract_strided_slice %224 {offsets = [24, 0], sizes = [8, 64], strides = [1, 1]} : vector<64x64xf32> to vector<8x64xf32>
    %cst_118 = arith.constant dense<0.000000e+00> : vector<8x64xf32>
    %308 = tpu.matmul %306, %307, %cst_118 {dimension_numbers = #tpu.dot_dimension_numbers<[1], [0], [0], [1], [0, 0, 1, 1], [], []>} : vector<8x8xf32>, vector<8x64xf32>, vector<8x64xf32> -> vector<8x64xf32>
    %309 = arith.addf %288, %308 : vector<8x64xf32>
    %310 = vector.extract_strided_slice %214 {offsets = [0, 32], sizes = [8, 8], strides = [1, 1]} : vector<8x64xf32> to vector<8x8xf32>
    %311 = vector.extract_strided_slice %215 {offsets = [0, 32], sizes = [16, 8], strides = [1, 1]} : vector<16x64xf32> to vector<16x8xf32>
    %cst_119 = arith.constant dense<0.000000e+00> : vector<8x16xf32>
    %312 = tpu.matmul %310, %311, %cst_119 {dimension_numbers = #tpu.dot_dimension_numbers<[1], [1], [0], [0], [0, 0, 1, 0], [], []>} : vector<8x8xf32>, vector<16x8xf32>, vector<8x16xf32> -> vector<8x16xf32>
    %313 = arith.addf %312, %223 : vector<8x16xf32>
    %cst_120 = arith.constant dense<0xFF800000> : vector<8xf32>
    %314 = vector.multi_reduction <maximumf>, %313, %cst_120 [1] : vector<8x16xf32> to vector<8xf32>
    %315 = vector.shape_cast %314 : vector<8xf32> to vector<8x1xf32>
    %316 = vector.broadcast %315 : vector<8x1xf32> to vector<8x16xf32>
    %317 = arith.subf %313, %316 : vector<8x16xf32>
    %318 = math.exp %317 : vector<8x16xf32>
    %cst_121 = arith.constant dense<0.000000e+00> : vector<8xf32>
    %319 = vector.multi_reduction <add>, %318, %cst_121 [1] : vector<8x16xf32> to vector<8xf32>
    %320 = vector.shape_cast %319 : vector<8xf32> to vector<8x1xf32>
    %321 = vector.broadcast %320 : vector<8x1xf32> to vector<8x16xf32>
    %322 = arith.divf %318, %321 : vector<8x16xf32>
    %c0_122 = arith.constant 0 : index
    %c0_123 = arith.constant 0 : index
    %c64 = arith.constant 64 : index
    %323 = vector.load %arg26[%c0_122, %c0_123, %c64] : memref<1x8x128xf32, #tpu.memory_space<vmem>>, vector<1x8x16xf32>
    %324 = vector.shape_cast %323 : vector<1x8x16xf32> to vector<8x16xf32>
    %325 = vector.shape_cast %322 : vector<8x16xf32> to vector<1x8x16xf32>
    tpu.vector_store %arg26[%c0_122, %c0_123, %c64], %325 {strides = array<i32>} : memref<1x8x128xf32, #tpu.memory_space<vmem>>, vector<1x8x16xf32>,
    %326 = vector.extract_strided_slice %216 {offsets = [0, 32], sizes = [16, 8], strides = [1, 1]} : vector<16x64xf32> to vector<16x8xf32>
    %cst_124 = arith.constant dense<0.000000e+00> : vector<8x8xf32>
    %327 = tpu.matmul %322, %326, %cst_124 {dimension_numbers = #tpu.dot_dimension_numbers<[1], [0], [0], [1], [0, 0, 1, 1], [], []>} : vector<8x16xf32>, vector<16x8xf32>, vector<8x8xf32> -> vector<8x8xf32>
    %328 = vector.extract_strided_slice %224 {offsets = [32, 0], sizes = [8, 64], strides = [1, 1]} : vector<64x64xf32> to vector<8x64xf32>
    %cst_125 = arith.constant dense<0.000000e+00> : vector<8x64xf32>
    %329 = tpu.matmul %327, %328, %cst_125 {dimension_numbers = #tpu.dot_dimension_numbers<[1], [0], [0], [1], [0, 0, 1, 1], [], []>} : vector<8x8xf32>, vector<8x64xf32>, vector<8x64xf32> -> vector<8x64xf32>
    %330 = arith.addf %309, %329 : vector<8x64xf32>
    %331 = vector.extract_strided_slice %214 {offsets = [0, 40], sizes = [8, 8], strides = [1, 1]} : vector<8x64xf32> to vector<8x8xf32>
    %332 = vector.extract_strided_slice %215 {offsets = [0, 40], sizes = [16, 8], strides = [1, 1]} : vector<16x64xf32> to vector<16x8xf32>
    %cst_126 = arith.constant dense<0.000000e+00> : vector<8x16xf32>
    %333 = tpu.matmul %331, %332, %cst_126 {dimension_numbers = #tpu.dot_dimension_numbers<[1], [1], [0], [0], [0, 0, 1, 0], [], []>} : vector<8x8xf32>, vector<16x8xf32>, vector<8x16xf32> -> vector<8x16xf32>
    %334 = arith.addf %333, %223 : vector<8x16xf32>
    %cst_127 = arith.constant dense<0xFF800000> : vector<8xf32>
    %335 = vector.multi_reduction <maximumf>, %334, %cst_127 [1] : vector<8x16xf32> to vector<8xf32>
    %336 = vector.shape_cast %335 : vector<8xf32> to vector<8x1xf32>
    %337 = vector.broadcast %336 : vector<8x1xf32> to vector<8x16xf32>
    %338 = arith.subf %334, %337 : vector<8x16xf32>
    %339 = math.exp %338 : vector<8x16xf32>
    %cst_128 = arith.constant dense<0.000000e+00> : vector<8xf32>
    %340 = vector.multi_reduction <add>, %339, %cst_128 [1] : vector<8x16xf32> to vector<8xf32>
    %341 = vector.shape_cast %340 : vector<8xf32> to vector<8x1xf32>
    %342 = vector.broadcast %341 : vector<8x1xf32> to vector<8x16xf32>
    %343 = arith.divf %339, %342 : vector<8x16xf32>
    %c0_129 = arith.constant 0 : index
    %c0_130 = arith.constant 0 : index
    %c80 = arith.constant 80 : index
    %344 = vector.load %arg26[%c0_129, %c0_130, %c80] : memref<1x8x128xf32, #tpu.memory_space<vmem>>, vector<1x8x16xf32>
    %345 = vector.shape_cast %344 : vector<1x8x16xf32> to vector<8x16xf32>
    %346 = vector.shape_cast %343 : vector<8x16xf32> to vector<1x8x16xf32>
    tpu.vector_store %arg26[%c0_129, %c0_130, %c80], %346 {strides = array<i32>} : memref<1x8x128xf32, #tpu.memory_space<vmem>>, vector<1x8x16xf32>,
    %347 = vector.extract_strided_slice %216 {offsets = [0, 40], sizes = [16, 8], strides = [1, 1]} : vector<16x64xf32> to vector<16x8xf32>
    %cst_131 = arith.constant dense<0.000000e+00> : vector<8x8xf32>
    %348 = tpu.matmul %343, %347, %cst_131 {dimension_numbers = #tpu.dot_dimension_numbers<[1], [0], [0], [1], [0, 0, 1, 1], [], []>} : vector<8x16xf32>, vector<16x8xf32>, vector<8x8xf32> -> vector<8x8xf32>
    %349 = vector.extract_strided_slice %224 {offsets = [40, 0], sizes = [8, 64], strides = [1, 1]} : vector<64x64xf32> to vector<8x64xf32>
    %cst_132 = arith.constant dense<0.000000e+00> : vector<8x64xf32>
    %350 = tpu.matmul %348, %349, %cst_132 {dimension_numbers = #tpu.dot_dimension_numbers<[1], [0], [0], [1], [0, 0, 1, 1], [], []>} : vector<8x8xf32>, vector<8x64xf32>, vector<8x64xf32> -> vector<8x64xf32>
    %351 = arith.addf %330, %350 : vector<8x64xf32>
    %352 = vector.extract_strided_slice %214 {offsets = [0, 48], sizes = [8, 8], strides = [1, 1]} : vector<8x64xf32> to vector<8x8xf32>
    %353 = vector.extract_strided_slice %215 {offsets = [0, 48], sizes = [16, 8], strides = [1, 1]} : vector<16x64xf32> to vector<16x8xf32>
    %cst_133 = arith.constant dense<0.000000e+00> : vector<8x16xf32>
    %354 = tpu.matmul %352, %353, %cst_133 {dimension_numbers = #tpu.dot_dimension_numbers<[1], [1], [0], [0], [0, 0, 1, 0], [], []>} : vector<8x8xf32>, vector<16x8xf32>, vector<8x16xf32> -> vector<8x16xf32>
    %355 = arith.addf %354, %223 : vector<8x16xf32>
    %cst_134 = arith.constant dense<0xFF800000> : vector<8xf32>
    %356 = vector.multi_reduction <maximumf>, %355, %cst_134 [1] : vector<8x16xf32> to vector<8xf32>
    %357 = vector.shape_cast %356 : vector<8xf32> to vector<8x1xf32>
    %358 = vector.broadcast %357 : vector<8x1xf32> to vector<8x16xf32>
    %359 = arith.subf %355, %358 : vector<8x16xf32>
    %360 = math.exp %359 : vector<8x16xf32>
    %cst_135 = arith.constant dense<0.000000e+00> : vector<8xf32>
    %361 = vector.multi_reduction <add>, %360, %cst_135 [1] : vector<8x16xf32> to vector<8xf32>
    %362 = vector.shape_cast %361 : vector<8xf32> to vector<8x1xf32>
    %363 = vector.broadcast %362 : vector<8x1xf32> to vector<8x16xf32>
    %364 = arith.divf %360, %363 : vector<8x16xf32>
    %c0_136 = arith.constant 0 : index
    %c0_137 = arith.constant 0 : index
    %c96 = arith.constant 96 : index
    %365 = vector.load %arg26[%c0_136, %c0_137, %c96] : memref<1x8x128xf32, #tpu.memory_space<vmem>>, vector<1x8x16xf32>
    %366 = vector.shape_cast %365 : vector<1x8x16xf32> to vector<8x16xf32>
    %367 = vector.shape_cast %364 : vector<8x16xf32> to vector<1x8x16xf32>
    tpu.vector_store %arg26[%c0_136, %c0_137, %c96], %367 {strides = array<i32>} : memref<1x8x128xf32, #tpu.memory_space<vmem>>, vector<1x8x16xf32>,
    %368 = vector.extract_strided_slice %216 {offsets = [0, 48], sizes = [16, 8], strides = [1, 1]} : vector<16x64xf32> to vector<16x8xf32>
    %cst_138 = arith.constant dense<0.000000e+00> : vector<8x8xf32>
    %369 = tpu.matmul %364, %368, %cst_138 {dimension_numbers = #tpu.dot_dimension_numbers<[1], [0], [0], [1], [0, 0, 1, 1], [], []>} : vector<8x16xf32>, vector<16x8xf32>, vector<8x8xf32> -> vector<8x8xf32>
    %370 = vector.extract_strided_slice %224 {offsets = [48, 0], sizes = [8, 64], strides = [1, 1]} : vector<64x64xf32> to vector<8x64xf32>
    %cst_139 = arith.constant dense<0.000000e+00> : vector<8x64xf32>
    %371 = tpu.matmul %369, %370, %cst_139 {dimension_numbers = #tpu.dot_dimension_numbers<[1], [0], [0], [1], [0, 0, 1, 1], [], []>} : vector<8x8xf32>, vector<8x64xf32>, vector<8x64xf32> -> vector<8x64xf32>
    %372 = arith.addf %351, %371 : vector<8x64xf32>
    %373 = vector.extract_strided_slice %214 {offsets = [0, 56], sizes = [8, 8], strides = [1, 1]} : vector<8x64xf32> to vector<8x8xf32>
    %374 = vector.extract_strided_slice %215 {offsets = [0, 56], sizes = [16, 8], strides = [1, 1]} : vector<16x64xf32> to vector<16x8xf32>
    %cst_140 = arith.constant dense<0.000000e+00> : vector<8x16xf32>
    %375 = tpu.matmul %373, %374, %cst_140 {dimension_numbers = #tpu.dot_dimension_numbers<[1], [1], [0], [0], [0, 0, 1, 0], [], []>} : vector<8x8xf32>, vector<16x8xf32>, vector<8x16xf32> -> vector<8x16xf32>
    %376 = arith.addf %375, %223 : vector<8x16xf32>
    %cst_141 = arith.constant dense<0xFF800000> : vector<8xf32>
    %377 = vector.multi_reduction <maximumf>, %376, %cst_141 [1] : vector<8x16xf32> to vector<8xf32>
    %378 = vector.shape_cast %377 : vector<8xf32> to vector<8x1xf32>
    %379 = vector.broadcast %378 : vector<8x1xf32> to vector<8x16xf32>
    %380 = arith.subf %376, %379 : vector<8x16xf32>
    %381 = math.exp %380 : vector<8x16xf32>
    %cst_142 = arith.constant dense<0.000000e+00> : vector<8xf32>
    %382 = vector.multi_reduction <add>, %381, %cst_142 [1] : vector<8x16xf32> to vector<8xf32>
    %383 = vector.shape_cast %382 : vector<8xf32> to vector<8x1xf32>
    %384 = vector.broadcast %383 : vector<8x1xf32> to vector<8x16xf32>
    %385 = arith.divf %381, %384 : vector<8x16xf32>
    %c0_143 = arith.constant 0 : index
    %c0_144 = arith.constant 0 : index
    %c112 = arith.constant 112 : index
    %386 = vector.load %arg26[%c0_143, %c0_144, %c112] : memref<1x8x128xf32, #tpu.memory_space<vmem>>, vector<1x8x16xf32>
    %387 = vector.shape_cast %386 : vector<1x8x16xf32> to vector<8x16xf32>
    %388 = vector.shape_cast %385 : vector<8x16xf32> to vector<1x8x16xf32>
    tpu.vector_store %arg26[%c0_143, %c0_144, %c112], %388 {strides = array<i32>} : memref<1x8x128xf32, #tpu.memory_space<vmem>>, vector<1x8x16xf32>,
    %389 = vector.extract_strided_slice %216 {offsets = [0, 56], sizes = [16, 8], strides = [1, 1]} : vector<16x64xf32> to vector<16x8xf32>
    %cst_145 = arith.constant dense<0.000000e+00> : vector<8x8xf32>
    %390 = tpu.matmul %385, %389, %cst_145 {dimension_numbers = #tpu.dot_dimension_numbers<[1], [0], [0], [1], [0, 0, 1, 1], [], []>} : vector<8x16xf32>, vector<16x8xf32>, vector<8x8xf32> -> vector<8x8xf32>
    %391 = vector.extract_strided_slice %224 {offsets = [56, 0], sizes = [8, 64], strides = [1, 1]} : vector<64x64xf32> to vector<8x64xf32>
    %cst_146 = arith.constant dense<0.000000e+00> : vector<8x64xf32>
    %392 = tpu.matmul %390, %391, %cst_146 {dimension_numbers = #tpu.dot_dimension_numbers<[1], [0], [0], [1], [0, 0, 1, 1], [], []>} : vector<8x8xf32>, vector<8x64xf32>, vector<8x64xf32> -> vector<8x64xf32>
    %393 = arith.addf %372, %392 : vector<8x64xf32>
    %c0_147 = arith.constant 0 : index
    %c0_148 = arith.constant 0 : index
    %394 = vector.load %arg16[%c0_147, %c0_148] : memref<1x64xf32, #tpu.memory_space<vmem>>, vector<1x64xf32>
    %395 = vector.broadcast %394 : vector<1x64xf32> to vector<8x64xf32>
    %396 = arith.addf %393, %395 : vector<8x64xf32>
    %c0_149 = arith.constant 0 : index
    %c0_150 = arith.constant 0 : index
    %397 = vector.load %arg17[%c0_149, %c0_150] : memref<1x64xf32, #tpu.memory_space<vmem>>, vector<1x64xf32>
    %c0_151 = arith.constant 0 : index
    %c0_152 = arith.constant 0 : index
    %398 = vector.load %arg18[%c0_151, %c0_152] : memref<1x64xf32, #tpu.memory_space<vmem>>, vector<1x64xf32>
    %cst_153 = arith.constant dense<0.000000e+00> : vector<8xf32>
    %399 = vector.multi_reduction <add>, %396, %cst_153 [1] : vector<8x64xf32> to vector<8xf32>
    %400 = vector.shape_cast %399 : vector<8xf32> to vector<8x1xf32>
    %cst_154 = arith.constant 6.400000e+01 : f32
    %401 = vector.broadcast %cst_154 : f32 to vector<8x1xf32>
    %402 = arith.divf %400, %401 : vector<8x1xf32>
    %403 = vector.broadcast %402 : vector<8x1xf32> to vector<8x64xf32>
    %404 = arith.subf %396, %403 : vector<8x64xf32>
    %405 = arith.mulf %404, %404 : vector<8x64xf32>
    %cst_155 = arith.constant dense<0.000000e+00> : vector<8xf32>
    %406 = vector.multi_reduction <add>, %405, %cst_155 [1] : vector<8x64xf32> to vector<8xf32>
    %407 = vector.shape_cast %406 : vector<8xf32> to vector<8x1xf32>
    %cst_156 = arith.constant 6.400000e+01 : f32
    %408 = vector.broadcast %cst_156 : f32 to vector<8x1xf32>
    %409 = arith.divf %407, %408 : vector<8x1xf32>
    %410 = vector.broadcast %402 : vector<8x1xf32> to vector<8x64xf32>
    %411 = arith.subf %396, %410 : vector<8x64xf32>
    %cst_157 = arith.constant 9.99999974E-6 : f32
    %412 = vector.broadcast %cst_157 : f32 to vector<8x1xf32>
    %413 = arith.addf %409, %412 : vector<8x1xf32>
    %414 = math.rsqrt %413 : vector<8x1xf32>
    %415 = vector.broadcast %414 : vector<8x1xf32> to vector<8x64xf32>
    %416 = arith.mulf %411, %415 : vector<8x64xf32>
    %417 = vector.broadcast %397 : vector<1x64xf32> to vector<8x64xf32>
    %418 = arith.mulf %416, %417 : vector<8x64xf32>
    %419 = vector.broadcast %398 : vector<1x64xf32> to vector<8x64xf32>
    %420 = arith.addf %418, %419 : vector<8x64xf32>
    %421 = arith.addf %202, %420 : vector<8x64xf32>
    %c0_158 = arith.constant 0 : index
    %c0_159 = arith.constant 0 : index
    %422 = vector.load %arg19[%c0_158, %c0_159] : memref<1x64xf32, #tpu.memory_space<vmem>>, vector<1x64xf32>
    %c0_160 = arith.constant 0 : index
    %c0_161 = arith.constant 0 : index
    %423 = vector.load %arg20[%c0_160, %c0_161] : memref<1x64xf32, #tpu.memory_space<vmem>>, vector<1x64xf32>
    %cst_162 = arith.constant dense<0.000000e+00> : vector<8xf32>
    %424 = vector.multi_reduction <add>, %421, %cst_162 [1] : vector<8x64xf32> to vector<8xf32>
    %425 = vector.shape_cast %424 : vector<8xf32> to vector<8x1xf32>
    %cst_163 = arith.constant 6.400000e+01 : f32
    %426 = vector.broadcast %cst_163 : f32 to vector<8x1xf32>
    %427 = arith.divf %425, %426 : vector<8x1xf32>
    %428 = vector.broadcast %427 : vector<8x1xf32> to vector<8x64xf32>
    %429 = arith.subf %421, %428 : vector<8x64xf32>
    %430 = arith.mulf %429, %429 : vector<8x64xf32>
    %cst_164 = arith.constant dense<0.000000e+00> : vector<8xf32>
    %431 = vector.multi_reduction <add>, %430, %cst_164 [1] : vector<8x64xf32> to vector<8xf32>
    %432 = vector.shape_cast %431 : vector<8xf32> to vector<8x1xf32>
    %cst_165 = arith.constant 6.400000e+01 : f32
    %433 = vector.broadcast %cst_165 : f32 to vector<8x1xf32>
    %434 = arith.divf %432, %433 : vector<8x1xf32>
    %435 = vector.broadcast %427 : vector<8x1xf32> to vector<8x64xf32>
    %436 = arith.subf %421, %435 : vector<8x64xf32>
    %cst_166 = arith.constant 9.99999974E-6 : f32
    %437 = vector.broadcast %cst_166 : f32 to vector<8x1xf32>
    %438 = arith.addf %434, %437 : vector<8x1xf32>
    %439 = math.rsqrt %438 : vector<8x1xf32>
    %440 = vector.broadcast %439 : vector<8x1xf32> to vector<8x64xf32>
    %441 = arith.mulf %436, %440 : vector<8x64xf32>
    %442 = vector.broadcast %422 : vector<1x64xf32> to vector<8x64xf32>
    %443 = arith.mulf %441, %442 : vector<8x64xf32>
    %444 = vector.broadcast %423 : vector<1x64xf32> to vector<8x64xf32>
    %445 = arith.addf %443, %444 : vector<8x64xf32>
    %c0_167 = arith.constant 0 : index
    %c0_168 = arith.constant 0 : index
    %446 = vector.load %arg21[%c0_167, %c0_168] : memref<64x128xf32, #tpu.memory_space<vmem>>, vector<64x128xf32>
    %cst_169 = arith.constant dense<0.000000e+00> : vector<8x128xf32>
    %447 = tpu.matmul %445, %446, %cst_169 {dimension_numbers = #tpu.dot_dimension_numbers<[1], [0], [0], [1], [0, 0, 1, 1], [], []>} : vector<8x64xf32>, vector<64x128xf32>, vector<8x128xf32> -> vector<8x128xf32>
    %c0_170 = arith.constant 0 : index
    %c0_171 = arith.constant 0 : index
    %448 = vector.load %arg22[%c0_170, %c0_171] : memref<1x128xf32, #tpu.memory_space<vmem>>, vector<1x128xf32>
    %449 = vector.broadcast %448 : vector<1x128xf32> to vector<8x128xf32>
    %450 = arith.addf %447, %449 : vector<8x128xf32>
    %cst_172 = arith.constant 0.000000e+00 : f32
    %451 = vector.broadcast %cst_172 : f32 to vector<8x128xf32>
    %452 = arith.maximumf %450, %451 : vector<8x128xf32>
    %c0_173 = arith.constant 0 : index
    %c0_174 = arith.constant 0 : index
    %453 = vector.load %arg23[%c0_173, %c0_174] : memref<128x64xf32, #tpu.memory_space<vmem>>, vector<128x64xf32>
    %cst_175 = arith.constant dense<0.000000e+00> : vector<8x64xf32>
    %454 = tpu.matmul %452, %453, %cst_175 {dimension_numbers = #tpu.dot_dimension_numbers<[1], [0], [0], [1], [0, 0, 1, 1], [], []>} : vector<8x128xf32>, vector<128x64xf32>, vector<8x64xf32> -> vector<8x64xf32>
    %c0_176 = arith.constant 0 : index
    %c0_177 = arith.constant 0 : index
    %455 = vector.load %arg24[%c0_176, %c0_177] : memref<1x64xf32, #tpu.memory_space<vmem>>, vector<1x64xf32>
    %456 = vector.broadcast %455 : vector<1x64xf32> to vector<8x64xf32>
    %457 = arith.addf %454, %456 : vector<8x64xf32>
    %458 = arith.addf %421, %457 : vector<8x64xf32>
    %c0_178 = arith.constant 0 : index
    %c0_179 = arith.constant 0 : index
    %c0_180 = arith.constant 0 : index
    %459 = vector.load %arg25[%c0_178, %c0_179, %c0_180] : memref<1x8x64xf32, #tpu.memory_space<vmem>>, vector<1x8x64xf32>
    %460 = vector.shape_cast %459 : vector<1x8x64xf32> to vector<8x64xf32>
    %461 = vector.shape_cast %458 : vector<8x64xf32> to vector<1x8x64xf32>
    tpu.vector_store %arg25[%c0_178, %c0_179, %c0_180], %461 {strides = array<i32>} : memref<1x8x64xf32, #tpu.memory_space<vmem>>, vector<1x8x64xf32>,
    return
  }
  func.func @transform_0(%arg0: i32) -> (i32, i32, i32) {
    %c0_i32 = arith.constant 0 : i32
    %c0_i32_0 = arith.constant 0 : i32
    %c0_i32_1 = arith.constant 0 : i32
    return %arg0, %c0_i32, %c0_i32_0 : i32, i32, i32
  }
  func.func @transform_1(%arg0: i32) -> (i32, i32, i32) {
    %c0_i32 = arith.constant 0 : i32
    %c0_i32_0 = arith.constant 0 : i32
    %c0_i32_1 = arith.constant 0 : i32
    return %arg0, %c0_i32, %c0_i32_0 : i32, i32, i32
  }
  func.func @transform_2(%arg0: i32) -> (i32, i32, i32) {
    %c0_i32 = arith.constant 0 : i32
    %c0_i32_0 = arith.constant 0 : i32
    %c0_i32_1 = arith.constant 0 : i32
    return %arg0, %c0_i32, %c0_i32_0 : i32, i32, i32
  }
  func.func @transform_3(%arg0: i32) -> (i32, i32, i32) {
    %c0_i32 = arith.constant 0 : i32
    %c0_i32_0 = arith.constant 0 : i32
    %c0_i32_1 = arith.constant 0 : i32
    return %arg0, %c0_i32, %c0_i32_0 : i32, i32, i32
  }
  func.func @transform_4(%arg0: i32) -> (i32, i32) {
    %c0_i32 = arith.constant 0 : i32
    %c0_i32_0 = arith.constant 0 : i32
    %c0_i32_1 = arith.constant 0 : i32
    return %c0_i32, %c0_i32_0 : i32, i32
  }
  func.func @transform_5(%arg0: i32) -> (i32, i32) {
    %c0_i32 = arith.constant 0 : i32
    %c0_i32_0 = arith.constant 0 : i32
    %c0_i32_1 = arith.constant 0 : i32
    return %c0_i32, %c0_i32_0 : i32, i32
  }
  func.func @transform_6(%arg0: i32) -> (i32, i32) {
    %c0_i32 = arith.constant 0 : i32
    %c0_i32_0 = arith.constant 0 : i32
    %c0_i32_1 = arith.constant 0 : i32
    return %c0_i32, %c0_i32_0 : i32, i32
  }
  func.func @transform_7(%arg0: i32) -> (i32, i32) {
    %c0_i32 = arith.constant 0 : i32
    %c0_i32_0 = arith.constant 0 : i32
    %c0_i32_1 = arith.constant 0 : i32
    return %c0_i32, %c0_i32_0 : i32, i32
  }
  func.func @transform_8(%arg0: i32) -> (i32, i32) {
    %c0_i32 = arith.constant 0 : i32
    %c0_i32_0 = arith.constant 0 : i32
    %c0_i32_1 = arith.constant 0 : i32
    return %c0_i32, %c0_i32_0 : i32, i32
  }
  func.func @transform_9(%arg0: i32) -> (i32, i32) {
    %c0_i32 = arith.constant 0 : i32
    %c0_i32_0 = arith.constant 0 : i32
    %c0_i32_1 = arith.constant 0 : i32
    return %c0_i32, %c0_i32_0 : i32, i32
  }
  func.func @transform_10(%arg0: i32) -> (i32, i32) {
    %c0_i32 = arith.constant 0 : i32
    %c0_i32_0 = arith.constant 0 : i32
    %c0_i32_1 = arith.constant 0 : i32
    return %c0_i32, %c0_i32_0 : i32, i32
  }
  func.func @transform_11(%arg0: i32) -> (i32, i32) {
    %c0_i32 = arith.constant 0 : i32
    %c0_i32_0 = arith.constant 0 : i32
    %c0_i32_1 = arith.constant 0 : i32
    return %c0_i32, %c0_i32_0 : i32, i32
  }
  func.func @transform_12(%arg0: i32) -> (i32, i32) {
    %c0_i32 = arith.constant 0 : i32
    %c0_i32_0 = arith.constant 0 : i32
    %c0_i32_1 = arith.constant 0 : i32
    return %c0_i32, %c0_i32_0 : i32, i32
  }
  func.func @transform_13(%arg0: i32) -> (i32, i32) {
    %c0_i32 = arith.constant 0 : i32
    %c0_i32_0 = arith.constant 0 : i32
    %c0_i32_1 = arith.constant 0 : i32
    return %c0_i32, %c0_i32_0 : i32, i32
  }
  func.func @transform_14(%arg0: i32) -> (i32, i32) {
    %c0_i32 = arith.constant 0 : i32
    %c0_i32_0 = arith.constant 0 : i32
    %c0_i32_1 = arith.constant 0 : i32
    return %c0_i32, %c0_i32_0 : i32, i32
  }
  func.func @transform_15(%arg0: i32) -> (i32, i32) {
    %c0_i32 = arith.constant 0 : i32
    %c0_i32_0 = arith.constant 0 : i32
    %c0_i32_1 = arith.constant 0 : i32
    return %c0_i32, %c0_i32_0 : i32, i32
  }
  func.func @transform_16(%arg0: i32) -> (i32, i32) {
    %c0_i32 = arith.constant 0 : i32
    %c0_i32_0 = arith.constant 0 : i32
    %c0_i32_1 = arith.constant 0 : i32
    return %c0_i32, %c0_i32_0 : i32, i32
  }
  func.func @transform_17(%arg0: i32) -> (i32, i32) {
    %c0_i32 = arith.constant 0 : i32
    %c0_i32_0 = arith.constant 0 : i32
    %c0_i32_1 = arith.constant 0 : i32
    return %c0_i32, %c0_i32_0 : i32, i32
  }
  func.func @transform_18(%arg0: i32) -> (i32, i32) {
    %c0_i32 = arith.constant 0 : i32
    %c0_i32_0 = arith.constant 0 : i32
    %c0_i32_1 = arith.constant 0 : i32
    return %c0_i32, %c0_i32_0 : i32, i32
  }
  func.func @transform_19(%arg0: i32) -> (i32, i32) {
    %c0_i32 = arith.constant 0 : i32
    %c0_i32_0 = arith.constant 0 : i32
    %c0_i32_1 = arith.constant 0 : i32
    return %c0_i32, %c0_i32_0 : i32, i32
  }
  func.func @transform_20(%arg0: i32) -> (i32, i32) {
    %c0_i32 = arith.constant 0 : i32
    %c0_i32_0 = arith.constant 0 : i32
    %c0_i32_1 = arith.constant 0 : i32
    return %c0_i32, %c0_i32_0 : i32, i32
  }
  func.func @transform_21(%arg0: i32) -> (i32, i32) {
    %c0_i32 = arith.constant 0 : i32
    %c0_i32_0 = arith.constant 0 : i32
    %c0_i32_1 = arith.constant 0 : i32
    return %c0_i32, %c0_i32_0 : i32, i32
  }
  func.func @transform_22(%arg0: i32) -> (i32, i32) {
    %c0_i32 = arith.constant 0 : i32
    %c0_i32_0 = arith.constant 0 : i32
    %c0_i32_1 = arith.constant 0 : i32
    return %c0_i32, %c0_i32_0 : i32, i32
  }
  func.func @transform_23(%arg0: i32) -> (i32, i32) {
    %c0_i32 = arith.constant 0 : i32
    %c0_i32_0 = arith.constant 0 : i32
    %c0_i32_1 = arith.constant 0 : i32
    return %c0_i32, %c0_i32_0 : i32, i32
  }
  func.func @transform_24(%arg0: i32) -> (i32, i32, i32) {
    %c0_i32 = arith.constant 0 : i32
    %c0_i32_0 = arith.constant 0 : i32
    %c0_i32_1 = arith.constant 0 : i32
    return %arg0, %c0_i32, %c0_i32_0 : i32, i32, i32
  }
  func.func @transform_25(%arg0: i32) -> (i32, i32, i32) {
    %c0_i32 = arith.constant 0 : i32
    %c0_i32_0 = arith.constant 0 : i32
    %c0_i32_1 = arith.constant 0 : i32
    return %arg0, %c0_i32, %c0_i32_0 : i32, i32, i32
  }
}

</mosaic_0001>

<bundles_post_ra>
// kernel: decoder_layer_forward.1
= control target key start
LH: loop header
LB: loop body
LE: loop exit
PB: predicated region body
PF: predicated region fallthrough
CT: control target
= control target key end

     0   :  { %s5557_s0 = inlined_call_operand.vmem [shape: f32[2,8,64], index: 0, kind: input, shape index: {}]   ;;  %s5558_s1 = inlined_call_operand.hbm [shape: f32[2,16,64], index: 1, kind: input, shape index: {}]   ;;  %s5559_s2 = inlined_call_operand.hbm [shape: f32[2,8,8], index: 2, kind: input, shape index: {}]   ;;  %s5560_s3 = inlined_call_operand.hbm [shape: f32[2,8,16], index: 3, kind: input, shape index: {}]   ;;  %s5561_s4 = inlined_call_operand.vmem [shape: f32[64,192], index: 4, kind: input, shape index: {}]   ;;  %s5562_s5 = inlined_call_operand.vmem [shape: f32[1,192], index: 5, kind: input, shape index: {}]   ;;  %s5563_s6 = inlined_call_operand.vmem [shape: f32[64,64], index: 6, kind: input, shape index: {}]   ;;  %s5564_s7 = inlined_call_operand.hbm [shape: f32[1,64], index: 7, kind: input, shape index: {}]   ;;  %s5565_s8 = inlined_call_operand.hbm [shape: f32[1,64], index: 8, kind: input, shape index: {}]   ;;  %s5566_s9 = inlined_call_operand.hbm [shape: f32[1,64], index: 9, kind: input, shape index: {}]   ;;  %s5567_s10 = inlined_call_operand.hbm [shape: f32[64,64], index: 10, kind: input, shape index: {}]   ;;  %s5568_s11 = inlined_call_operand.hbm [shape: f32[1,64], index: 11, kind: input, shape index: {}]   ;;  %s5569_s12 = inlined_call_operand.hbm [shape: f32[64,128], index: 12, kind: input, shape index: {}]   ;;  %s5570_s13 = inlined_call_operand.hbm [shape: f32[1,128], index: 13, kind: input, shape index: {}]   ;;  %s5571_s14 = inlined_call_operand.hbm [shape: f32[64,64], index: 14, kind: input, shape index: {}]   ;;  %s5572_s15 = inlined_call_operand.hbm [shape: f32[1,64], index: 15, kind: input, shape index: {}]   ;;  %s5573_s16 = inlined_call_operand.hbm [shape: f32[1,64], index: 16, kind: input, shape index: {}]   ;;  %s5574_s17 = inlined_call_operand.hbm [shape: f32[1,64], index: 17, kind: input, shape index: {}]   ;;  %s5575_s18 = inlined_call_operand.hbm [shape: f32[1,64], index: 18, kind: input, shape index: {}]   ;;  %s5576_s19 = inlined_call_operand.hbm [shape: f32[1,64], index: 19, kind: input, shape index: {}]   ;;  %s5577_s20 = inlined_call_operand.hbm [shape: f32[64,128], index: 20, kind: input, shape index: {}]   ;;  %s5578_s21 = inlined_call_operand.hbm [shape: f32[1,128], index: 21, kind: input, shape index: {}]   ;;  %s5579_s22 = inlined_call_operand.vmem [shape: f32[128,64], index: 22, kind: input, shape index: {}]   ;;  %s5580_s23 = inlined_call_operand.hbm [shape: f32[1,64], index: 23, kind: input, shape index: {}]   ;;  %s5581_s24 = inlined_call_operand.hbm [shape: f32[2,8,64], index: 24, kind: output, shape index: {0}]   ;;  %s5582_s25 = inlined_call_operand.vmem [shape: f32[2,8,128], index: 25, kind: output, shape index: {1}]  }
   0x1   :  { %5609 = sst [smem:[#allocation50_spill]] %s5557_s0 }
   0x2   :  { %5610 = sst [smem:[#allocation51_spill]] %s5558_s1 }
   0x3   :  { %5611 = sst [smem:[#allocation52_spill]] %s5559_s2 }
   0x4   :  { %5612 = sst [smem:[#allocation53_spill]] %s5560_s3 }
   0x5   :  { %5613 = sst [smem:[#allocation54_spill]] %s5561_s4 }
   0x6   :  { %5614 = sst [smem:[#allocation55_spill]] %s5562_s5 }
   0x7   :  { %5615 = sst [smem:[#allocation56_spill]] %s5563_s6 }
   0x8   :  { %5616 = sst [smem:[#allocation57_spill]] %s5564_s7 }
   0x9   :  { %5617 = sst [smem:[#allocation58_spill]] %s5565_s8 }
   0xa   :  { %5618 = sst [smem:[#allocation59_spill]] %s5566_s9 }
   0xb   :  { %5619 = sst [smem:[#allocation60_spill]] %s5567_s10 }
   0xc   :  { %5620 = sst [smem:[#allocation61_spill]] %s5568_s11 }
   0xd   :  { %5621 = sst [smem:[#allocation62_spill]] %s5569_s12 }
   0xe   :  { %5622 = sst [smem:[#allocation63_spill]] %s5570_s13 }
   0xf   :  { %5623 = sst [smem:[#allocation64_spill]] %s5571_s14 }
  0x10   :  { %5624 = sst [smem:[#allocation65_spill]] %s5572_s15 }
  0x11   :  { %5625 = sst [smem:[#allocation66_spill]] %s5573_s16 }
  0x12   :  { %5626 = sst [smem:[#allocation67_spill]] %s5574_s17 }
  0x13   :  { %5627 = sst [smem:[#allocation68_spill]] %s5576_s19 }
  0x14   :  { %5628 = sst [smem:[#allocation69_spill]] %s5578_s21 }
  0x15   :  { %5629 = sst [smem:[#allocation70_spill]] %s5579_s22 }
  0x16   :  { %5630 = sst [smem:[#allocation71_spill]] %s5580_s23 }
  0x17   :  { %5631 = sst [smem:[#allocation72_spill]] %s5581_s24 }
  0x18   :  { %5632 = sst [smem:[#allocation73_spill]] %s5582_s25 }
  0x19   :  { %31 = vsyncpa [#allocation3], 0 }
  0x1a   :  { %33 = vsyncpa [#allocation3 + $0x1], 0 }
  0x1b   :  { %34 = vsyncpa [#allocation6], 0 }
  0x1c   :  { %36 = vsyncpa [#allocation6 + $0x1], 0 }
  0x1d   :  { %37 = vsyncpa [#allocation9], 0 }
  0x1e   :  { %38 = vsyncpa [#allocation12], 0 }
  0x1f   :  { %39 = vsyncpa [#allocation15], 0 }
  0x20   :  { %40 = vsyncpa [#allocation18], 0 }
  0x21   :  { %41 = vsyncpa [#allocation21], 0 }
  0x22   :  { %42 = vsyncpa [#allocation24], 0 }
  0x23   :  { %43 = vsyncpa [#allocation27], 0 }
  0x24   :  { %44 = vsyncpa [#allocation30], 0 }
  0x25   :  { %45 = vsyncpa [#allocation4], 0 }
  0x26   :  { %47 = vsyncpa [#allocation4 + $0x1], 0  ;;  %s4758_s29 = smov 0   ;;  %s4760_s2 = smov 0  }
  0x27   :  { %s4762_s6 = smov 0   ;;  %s4764_s30 = smov 0  }
  0x28 LB: > { %5633 = sst [smem:[#allocation44_spill]] %s4579_s29  ;;  %s4782_s8 = sadd.s32 4294967295, %s4591_s30   ;;  %s4591_s30 = sphi %s4764_s30, %s5696_s30   ;;  %s4587_s6 = sphi %s4762_s6, %s5698_s6   ;;  %s4583_s2 = sphi %s4760_s2, %s5700_s2   ;;  %s4579_s29 = sphi %s4758_s29, %s5699_s29  }
  0x29   : > { %5634 = sst [smem:[#allocation45_spill]] %s4587_s6  ;;  %p3428_p0 = scmp.ge.s32.totalorder %s4591_s30, 1 }
  0x2a   : > { %s5635_s26 = sld [smem:[#allocation57_spill]]  ;;  %p5596_p1 = scmp.eq.s32.totalorder %s4782_s8, 0 }
  0x2b   : > { %p634_p2 = scmp.lt.s32.totalorder %s4591_s30, 3  ;;  %s4593_s4 = smov [#allocation8]  }
  0x2c   : > { %s657_s28 = sshll.u32 %s4593_s4, 4  ;;  %s5638_s0 = sld [smem:[#allocation59_spill]]  ;;  %s658_s28 = int_to_ptr.vmem [resolvable:$true] %s657_s28 }
  0x2d   : > { %p4787_p3 = pnand %p3428_p0, %p634_p2  ;;  %s5640_s11 = sld [smem:[#allocation61_spill]] }
  0x2e   : > { %s5641_s13 = sld [smem:[#allocation63_spill]]  ;;  %p93_p8 = scmp.ne.s32.totalorder %s4587_s6, %s4583_s2 }
  0x2f   : > { %s5636_s27 = scalar_select %p4787_p3, 1, 0 }
  0x30   : > { %s655_s1 = sshll.u32 %s5635_s26, 4  ;;  %p3631_p5 = pneg %p4787_p3  ;;  %s656_s1 = int_to_ptr.hbm [resolvable:$true] %s655_s1 }
  0x31   : > { %5637 = sst [smem:[#allocation46_spill]] %s5636_s27  ;;  %s4594_s26 = smov [#allocation11]  }
  0x32   : > { %s679_s7 = sshll.u32 %s5638_s0, 4  ;;  %p4799_p6 = pnand %p3631_p5, %p5596_p1  ;;  %s680_s7 = int_to_ptr.hbm [resolvable:$true] %s679_s7 }
  0x33   : > { %s681_s24 = sshll.u32 %s4594_s26, 4  ;;  %s705_s25 = sshll.u32 %s5640_s11, 4  ;;  %s682_s24 = int_to_ptr.vmem [resolvable:$true] %s681_s24  ;;  %s706_s25 = int_to_ptr.hbm [resolvable:$true] %s705_s25 }
  0x34   : > { %3634 = dma.hbm_to_vmem [thread:$0]  (!%p4799_p6), %s656_s1, 16, %s658_s28, [#allocation9]  }
  0x35   : > { %3640 = dma.hbm_to_vmem [thread:$0]  (!%p4799_p6), %s680_s7, 16, %s682_s24, [#allocation12]  }
  0x36   : > { %s731_s0 = sshll.u32 %s5641_s13, 4  ;;  %s4595_s27 = smov [#allocation14]   ;;  %s732_s0 = int_to_ptr.hbm [resolvable:$true] %s731_s0 }
  0x37   : > { %s707_s23 = sshll.u32 %s4595_s27, 4  ;;  %s4596_s26 = smov [#allocation17]   ;;  %s708_s23 = int_to_ptr.vmem [resolvable:$true] %s707_s23 }
  0x38   : > { %3646 = dma.hbm_to_vmem [thread:$0]  (!%p4799_p6), %s706_s25, 16, %s708_s23, [#allocation15]  }
  0x39   : > { %s733_s22 = sshll.u32 %s4596_s26, 4  ;;  %s5642_s15 = sld [smem:[#allocation65_spill]]  ;;  %s734_s22 = int_to_ptr.vmem [resolvable:$true] %s733_s22 }
  0x3a   : > { %3652 = dma.hbm_to_vmem [thread:$0]  (!%p4799_p6), %s732_s0, 16, %s734_s22, [#allocation18]  }
  0x3b   : > { %s5643_s17 = sld [smem:[#allocation67_spill]]  ;;  %s4597_s27 = smov [#allocation20]  }
  0x3c   : > { %s759_s9 = sshll.u32 %s4597_s27, 4  ;;  %s4598_s23 = smov [#allocation23]   ;;  %s760_s9 = int_to_ptr.vmem [resolvable:$true] %s759_s9 }
  0x3d   : > { %s783_s11 = sshll.u32 %s4598_s23, 4  ;;  %s5644_s19 = sld [smem:[#allocation68_spill]]  ;;  %s784_s11 = int_to_ptr.vmem [resolvable:$true] %s783_s11 }
  0x3e   : > { %s5645_s21 = sld [smem:[#allocation69_spill]]  ;;  %s4600_s28 = smov [#allocation29]  }
  0x3f   : > { %s757_s1 = sshll.u32 %s5642_s15, 4  ;;  %s3427_s27 = sadd.s32 4294967294, %s4591_s30   ;;  %s758_s1 = int_to_ptr.hbm [resolvable:$true] %s757_s1 }
  0x40   : > { %3658 = dma.hbm_to_vmem [thread:$0]  (!%p4799_p6), %s758_s1, 16, %s760_s9, [#allocation21]  }
  0x41   : > { %s781_s7 = sshll.u32 %s5643_s17, 4  ;;  %s4599_s1 = smov [#allocation26]   ;;  %s782_s7 = int_to_ptr.hbm [resolvable:$true] %s781_s7 }
  0x42   : > { %3664 = dma.hbm_to_vmem [thread:$0]  (!%p4799_p6), %s782_s7, 16, %s784_s11, [#allocation24]  }
  0x43   : > { %s805_s0 = sshll.u32 %s5644_s19, 4  ;;  %s807_s24 = sshll.u32 %s4599_s1, 4  ;;  %s806_s0 = int_to_ptr.hbm [resolvable:$true] %s805_s0  ;;  %s808_s24 = int_to_ptr.vmem [resolvable:$true] %s807_s24 }
  0x44   : > { %s831_s4 = sshll.u32 %s5645_s21, 4  ;;  %s833_s7 = sshll.u32 %s4600_s28, 4  ;;  %s832_s4 = int_to_ptr.hbm [resolvable:$true] %s831_s4  ;;  %s834_s7 = int_to_ptr.vmem [resolvable:$true] %s833_s7 }
  0x45   : > { %3670 = dma.hbm_to_vmem [thread:$0]  (!%p4799_p6), %s806_s0, 16, %s808_s24, [#allocation27]  }
  0x46   : > { %3676 = dma.hbm_to_vmem [thread:$0]  (!%p4799_p6), %s832_s4, 16, %s834_s7, [#allocation30]  }
  0x47   : > { %s4839_s9 = sadd.s32 1, %s4591_s30   ;;  %s86_s11 = sadd.s32 1, %s4587_s6 }
  0x48   : > { %5646 = sst [smem:[#allocation47_spill]] %s4839_s9  ;;  %s83_s23 = ssub.s32 %s4591_s30, %s4839_s9 }
  0x49   : > { %p84_p7 = scmp.eq.s32.totalorder %s83_s23, 0  ;;  %p94_p9 = scmp.eq.s32.totalorder %s4591_s30, 0 }
  0x4a   : > { %p99_p10 = scmp.ne.s32.totalorder %s4583_s2, %s4579_s29  ;;  %p595_p13 = scmp.eq.s32.totalorder %s4782_s8, 1 }
  0x4b   : > { %s4850_s25 = scalar_select %p84_p7, %s4587_s6, %s86_s11  }
  0x4c   : > { %p95_p11 = por %p94_p9, %p93_p8  ;;  %p4854_p12 = por %p5596_p1, %p99_p10 }
  0x4d   : > { %5647 = sst [smem:[#allocation48_spill]] %s4850_s25  ;;  %p601_p0 = scmp.eq.s32.totalorder %s3427_s27, 1 }
  0x4e   : > { %p3710_p2 = scmp.lt.s32.totalorder %s4591_s30, 2  ;;  %s4861_s0 = sand.u32 1, %s4587_s6  }
  0x4f   : > { %p4863_p5 = por %p595_p13, %p93_p8  ;;  %p4867_p4 = por %p601_p0, %p99_p10 }
  0x50   : > { %p4871_p7 = pnand %p3710_p2, %p95_p11  ;;  %s888_s1 = sand.u32 1, %s4591_s30  }
  0x51   : > { %s5650_s22 = scalar_select %p4867_p4, 1, 0 }
  0x52   : > { %s5597_s24 = sshll.u32 %s4861_s0, 3  ;;  %s3450_s28 = sshll.u32 %s4591_s30, 3 }
  0x53   : > { %5651 = sst [smem:[#allocation49_spill]] %s5650_s22  ;;  %s892_s7 = scalar_lea.vmem [#allocation5], %s5597_s24 }
  0x54   : > { %s900_s27 = sshll.u32 %s892_s7, 4  ;;  %s5653_s13 = sld [smem:[#allocation52_spill]]  ;;  %s901_s27 = int_to_ptr.vmem [resolvable:$true] %s900_s27 }
  0x55   : > { %s5654_s25 = sld [smem:[#allocation53_spill]]  ;;  %s4888_s9 = scalar_lea.sflag [#allocation6], %s888_s1 }
  0x56   : > { %p4163_p9 = pneg %p4871_p7 }
  0x5a   : > { %s896_s15 = scalar_lea.hbm %s5653_s13, %s3450_s28  ;;  %s4166_s23 = scalar_lea.hbm %s5653_s13, 16 }
  0x5b   : > { %s898_s17 = sshll.u32 %s896_s15, 4  ;;  %s4886_s6 = scalar_lea.hbm %s5654_s25, %s3450_s28  ;;  %s899_s17 = int_to_ptr.hbm [resolvable:$true] %s898_s17 }
  0x5c   : > { %s4159_s22 = sshra.s32 %s899_s17, 4  ;;  %s4160_s22 = int_to_ptr.hbm [resolvable:$true] %s4159_s22 }
  0x5d   : > { %s4161_s29 = scalar_lea.hbm %s4160_s22, 8  ;;  %p4167_p13 = scmp.lt.s32.totalorder %s4160_s22, %s5653_s13 }
  0x5e   : > { %p4162_p8 = scmp.ne.s32.totalorder %s4160_s22, %s4161_s29  ;;  %p4168_p0 = scmp.lt.s32.totalorder %s4166_s23, %s4161_s29 }
  0x60   : > { %p4164_p10 = pnand %p4163_p9, %p4162_p8  ;;  %p4169_p2 = por %p4168_p0, %p4167_p13 }
  0x62   : > { %p4165_p11 = pneg %p4164_p10 }
  0x64   : > { %p4170_p1 = pnand %p4169_p2, %p4165_p11 }
  0x66   : > { %4173 = shalt.err (!%p4170_p1)
}
  0x67   : > { %3686 = dma.hbm_to_vmem [thread:$0]  (!%p4871_p7), %s899_s17, 128, %s901_s27, %s4888_s9  }
  0x68   : > { %s5655_s28 = sld [smem:[#allocation58_spill]]  ;;  %s4601_s7 = smov [#allocation10]  }
  0x69   : > { %s669_s15 = sshll.u32 %s4601_s7, 4  ;;  %s5656_s10 = sld [smem:[#allocation60_spill]]  ;;  %s670_s15 = int_to_ptr.vmem [resolvable:$true] %s669_s15 }
  0x6a   : > { %s4602_s23 = smov [#allocation13]   ;;  %s5598_s17 = smov 128  }
  0x6b   : > { %s692_s19 = sshll.u32 %s4602_s23, 4  ;;  %s5600_s27 = smov 8   ;;  %s693_s19 = int_to_ptr.vmem [resolvable:$true] %s692_s19 }
  0x6c   : > { %s5657_s12 = sld [smem:[#allocation62_spill]]  ;;  %s4605_s7 = smov [#allocation16]  }
  0x6d   : > { %s718_s11 = sshll.u32 %s4605_s7, 4  ;;  %s5658_s14 = sld [smem:[#allocation64_spill]]  ;;  %s719_s11 = int_to_ptr.vmem [resolvable:$true] %s718_s11 }
  0x6e   : > { %s667_s24 = sshll.u32 %s5655_s28, 4  ;;  %s5659_s16 = sld [smem:[#allocation66_spill]]  ;;  %s668_s24 = int_to_ptr.hbm [resolvable:$true] %s667_s24 }
  0x6f   : > { %s690_s29 = sshll.u32 %s5656_s10, 4  ;;  %s4610_s10 = smov [#allocation31]   ;;  %s691_s29 = int_to_ptr.hbm [resolvable:$true] %s690_s29 }
  0x70   : > { %3637 = dma.hbm_to_vmem [thread:$0]  (!%p4799_p6), %s668_s24, 16, %s670_s15, [#allocation9]  }
  0x71   : > { %3643 = dma.hbm_to_vmem [thread:$0]  (!%p4799_p6), %s691_s29, 1024, %s693_s19, [#allocation12], %s5598_s17, %s5598_s17, %s5600_s27  }
  0x72   : > { %s716_s28 = sshll.u32 %s5657_s12, 4  ;;  %s4606_s29 = smov [#allocation19]   ;;  %s717_s28 = int_to_ptr.hbm [resolvable:$true] %s716_s28 }
  0x73   : > { %s742_s22 = sshll.u32 %s5658_s14, 4  ;;  %s744_s23 = sshll.u32 %s4606_s29, 4  ;;  %s743_s22 = int_to_ptr.hbm [resolvable:$true] %s742_s22  ;;  %s745_s23 = int_to_ptr.vmem [resolvable:$true] %s744_s23 }
  0x74   : > { %3649 = dma.hbm_to_vmem [thread:$0]  (!%p4799_p6), %s717_s28, 1024, %s719_s11, [#allocation15], %s5598_s17, %s5598_s17, %s5600_s27  }
  0x75   : > { %s769_s1 = sshll.u32 %s5659_s16, 4  ;;  %s793_s15 = sshll.u32 %s5575_s18, 4  ;;  %s770_s1 = int_to_ptr.hbm [resolvable:$true] %s769_s1  ;;  %s794_s15 = int_to_ptr.hbm [resolvable:$true] %s793_s15 }
  0x76   : > { %3655 = dma.hbm_to_vmem [thread:$0]  (!%p4799_p6), %s743_s22, 1024, %s745_s23, [#allocation18], %s5598_s17, %s5598_s17, %s5600_s27  }
  0x77   : > { %s4607_s28 = smov [#allocation22]   ;;  %s4608_s29 = smov [#allocation25]  }
  0x78   : > { %s771_s11 = sshll.u32 %s4607_s28, 4  ;;  %s795_s19 = sshll.u32 %s4608_s29, 4  ;;  %s772_s11 = int_to_ptr.vmem [resolvable:$true] %s771_s11  ;;  %s796_s19 = int_to_ptr.vmem [resolvable:$true] %s795_s19 }
  0x79   : > { %3661 = dma.hbm_to_vmem [thread:$0]  (!%p4799_p6), %s770_s1, 16, %s772_s11, [#allocation21]  }
  0x7a   : > { %s816_s22 = sshll.u32 %s5577_s20, 4  ;;  %s5660_s24 = sld [smem:[#allocation71_spill]]  ;;  %s817_s22 = int_to_ptr.hbm [resolvable:$true] %s816_s22 }
  0x7b   : > { %3667 = dma.hbm_to_vmem [thread:$0]  (!%p4799_p6), %s794_s15, 16, %s796_s19, [#allocation24]  }
  0x7c   : > { %s4609_s17 = smov [#allocation28]   ;;  %s5661_s1 = smov 8  }
  0x7d   : > { %s818_s27 = sshll.u32 %s4609_s17, 4  ;;  %s5662_s11 = smov 128   ;;  %s819_s27 = int_to_ptr.vmem [resolvable:$true] %s818_s27 }
  0x7e   : > { %3673 = dma.hbm_to_vmem [thread:$0]  (!%p4799_p6), %s817_s22, 1024, %s819_s27, [#allocation27], %s5662_s11, %s5662_s11, %s5661_s1  }
  0x7f   : > { %s848_s29 = sshll.u32 %s4610_s10, 4  ;;  %s3446_s15 = sshll.u32 %s4861_s0, 4  ;;  %s849_s29 = int_to_ptr.vmem [resolvable:$true] %s848_s29 }
  0x80   : > { %s846_s28 = sshll.u32 %s5660_s24, 4  ;;  %s3558_s19 = sshll.u32 %s4591_s30, 4  ;;  %s847_s28 = int_to_ptr.hbm [resolvable:$true] %s846_s28 }
  0x81   : > { %3679 = dma.hbm_to_vmem [thread:$0]  (!%p4799_p6), %s847_s28, 16, %s849_s29, [#allocation30]  }
  0x82   : > { %s5663_s17 = sld [smem:[#allocation51_spill]]  ;;  %s870_s24 = scalar_lea.vmem [#allocation2], %s3446_s15 }
  0x83   : > { %s878_s12 = sshll.u32 %s870_s24, 4  ;;  %s917_s14 = sshll.u32 %s4886_s6, 4  ;;  %s879_s12 = int_to_ptr.vmem [resolvable:$true] %s878_s12  ;;  %s918_s14 = int_to_ptr.hbm [resolvable:$true] %s917_s14 }
  0x84   : > { %s867_s16 = scalar_lea.sflag [#allocation3], %s4861_s0 }
  0x88   : > { %s875_s7 = scalar_lea.hbm %s5663_s17, %s3558_s19  ;;  %s4436_s10 = scalar_lea.hbm %s5663_s17, 32 }
  0x89   : > { %s876_s13 = sshll.u32 %s875_s7, 4  ;;  %s877_s13 = int_to_ptr.hbm [resolvable:$true] %s876_s13 }
  0x8a   : > { %s4429_s27 = sshra.s32 %s877_s13, 4  ;;  %s4430_s27 = int_to_ptr.hbm [resolvable:$true] %s4429_s27 }
  0x8b   : > { %s4431_s22 = scalar_lea.hbm %s4430_s27, 16  ;;  %p4437_p10 = scmp.lt.s32.totalorder %s4430_s27, %s5663_s17 }
  0x8c   : > { %p4432_p1 = scmp.ne.s32.totalorder %s4430_s27, %s4431_s22  ;;  %p4438_p11 = scmp.lt.s32.totalorder %s4436_s10, %s4431_s22 }
  0x8e   : > { %p4434_p8 = pnand %p4432_p1, %p4163_p9  ;;  %p4439_p13 = por %p4438_p11, %p4437_p10 }
  0x90   : > { %p4435_p6 = pneg %p4434_p8 }
  0x92   : > { %p4440_p0 = pnand %p4439_p13, %p4435_p6 }
  0x94   : > { %4443 = shalt.err (!%p4440_p0)
}
  0x95   : > { %3683 = dma.hbm_to_vmem [thread:$0]  (!%p4871_p7), %s877_s13, 256, %s879_s12, %s867_s16, %s5662_s11, %s5662_s11, %s5661_s1  }
  0x96   : > { %s5664_s6 = sshll.u32 %s4861_s0, 3  ;;  %s4459_s23 = sshra.s32 %s918_s14, 4  ;;  %s4460_s23 = int_to_ptr.hbm [resolvable:$true] %s4459_s23 }
  0x97   : > { %s911_s19 = scalar_lea.vmem [#allocation7], %s5664_s6  ;;  %s4461_s7 = scalar_lea.hbm %s4460_s23, 8 }
  0x98   : > { %s919_s21 = sshll.u32 %s911_s19, 4  ;;  %p4462_p2 = scmp.ne.s32.totalorder %s4460_s23, %s4461_s7  ;;  %s920_s21 = int_to_ptr.vmem [resolvable:$true] %s919_s21 }
  0x99   : > { %s4466_s22 = scalar_lea.hbm %s5654_s25, 16  ;;  %p4467_p6 = scmp.lt.s32.totalorder %s4460_s23, %s5654_s25 }
  0x9a   : > { %p4464_p1 = pnand %p4462_p2, %p4163_p9  ;;  %p4468_p10 = scmp.lt.s32.totalorder %s4466_s22, %s4461_s7 }
  0x9c   : > { %p4465_p8 = pneg %p4464_p1  ;;  %p4469_p11 = por %p4468_p10, %p4467_p6 }
  0x9e   : > { %p4470_p13 = pnand %p4469_p11, %p4465_p8 }
  0xa0   : > { %4473 = shalt.err (!%p4470_p13)
}
  0xa1   : > { %3689 = dma.hbm_to_vmem [thread:$0]  (!%p4871_p7), %s918_s14, 128, %s920_s21, %s4888_s9  }
  0xa2   : > { %928 = sbr.rel (%p4787_p3) target bundleno = 6435 (0x1923), region = 116  ;;  %s4994_s13 = sand.u32 (!%p4787_p3), 1, %s4583_s2  }
  0xa3   : > { %s3454_s16 = sshll.u32 (!%p4787_p3), %s4994_s13, 4  ;;  %s931_s0 = scalar_lea.sflag (!%p4787_p3), [#allocation3], %s4994_s13 }
  0xa4   : > { %s4998_s1 = scalar_lea.vmem (!%p4787_p3), [#allocation2], %s3454_s16 }
  0xa7   : > { %4534 = dma.done.wait (%p4854_p12), %s931_s0, 256  }
  0xa8   : > { %4536 = vsyncadd (%p4854_p12), %s931_s0, 4294967040  ;;  %s940_s14 = sand.u32 1, %s4782_s8   ;;  %s5006_s9 = sshll.u32 %s4994_s13, 3 }
  0xa9   : > { %s941_s4 = scalar_lea.sflag [#allocation6], %s940_s14  ;;  %s944_s11 = scalar_lea.vmem [#allocation5], %s5006_s9 }
  0xaa   : > { %4538 = dma.done.wait (%p4854_p12), %s941_s4, 256  }
  0xab   : > { %4540 = vsyncadd (%p4854_p12), %s941_s4, 4294967040  ;;  %s954_s10 = scalar_lea.vmem [#allocation7], %s5006_s9  ;;  %p5666_p3 = scmp.eq.s32.totalorder %s4782_s8, 0 }
  0xad   : > { %4542 = dma.done.wait (%p5666_p3), [#allocation9], 32   ;;  %p5667_p7 = pmov %p5666_p3 }
  0xae   : > { %p5668_p9 = pmov %p5666_p3 }
  0xaf   : > { %4544 = vsyncadd (%p5667_p7), [#allocation9], 4294967264 }
  0xb0   : > { %4546 = dma.done.wait (%p5668_p9), [#allocation12], 1040   ;;  %p5669_p0 = pmov %p5666_p3 }
  0xb2   : > { %4548 = vsyncadd (%p5669_p0), [#allocation12], 4294966256  ;;  %p5670_p2 = pmov %p5669_p0 }
  0xb3   : > { %p5671_p1 = pmov %p5669_p0 }
  0xb4   : > { %4550 = dma.done.wait (%p5670_p2), [#allocation15], 1040  }
  0xb5   : > { %4552 = vsyncadd (%p5671_p1), [#allocation15], 4294966256  ;;  %p5672_p12 = pmov %p5669_p0 }
  0xb6   : > { %p5673_p8 = pmov %p5669_p0 }
  0xb7   : > { %4554 = dma.done.wait (%p5672_p12), [#allocation18], 1040  }
  0xb8   : > { %4556 = vsyncadd (%p5673_p8), [#allocation18], 4294966256  ;;  %p5674_p6 = pmov %p5669_p0 }
  0xb9   : > { %p5675_p10 = pmov %p5669_p0 }
  0xba   : > { %4558 = dma.done.wait (%p5674_p6), [#allocation21], 32  }
  0xbb   : > { %4560 = vsyncadd (%p5675_p10), [#allocation21], 4294967264  ;;  %p5676_p11 = pmov %p5669_p0 }
  0xbc   : > { %p5677_p13 = pmov %p5669_p0 }
  0xbd   : > { %4562 = dma.done.wait (%p5676_p11), [#allocation24], 32  }
  0xbe   : > { %4564 = vsyncadd (%p5677_p13), [#allocation24], 4294967264  ;;  %p5678_p3 = pmov %p5669_p0 }
  0xbf   : > { %p5679_p7 = pmov %p5669_p0 }
  0xc0   : > { %4566 = dma.done.wait (%p5678_p3), [#allocation27], 1040  }
  0xc1   : > { %4568 = vsyncadd (%p5679_p7), [#allocation27], 4294966256  ;;  %p5680_p9 = pmov %p5669_p0 }
  0xc3   : > { %4570 = dma.done.wait (%p5680_p9), [#allocation30], 32  }
  0xc4   : > { %4572 = vsyncadd (%p5669_p0), [#allocation30], 4294967264  ;;  %p1120_p2 = scmp.lt.s32.totalorder %s4782_s8, 1  ;;  %s5681_s15 = sld [smem:[#allocation54_spill]]  ;;  %vm1153_vm0 = vcmask 523264   ;;  %vm1212_vm1 = vcmask 64512  }
  0xc5   : > { %s5682_s29 = sld [smem:[#allocation50_spill]]  ;;  %s4611_s22 = smov 64   ;;  %v1198_v15 = vld [vmem:[%s944_s11] sm:$0xff]  ;;  %v4613_v16 = vmov 0.0   ;;  %vm2080_vm8 = vcmask 130048  }
  0xc6   : > { %s5060_s27 = scalar_select %p1120_p2, %s4782_s8, 1  ;;  %vm1199_vm2 = vcmp.eq.f32.partialorder %v1198_v15, 0.0 }
  0xc7   : > { %s5683_s24 = sld [smem:[#allocation55_spill]]  ;;  %s4612_s3 = smov 120   ;;  %v5102_v17 = vsel %vm1199_vm2, -65500.0, %v4613_v16 }
  0xc8   : > { %s3474_s28 = sshll.u32 %s5060_s27, 3  ;;  %s4615_s19 = smov 112  }
  0xc9   : > { %s4616_s4 = smov 56   ;;  %s4617_s5 = smov 32  }
  0xca   : > { %v1145_v0 = vld [vmem:[%s5681_s15 + $0x70] sm:$0xff]  ;;  %v1143_v1 = vld [vmem:[%s5681_s15 + $0x60] sm:$0xff]  ;;  %v1146_v19 = vld [vmem:[%s5681_s15 + $0x78] sm:$0xff]  ;;  %s5605_s11 = smov 24   ;;  %s5684_s23 = sld [smem:[#allocation56_spill]] }
  0xcb   : > { %1165 = vmatpush.msra.mxu1 %v1145_v0  ;;  %v1141_v2 = vld [vmem:[%s5681_s15 + $0x50] sm:$0xff]  ;;  %v1139_v3 = vld [vmem:[%s5681_s15 + $0x40] sm:$0xff]  ;;  %s1123_s6 = scalar_lea.vmem %s5682_s29, %s3474_s28  ;;  %v1144_v20 = vld [vmem:[%s5681_s15 + $0x68] sm:$0xff]  ;;  %s4619_s12 = smov 40  }
  0xcc   : > { %v1137_v4 = vld [vmem:[%s5681_s15 + $0x30] sm:$0xff]  ;;  %v1135_v5 = vld [vmem:[%s5681_s15 + $0x20] sm:$0xff]  ;;  %v1142_v22 = vld [vmem:[%s5681_s15 + $0x58] sm:$0xff]  ;;  %s4620_s16 = smov 104   ;;  %s4621_s29 = smov 96  }
  0xcd   : > { %1166 = vmatpush.msra.mxu1 %v1143_v1  ;;  %v1133_v6 = vld [vmem:[%s5681_s15 + $0x10] sm:$0xff]  ;;  %v1131_v7 = vld [vmem:[%s5681_s15] sm:$0xff]  ;;  %v1140_v24 = vld [vmem:[%s5681_s15 + $0x48] sm:$0xff]  ;;  %s5603_s0 = smov 16   ;;  %s4624_s7 = smov 80  }
  0xce   : > { %v5080_v8 = vld [vmem:[%s1123_s6] sm:$0xff]  ;;  %s4614_s6 = smov 48   ;;  %v1138_v25 = vld [vmem:[%s5681_s15 + $0x38] sm:$0xff]  ;;  %v1136_v26 = vld [vmem:[%s5681_s15 + $0x28] sm:$0xff]  ;;  %s5606_s14 = smov 8  }
  0xcf   : > { %1167 = vmatpush.msra.mxu1 %v1141_v2  ;;  %v1147_v9 = vld [vmem:[%s5683_s24] sm:$0x3]  ;;  %v1134_v27 = vld [vmem:[%s5681_s15 + $0x18] sm:$0xff]  ;;  %v1132_v28 = vld [vmem:[%s5681_s15 + $0x8] sm:$0xff]  ;;  %s4622_s24 = smov 88   ;;  %s5607_s21 = smov 72  }
  0xd0   : > { %v1149_v10 = vperm.slane %v1147_v9, 0  ;;  %v1150_v36 = vperm.slane %v1147_v9, 1  ;;  %v1202_v47 = vld [vmem:[%s5684_s23 + $0x8] sm:$0xff]  ;;  %v1204_v48 = vld [vmem:[%s5684_s23 + $0x18] sm:$0xff]  ;;  %s5686_s27 = smov 72  }
  0xd1   : > { %1168 = vmatpush.msra.mxu1 %v1139_v3  ;;  %v1201_v3 = vld [vmem:[%s5684_s23] sm:$0xff] }
  0xd3   : > { %1169 = vmatpush.msra.mxu1 %v1137_v4 }
  0xd5   : > { %1170 = vmatpush.msra.mxu1 %v1135_v5 }
  0xd7   : > { %1171 = vmatpush.msra.mxu1 %v1133_v6 }
  0xd9   : > { %1172 = vmatpush.msra.mxu1 %v1131_v7 }
  0xda   : > { %3476 = vmatmul.msk.f32.vlgmr.msra.gmra.mxu1 %vm1153_vm0, %v5080_v8 }
  0xdb   : > { %1185 = vmatpush.msrb.mxu1 %v1146_v19 }
  0xdd   : > { %1186 = vmatpush.msrb.mxu1 %v1144_v20 }
  0xdf   : > { %1187 = vmatpush.msrb.mxu1 %v1142_v22 }
  0xe1   : > { %1188 = vmatpush.msrb.mxu1 %v1140_v24 }
  0xe3   : > { %1189 = vmatpush.msrb.mxu1 %v1138_v25 }
  0xe5   : > { %1190 = vmatpush.msrb.mxu1 %v1136_v26 }
  0xe7   : > { %1191 = vmatpush.msrb.mxu1 %v1134_v27 }
  0xe9   : > { %1192 = vmatpush.msrb.mxu1 %v1132_v28 }
  0xea   : > { %3477 = vmatmul.msk.f32.vlgmr.msrb.gmra.mxu1 %vm1153_vm0, %v5080_v8 }
  0xeb   : > { %1556 = vmatpush.msra.mxu1 %v1204_v48 }
 0x157   : > { %v1174_v11 = vpop.f32.mrf.mxu1 }
 0x158   : > { %v5087_v12 = vadd.f32 %v1174_v11, %v1149_v10  ;;  %v1203_v11 = vld [vmem:[%s5684_s23 + $0x10] sm:$0xff] }
 0x15a   : > { %1210 = vrot.lane.b32.xlu0 %v5087_v12, %s4611_s22  ;;  %v5092_v13 = vmul.f32 0.35355338, %v5087_v12 }
 0x15c   : > { %1272 = vrot.lane.b32.xlu2 %v5092_v13, %s4612_s3 }
 0x167   : > { %v1194_v37 = vpop.f32.mrf.mxu1 }
 0x168   : > { %v5141_v38 = vadd.f32 %v1194_v37, %v1150_v36 }
 0x16a   : > { %1267 = vmatpush.msra.mxu3 %v5141_v38 }
 0x1b6   : > { %v1273_v45 = vpop.permute.xlu2 %1272 }
 0x1cc   : > { %v1211_v14 = vpop.permute.xlu0 %1210 }
 0x1cd   : > { %3478 = vmatpush.xpose.msk.msra.mxu2 %vm1212_vm1, %v1211_v14 }
 0x1d0   : > { %3479 = vmatmul.msk.f32.vlgmr.msra.gmra.mxu2 %vm1212_vm1, %v5092_v13 }
 0x253   : > { %v1235_v18 = vpop.f32.mrf.mxu2 }
 0x254   : > { %v1236_v21 = vadd.f32 %v1235_v18, %v5102_v17 }
 0x256   : > { %v1238_v23 = vsel %vm1212_vm1, %v1236_v21, -inf }
 0x257   : > { %1239 = vmax.xlane.f32.xlu0 %v1238_v23 }
 0x26b   : > { %1386 = vrot.lane.b32.xlu0 %v5087_v12, %s4614_s6 }
 0x273   : > { %1384 = vrot.lane.b32.xlu0 %v5092_v13, %s4615_s19 }
 0x2ca   : > { %v1240_v29 = vpop.xlane.xlu0 %1239 }
 0x2cb   : > { %v1241_v30 = vsub.f32 %v1236_v21, %v1240_v29 }
 0x2cd   : > { %v1242_v31 = vmul.f32 1.442695, %v1241_v30 }
 0x2cf   : > { %3847 = vpow2.f32 %v1242_v31 }
 0x2d5   : > { %v3848_v32 = vpop.eup %3847 }
 0x2d6   : > { %v1244_v33 = vsel %vm1212_vm1, %v3848_v32, 0.0 }
 0x2d7   : > { %1245 = vadd.xlane.f32.xlu1 %v1244_v33 }
 0x2dd   : > { %v1387_v34 = vpop.permute.xlu0 %1386 }
 0x2de   : > { %3486 = vmatpush.xpose.msk.msra.mxu0 %vm1212_vm1, %v1387_v34 }
 0x2e5   : > { %v1385_v35 = vpop.permute.xlu0 %1384 }
 0x2e6   : > { %3487 = vmatmul.msk.f32.vlgmr.msra.gmra.mxu0 %vm1212_vm1, %v1385_v35 }
 0x2f0   : > { %1274 = vrot.lane.b32.xlu1 %v5087_v12, %s4616_s4 }
 0x34a   : > { %v1246_v39 = vpop.xlane.xlu1 %1245 }
 0x34b   : > { %3849 = vrcp.f32 %v1246_v39 }
 0x351   : > { %v3850_v40 = vpop.eup %3849 }
 0x352   : > { %v1248_v41 = vmul.f32 %v3850_v40, %v3848_v32 }
 0x354   : > { %3480 = vmatmul.msk.f32.vlgmr.msra.gmra.mxu3 %vm1212_vm1, %v1248_v41 }
 0x362   : > { %v1275_v42 = vpop.permute.xlu1 %1274 }
 0x363   : > { %3481 = vmatpush.xpose.msk.msrb.mxu3 %vm1212_vm1, %v1275_v42  ;;  %v1409_v43 = vpop.f32.mrf.mxu0 }
 0x364   : > { %v1410_v44 = vadd.f32 %v1409_v43, %v5102_v17 }
 0x366   : > { %3482 = vmatmul.msk.f32.vlgmr.msrb.gmra.mxu3 %vm1212_vm1, %v1273_v45  ;;  %v1412_v46 = vsel %vm1212_vm1, %v1410_v44, -inf }
 0x367   : > { %1413 = vmax.xlane.f32.xlu0 %v1412_v46  ;;  %1356 = vmatpush.msra.mxu3 %v1202_v47 }
 0x37b   : > { %1423 = vrot.lane.b32.xlu0 %v5141_v38, %s4615_s19 }
 0x383   : > { %1564 = vrot.lane.b32.xlu0 %v5087_v12, %s4617_s5 }
 0x38b   : > { %1653 = vrot.lane.b32.xlu0 %v5087_v12, %s5605_s11 }
 0x3d7   : > { %v1269_v49 = vpop.f32.mrf.mxu3 }
 0x3da   : > { %v1414_v50 = vpop.xlane.xlu0 %1413 }
 0x3db   : > { %v1415_v63 = vsub.f32 %v1410_v44, %v1414_v50 }
 0x3dd   : > { %v1416_v0 = vmul.f32 1.442695, %v1415_v63 }
 0x3e9   : > { %v1297_v51 = vpop.f32.mrf.mxu3 }
 0x3ea   : > { %v1298_v52 = vadd.f32 %v1297_v51, %v5102_v17 }
 0x3ec   : > { %v1300_v53 = vsel %vm1212_vm1, %v1298_v52, -inf }
 0x3ed   : > { %1301 = vmax.xlane.f32.xlu2 %v1300_v53  ;;  %v1424_v54 = vpop.permute.xlu0 %1423 }
 0x3ee   : > { %1444 = vmatpush.msrb.mxu3 %v1424_v54 }
 0x3f5   : > { %v1565_v55 = vpop.permute.xlu0 %1564 }
 0x3fd   : > { %v1654_v56 = vpop.permute.xlu0 %1653 }
 0x3fe   : > { %3498 = vmatpush.xpose.msk.msrb.mxu1 %vm1212_vm1, %v1654_v56 }
 0x405   : > { %1312 = vrot.lane.b32.xlu2 %v5141_v38, %s4612_s3 }
 0x40d   : > { %1475 = vrot.lane.b32.xlu2 %v5087_v12, %s4619_s12 }
 0x460   : > { %v1302_v57 = vpop.xlane.xlu2 %1301 }
 0x461   : > { %v1303_v58 = vsub.f32 %v1298_v52, %v1302_v57 }
 0x463   : > { %v1304_v59 = vmul.f32 1.442695, %v1303_v58 }
 0x465   : > { %3851 = vpow2.f32 %v1304_v59 }
 0x466   : > { %3853 = vpow2.f32 %v1416_v0 }
 0x468   : > { %v1313_v60 = vpop.permute.xlu2 %1312 }
 0x469   : > { %1333 = vmatpush.msrb.mxu2 %v1313_v60 }
 0x46b   : > { %v3852_v61 = vpop.eup %3851  ;;  %1379 = vmatpush.msra.mxu2 %v1201_v3 }
 0x46c   : > { %v1306_v62 = vsel %vm1212_vm1, %v3852_v61, 0.0  ;;  %v3854_v1 = vpop.eup %3853 }
 0x46d   : > { %1307 = vadd.xlane.f32.xlu1 %v1306_v62  ;;  %v1418_v2 = vsel %vm1212_vm1, %v3854_v1, 0.0 }
 0x470   : > { %v1476_v7 = vpop.permute.xlu2 %1475 }
 0x486   : > { %1473 = vrot.lane.b32.xlu1 %v5092_v13, %s4620_s16 }
 0x4b0   : > { %1419 = vadd.xlane.f32.xlu1 %v1418_v2 }
 0x4c9   : > { %1562 = vrot.lane.b32.xlu1 %v5092_v13, %s4621_s29 }
 0x4e0   : > { %v1308_v4 = vpop.xlane.xlu1 %1307 }
 0x4e1   : > { %3855 = vrcp.f32 %v1308_v4 }
 0x4e7   : > { %v3856_v5 = vpop.eup %3855 }
 0x4e8   : > { %v1310_v6 = vmul.f32 %v3856_v5, %v3852_v61 }
 0x4ea   : > { %3483 = vmatmul.msk.f32.vlgmr.msrb.gmra.mxu2 %vm1212_vm1, %v1310_v6 }
 0x4eb   : > { %3490 = vmatpush.xpose.msk.msrb.mxu2 %vm1212_vm1, %v1476_v7 }
 0x4f2   : > { %3485 = vmatmul.msk.f32.vlgmr.msra.gmra.mxu2 %vm1212_vm1, %v1269_v49  ;;  %v1205_v49 = vld [vmem:[%s5684_s23 + $0x20] sm:$0xff] }
 0x4f8   : > { %v1474_v9 = vpop.permute.xlu1 %1473 }
 0x4fa   : > { %3491 = vmatmul.msk.f32.vlgmr.msrb.gmra.mxu2 %vm1212_vm1, %v1474_v9 }
 0x523   : > { %v1420_v10 = vpop.xlane.xlu1 %1419 }
 0x524   : > { %3857 = vrcp.f32 %v1420_v10 }
 0x52a   : > { %v3858_v15 = vpop.eup %3857 }
 0x52b   : > { %v1422_v18 = vmul.f32 %v3858_v15, %v3854_v1  ;;  %v1206_v1 = vld [vmem:[%s5684_s23 + $0x28] sm:$0xff] }
 0x53b   : > { %v1563_v30 = vpop.permute.xlu1 %1562 }
 0x56d   : > { %v1335_v14 = vpop.f32.mrf.mxu2 }
 0x56e   : > { %3484 = vmatmul.msk.f32.vlgmr.msra.gmra.mxu3 %vm1212_vm1, %v1335_v14 }
 0x56f   : > { %1467 = vmatpush.msra.mxu3 %v1203_v11 }
 0x575   : > { %v1381_v19 = vpop.f32.mrf.mxu2 }
 0x576   : > { %3488 = vmatmul.msk.f32.vlgmr.msrb.gmra.mxu3 %vm1212_vm1, %v1422_v18 }
 0x577   : > { %3494 = vmatpush.xpose.msk.msrb.mxu3 %vm1212_vm1, %v1565_v55 }
 0x57d   : > { %v1498_v20 = vpop.f32.mrf.mxu2 }
 0x57e   : > { %v1499_v21 = vadd.f32 %v1498_v20, %v5102_v17 }
 0x580   : > { %v1501_v22 = vsel %vm1212_vm1, %v1499_v21, -inf }
 0x581   : > { %1502 = vmax.xlane.f32.xlu2 %v1501_v22 }
 0x5f1   : > { %v1358_v23 = vpop.f32.mrf.mxu3 }
 0x5f2   : > { %v1382_v33 = vadd.f32 %v1381_v19, %v1358_v23 }
 0x5f4   : > { %v1503_v24 = vpop.xlane.xlu2 %1502 }
 0x5f5   : > { %v1504_v25 = vsub.f32 %v1499_v21, %v1503_v24 }
 0x5f7   : > { %v1505_v26 = vmul.f32 1.442695, %v1504_v25 }
 0x5f9   : > { %3859 = vpow2.f32 %v1505_v26  ;;  %v1446_v27 = vpop.f32.mrf.mxu3 }
 0x5fa   : > { %3489 = vmatmul.msk.f32.vlgmr.msra.gmra.mxu3 %vm1212_vm1, %v1446_v27 }
 0x5ff   : > { %v3860_v28 = vpop.eup %3859 }
 0x600   : > { %v1507_v29 = vsel %vm1212_vm1, %v3860_v28, 0.0 }
 0x601   : > { %1508 = vadd.xlane.f32.xlu2 %v1507_v29 }
 0x602   : > { %3495 = vmatmul.msk.f32.vlgmr.msrb.gmra.mxu3 %vm1212_vm1, %v1563_v30 }
 0x619   : > { %1512 = vrot.lane.b32.xlu2 %v5141_v38, %s4620_s16 }
 0x621   : > { %1651 = vrot.lane.b32.xlu2 %v5092_v13, %s4622_s24 }
 0x674   : > { %v1509_v31 = vpop.xlane.xlu2 %1508 }
 0x675   : > { %3861 = vrcp.f32 %v1509_v31 }
 0x67b   : > { %v3862_v32 = vpop.eup %3861 }
 0x67c   : > { %v1513_v34 = vpop.permute.xlu2 %1512  ;;  %v1511_v35 = vmul.f32 %v3862_v32, %v3860_v28 }
 0x67d   : > { %v1469_v36 = vpop.f32.mrf.mxu3  ;;  %1533 = vmatpush.msrb.mxu0 %v1513_v34 }
 0x67e   : > { %v1472_v37 = vadd.f32 %v1469_v36, %v1382_v33  ;;  %3492 = vmatmul.msk.f32.vlgmr.msrb.gmra.mxu0 %vm1212_vm1, %v1511_v35 }
 0x67f   : > { %1645 = vmatpush.msra.mxu0 %v1205_v49 }
 0x684   : > { %v1652_v46 = vpop.permute.xlu2 %1651 }
 0x685   : > { %v1587_v39 = vpop.f32.mrf.mxu3 }
 0x686   : > { %v1588_v40 = vadd.f32 %v1587_v39, %v5102_v17 }
 0x688   : > { %v1590_v41 = vsel %vm1212_vm1, %v1588_v40, -inf }
 0x689   : > { %1591 = vmax.xlane.f32.xlu0 %v1590_v41 }
 0x6fb   : > { %v1535_v42 = vpop.f32.mrf.mxu0 }
 0x6fc   : > { %3493 = vmatmul.msk.f32.vlgmr.msra.gmra.mxu1 %vm1212_vm1, %v1535_v42  ;;  %v1592_v43 = vpop.xlane.xlu0 %1591 }
 0x6fd   : > { %v1593_v44 = vsub.f32 %v1588_v40, %v1592_v43  ;;  %v1208_v43 = vld [vmem:[%s5684_s23 + $0x38] sm:$0xff] }
 0x6ff   : > { %v1594_v45 = vmul.f32 1.442695, %v1593_v44 }
 0x701   : > { %3863 = vpow2.f32 %v1594_v45 }
 0x704   : > { %3499 = vmatmul.msk.f32.vlgmr.msrb.gmra.mxu1 %vm1212_vm1, %v1652_v46 }
 0x707   : > { %v3864_v47 = vpop.eup %3863 }
 0x708   : > { %v1596_v48 = vsel %vm1212_vm1, %v3864_v47, 0.0 }
 0x709   : > { %1597 = vadd.xlane.f32.xlu1 %v1596_v48 }
 0x722   : > { %1742 = vrot.lane.b32.xlu1 %v5087_v12, %s5603_s0 }
 0x779   : > { %v1558_v50 = vpop.f32.mrf.mxu1 }
 0x77a   : > { %v1561_v51 = vadd.f32 %v1558_v50, %v1472_v37 }
 0x77c   : > { %v1598_v55 = vpop.xlane.xlu1 %1597 }
 0x77d   : > { %3865 = vrcp.f32 %v1598_v55  ;;  %v2003_v55 = vld [vmem:[#allocation16 + $0x28] sm:$0xff] }
 0x781   : > { %v1676_v52 = vpop.f32.mrf.mxu1 }
 0x782   : > { %v1677_v53 = vadd.f32 %v1676_v52, %v5102_v17  ;;  %v4627_v52 = vmov 64.0  }
 0x783   : > { %v3866_v60 = vpop.eup %3865 }
 0x784   : > { %v1679_v54 = vsel %vm1212_vm1, %v1677_v53, -inf  ;;  %v1600_v61 = vmul.f32 %v3866_v60, %v3864_v47  ;;  %v3835_v47 = vld [vmem:[#allocation8] ss:$0 sm:$0xff]  ;;  %v2000_v60 = vld [vmem:[#allocation16 + $0x10] sm:$0xff] }
 0x785   : > { %1680 = vmax.xlane.f32.xlu2 %v1679_v54  ;;  %v2004_v54 = vld [vmem:[#allocation16 + $0x30] sm:$0xff] }
 0x794   : > { %v1743_v56 = vpop.permute.xlu1 %1742 }
 0x795   : > { %3502 = vmatpush.xpose.msk.msrb.mxu0 %vm1212_vm1, %v1743_v56 }
 0x79d   : > { %1601 = vrot.lane.b32.xlu2 %v5141_v38, %s4621_s29 }
 0x7a5   : > { %1740 = vrot.lane.b32.xlu2 %v5092_v13, %s4624_s7 }
 0x7f8   : > { %v1681_v57 = vpop.xlane.xlu2 %1680 }
 0x7f9   : > { %v1682_v58 = vsub.f32 %v1677_v53, %v1681_v57  ;;  %v2005_v53 = vld [vmem:[#allocation16 + $0x38] sm:$0xff]  ;;  %v2002_v57 = vld [vmem:[#allocation16 + $0x20] sm:$0xff] }
 0x7fb   : > { %v1683_v59 = vmul.f32 1.442695, %v1682_v58 }
 0x7fd   : > { %3867 = vpow2.f32 %v1683_v59  ;;  %v2001_v59 = vld [vmem:[#allocation16 + $0x18] sm:$0xff] }
 0x800   : > { %v1602_v62 = vpop.permute.xlu2 %1601 }
 0x801   : > { %1622 = vmatpush.msra.mxu2 %v1602_v62  ;;  %v1999_v62 = vld [vmem:[#allocation16 + $0x8] sm:$0xff] }
 0x802   : > { %3496 = vmatmul.msk.f32.vlgmr.msra.gmra.mxu2 %vm1212_vm1, %v1600_v61 }
 0x803   : > { %v3868_v63 = vpop.eup %3867  ;;  %1734 = vmatpush.msrb.mxu2 %v1206_v1 }
 0x804   : > { %v1685_v0 = vsel %vm1212_vm1, %v3868_v63, 0.0 }
 0x805   : > { %1686 = vadd.xlane.f32.xlu0 %v1685_v0  ;;  %v1129_v0 = vld [vmem:[%s4998_s1] sm:$0xff] }
 0x808   : > { %v1741_v7 = vpop.permute.xlu2 %1740 }
 0x819   : > { %1690 = vrot.lane.b32.xlu0 %v5141_v38, %s4622_s24 }
 0x821   : > { %1831 = vrot.lane.b32.xlu0 %v5087_v12, %s5606_s14 }
 0x829   : > { %1829 = vrot.lane.b32.xlu0 %v5092_v13, %s5607_s21 }
 0x878   : > { %v1687_v2 = vpop.xlane.xlu0 %1686 }
 0x879   : > { %3869 = vrcp.f32 %v1687_v2 }
 0x87f   : > { %v3870_v4 = vpop.eup %3869 }
 0x880   : > { %v1689_v5 = vmul.f32 %v3870_v4, %v3868_v63  ;;  %v1998_v63 = vld [vmem:[#allocation16] sm:$0xff] }
 0x885   : > { %v1624_v3 = vpop.f32.mrf.mxu2 }
 0x886   : > { %3497 = vmatmul.msk.f32.vlgmr.msra.gmra.mxu0 %vm1212_vm1, %v1624_v3  ;;  %v1130_v3 = vld [vmem:[%s4998_s1 + $0x8] sm:$0xff] }
 0x88b   : > { %v1691_v6 = vpop.permute.xlu0 %1690 }
 0x88c   : > { %1711 = vmatpush.msra.mxu3 %v1691_v6 }
 0x88d   : > { %3500 = vmatmul.msk.f32.vlgmr.msra.gmra.mxu3 %vm1212_vm1, %v1689_v5 }
 0x88e   : > { %3503 = vmatmul.msk.f32.vlgmr.msrb.gmra.mxu0 %vm1212_vm1, %v1741_v7 }
 0x893   : > { %v1832_v12 = vpop.permute.xlu0 %1831 }
 0x894   : > { %3506 = vmatpush.xpose.msk.msra.mxu2 %vm1212_vm1, %v1832_v12 }
 0x89b   : > { %v1830_v18 = vpop.permute.xlu0 %1829 }
 0x903   : > { %v1647_v13 = vpop.f32.mrf.mxu0 }
 0x904   : > { %v1650_v9 = vadd.f32 %v1647_v13, %v1561_v51 }
 0x90b   : > { %v1765_v10 = vpop.f32.mrf.mxu0 }
 0x90c   : > { %v1766_v11 = vadd.f32 %v1765_v10, %v5102_v17  ;;  %v1969_v10 = vld [vmem:[#allocation13 + $0x30] sm:$0xff] }
 0x90e   : > { %v1768_v14 = vsel %vm1212_vm1, %v1766_v11, -inf }
 0x90f   : > { %1769 = vmax.xlane.f32.xlu1 %v1768_v14  ;;  %v1967_v14 = vld [vmem:[#allocation13 + $0x20] sm:$0xff] }
 0x910   : > { %v1713_v15 = vpop.f32.mrf.mxu3 }
 0x911   : > { %3501 = vmatmul.msk.f32.vlgmr.msrb.gmra.mxu2 %vm1212_vm1, %v1713_v15  ;;  %v1966_v15 = vld [vmem:[#allocation13 + $0x18] sm:$0xff] }
 0x912   : > { %2024 = vmatpush.msrb.mxu2 %v2005_v53 }
 0x914   : > { %2025 = vmatpush.msrb.mxu2 %v2004_v54 }
 0x916   : > { %2026 = vmatpush.msrb.mxu2 %v2003_v55 }
 0x918   : > { %2027 = vmatpush.msrb.mxu2 %v2002_v57 }
 0x919   : > { %3507 = vmatmul.msk.f32.vlgmr.msra.gmra.mxu2 %vm1212_vm1, %v1830_v18  ;;  %v1965_v18 = vld [vmem:[#allocation13 + $0x10] sm:$0xff] }
 0x91a   : > { %2028 = vmatpush.msrb.mxu2 %v2001_v59 }
 0x91c   : > { %2029 = vmatpush.msrb.mxu2 %v2000_v60 }
 0x91e   : > { %2030 = vmatpush.msrb.mxu2 %v1999_v62 }
 0x920   : > { %2031 = vmatpush.msrb.mxu2 %v1998_v63 }
 0x921   : > { %3511 = vmatmul.msk.f32.vlgmr.msrb.gmra.mxu2 %vm1153_vm0, %v1129_v0 }
 0x929   : > { %3512 = vmatmul.msk.f32.gmra.mxu2 %vm1153_vm0, %v1130_v3 }
 0x982   : > { %v1770_v19 = vpop.xlane.xlu1 %1769 }
 0x983   : > { %v1771_v20 = vsub.f32 %v1766_v11, %v1770_v19  ;;  %v1968_v11 = vld [vmem:[#allocation13 + $0x28] sm:$0xff] }
 0x984   : > { %v1964_v19 = vld [vmem:[#allocation13 + $0x8] sm:$0xff] }
 0x985   : > { %v1772_v21 = vmul.f32 1.442695, %v1771_v20  ;;  %v1963_v20 = vld [vmem:[#allocation13] sm:$0xff] }
 0x987   : > { %3871 = vpow2.f32 %v1772_v21  ;;  %v3838_v21 = vld [vmem:[#allocation17] ss:$0 sm:$0xff] }
 0x98d   : > { %v3872_v22 = vpop.eup %3871 }
 0x98e   : > { %v1774_v23 = vsel %vm1212_vm1, %v3872_v22, 0.0 }
 0x98f   : > { %1775 = vadd.xlane.f32.xlu0 %v1774_v23 }
 0x994   : > { %v1736_v24 = vpop.f32.mrf.mxu2 }
 0x995   : > { %v1739_v25 = vadd.f32 %v1736_v24, %v1650_v9  ;;  %v1970_v9 = vld [vmem:[#allocation13 + $0x38] sm:$0xff] }
 0x99c   : > { %v1854_v26 = vpop.f32.mrf.mxu2 }
 0x99d   : > { %v1855_v27 = vadd.f32 %v1854_v26, %v5102_v17 }
 0x99f   : > { %v1857_v28 = vsel %vm1212_vm1, %v1855_v27, -inf }
 0x9a0   : > { %1858 = vmax.xlane.f32.xlu2 %v1857_v28 }
 0x9a3   : > { %1868 = vrot.lane.b32.xlu0 %v5141_v38, %s5607_s21 }
 0x9a4   : > { %v2033_v23 = vpop.f32.mrf.mxu2 }
 0x9b8   : > { %1779 = vrot.lane.b32.xlu2 %v5141_v38, %s4624_s7  ;;  %v1207_v38 = vld [vmem:[%s5684_s23 + $0x30] sm:$0xff] }
 0x9b9   : > { %1823 = vmatpush.msrb.mxu3 %v1207_v38 }
 0x9bb   : > { %1986 = vmatpush.msra.mxu3 %v1970_v9 }
 0x9bd   : > { %1987 = vmatpush.msra.mxu3 %v1969_v10 }
 0x9bf   : > { %1988 = vmatpush.msra.mxu3 %v1968_v11 }
 0x9c1   : > { %1989 = vmatpush.msra.mxu3 %v1967_v14 }
 0x9c3   : > { %1990 = vmatpush.msra.mxu3 %v1966_v15 }
 0x9c5   : > { %1991 = vmatpush.msra.mxu3 %v1965_v18 }
 0x9c7   : > { %1992 = vmatpush.msra.mxu3 %v1964_v19 }
 0x9c9   : > { %1993 = vmatpush.msra.mxu3 %v1963_v20 }
 0xa02   : > { %v1776_v29 = vpop.xlane.xlu0 %1775 }
 0xa03   : > { %3873 = vrcp.f32 %v1776_v29 }
 0xa09   : > { %v3874_v34 = vpop.eup %3873 }
 0xa0a   : > { %v1778_v35 = vmul.f32 %v3874_v34, %v3872_v22 }
 0xa13   : > { %v1859_v30 = vpop.xlane.xlu2 %1858 }
 0xa14   : > { %v1860_v31 = vsub.f32 %v1855_v27, %v1859_v30  ;;  %v2036_v27 = vpop.f32.mrf.mxu2 }
 0xa15   : > { %v1869_v32 = vpop.permute.xlu0 %1868  ;;  %v5265_v28 = vadd.f32 %v3838_v21, %v2036_v27 }
 0xa16   : > { %v1861_v33 = vmul.f32 1.442695, %v1860_v31  ;;  %1889 = vmatpush.msra.mxu0 %v1869_v32 }
 0xa18   : > { %3875 = vpow2.f32 %v1861_v33  ;;  %3513 = vmatpush.xpose.msk.msrb.mxu0 %vm1212_vm1, %v5265_v28 }
 0xa1b   : > { %v1780_v17 = vpop.permute.xlu2 %1779 }
 0xa1c   : > { %1800 = vmatpush.msra.mxu1 %v1780_v17  ;;  %v3836_v17 = vld [vmem:[#allocation10] ss:$0 sm:$0xff] }
 0xa1d   : > { %3504 = vmatmul.msk.f32.vlgmr.msra.gmra.mxu1 %vm1212_vm1, %v1778_v35 }
 0xa1e   : > { %v3876_v36 = vpop.eup %3875  ;;  %1912 = vmatpush.msrb.mxu1 %v1208_v43 }
 0xa1f   : > { %v1863_v37 = vsel %vm1212_vm1, %v3876_v36, 0.0 }
 0xa20   : > { %1864 = vadd.xlane.f32.xlu1 %v1863_v37  ;;  %v3837_v37 = vld [vmem:[#allocation11] ss:$0 sm:$0xff] }
 0xa93   : > { %v1865_v39 = vpop.xlane.xlu1 %1864 }
 0xa94   : > { %3877 = vrcp.f32 %v1865_v39 }
 0xa95   : > { %3879 = vrcp.f32 %v4627_v52 }
 0xa9a   : > { %v3878_v40 = vpop.eup %3877  ;;  %v1802_v41 = vpop.f32.mrf.mxu1 }
 0xa9b   : > { %v1867_v42 = vmul.f32 %v3878_v40, %v3876_v36  ;;  %3505 = vmatmul.msk.f32.vlgmr.msrb.gmra.mxu3 %vm1212_vm1, %v1802_v41  ;;  %v3880_v56 = vpop.eup %3879 }
 0xa9c   : > { %v1929_v58 = vmul.f32 64.0, %v3880_v56  ;;  %vm1933_vm3 = vweird.f32 %v3880_v56 }
 0xa9d   : > { %3508 = vmatmul.msk.f32.vlgmr.msra.gmra.mxu0 %vm1212_vm1, %v1867_v42 }
 0xa9e   : > { %v1930_v61 = vsub.f32 1.0, %v1929_v58 }
 0xaa0   : > { %v1931_v1 = vmul.f32 %v3880_v56, %v1930_v61 }
 0xaa2   : > { %v1932_v2 = vadd.f32 %v3880_v56, %v1931_v1 }
 0xaa4   : > { %v5255_v4 = vsel %vm1933_vm3, %v3880_v56, %v1932_v2  ;;  %v2043_v56 = vld [vmem:[#allocation19] sm:$0xff] }
 0xb1a   : > { %v1891_v44 = vpop.f32.mrf.mxu0 }
 0xb1b   : > { %3509 = vmatmul.msk.f32.vlgmr.msrb.gmra.mxu1 %vm1212_vm1, %v1891_v44 }
 0xb1e   : > { %v1825_v45 = vpop.f32.mrf.mxu3 }
 0xb1f   : > { %v1828_v46 = vadd.f32 %v1825_v45, %v1739_v25  ;;  %v5261_v25 = vadd.f32 %v3838_v21, %v2033_v23 }
 0xb21   : > { %2137 = vrot.lane.b32.xlu2 %v5261_v25, %s4612_s3  ;;  %3514 = vmatpush.xpose.msk.msrb.mxu0 %vm1212_vm1, %v5261_v25  ;;  %v5275_v32 = vpack.i.bf16 %v5261_v25, %v5265_v28 }
 0xb7b   : > { %v2138_v43 = vpop.permute.xlu2 %2137 }
 0xb98   : > { %v1914_v48 = vpop.f32.mrf.mxu1 }
 0xb99   : > { %v1917_v49 = vadd.f32 %v1914_v48, %v1828_v46 }
 0xb9b   : > { %v1922_v50 = vadd.f32 %v3835_v47, %v1917_v49  ;;  %v3839_v47 = vld [vmem:[#allocation14] ss:$0 sm:$0xff] }
 0xb9d   : > { %v1925_v51 = vsel %vm1153_vm0, %v1922_v50, 0.0 }
 0xb9e   : > { %1926 = vadd.xlane.f32.xlu1 %v1925_v51  ;;  %v2040_v51 = vld [vmem:[%s954_s10] sm:$0xff] }
 0xb9f   : > { %vm2041_vm7 = vcmp.eq.f32.partialorder %v2040_v51, 0.0 }
 0xba0   : > { %v5296_v52 = vsel %vm2041_vm7, -65500.0, %v4613_v16 }
 0xc11   : > { %v1927_v5 = vpop.xlane.xlu1 %1926 }
 0xc12   : > { %v1935_v6 = vmul.f32 %v5255_v4, %v1927_v5 }
 0xc14   : > { %v1936_v7 = vsub.f32 %v1922_v50, %v1935_v6 }
 0xc16   : > { %v1937_v12 = vmul.f32 %v1936_v7, %v1936_v7 }
 0xc18   : > { %v1938_v13 = vsel %vm1153_vm0, %v1937_v12, 0.0 }
 0xc19   : > { %1939 = vadd.xlane.f32.xlu1 %v1938_v13 }
 0xc32   : > { %2139 = vrot.lane.b32.xlu1 %v5265_v28, %s4612_s3 }
 0xc3a   : > { %3796 = vrot.lane.b32.xlu1 %v5275_v32, %s4611_s22 }
 0xc8c   : > { %v1940_v22 = vpop.xlane.xlu1 %1939 }
 0xc8d   : > { %v1941_v24 = vmul.f32 %v1940_v22, %v5255_v4 }
 0xc8f   : > { %v1942_v26 = vadd.f32 1e-05, %v1941_v24 }
 0xc91   : > { %3881 = vrsqrt.f32 %v1942_v26  ;;  %vm1949_vm5 = vweird.f32 %v1942_v26 }
 0xc97   : > { %v3882_v29 = vpop.eup %3881 }
 0xc98   : > { %v1944_v30 = vmul.f32 %v3882_v29, %v1942_v26  ;;  %vm1950_vm4 = vweird.f32 %v3882_v29 }
 0xc99   : > { %vm1951_vm6 = vmor %vm1949_vm5, %vm1950_vm4 }
 0xc9a   : > { %v1945_v31 = vmul.f32 %v3882_v29, %v1944_v30 }
 0xc9c   : > { %v1946_v33 = vmul.f32 0.5, %v1945_v31 }
 0xc9e   : > { %v1947_v34 = vsub.f32 1.5, %v1946_v33 }
 0xca0   : > { %v1948_v35 = vmul.f32 %v3882_v29, %v1947_v34 }
 0xca2   : > { %v1952_v36 = vsel %vm1951_vm6, %v3882_v29, %v1948_v35 }
 0xca3   : > { %v1953_v38 = vmul.f32 %v1952_v36, %v1936_v7 }
 0xca4   : > { %v2140_v42 = vpop.permute.xlu1 %2139 }
 0xca5   : > { %v1957_v39 = vmul.f32 %v3836_v17, %v1953_v38  ;;  %3517 = vmatpush.xpose.msk.msra.mxu0 %vm1212_vm1, %v2140_v42 }
 0xca7   : > { %v1961_v40 = vadd.f32 %v3837_v37, %v1957_v39 }
 0xca9   : > { %v5280_v41 = vadd.f32 %v1961_v40, %v5080_v8  ;;  %3518 = vmatpush.xpose.msk.msra.mxu0 %vm1212_vm1, %v2138_v43 }
 0xcab   : > { %3510 = vmatmul.msk.f32.vlgmr.msra.gmra.mxu3 %vm1153_vm0, %v5280_v41 }
 0xcac   : > { %v3797_v44 = vpop.permute.xlu1 %3796 }
 0xcad   : > { %v3799_v45 = vunpack.i.h.bf16 %v3797_v44  ;;  %v3798_v46 = vunpack.i.l.bf16 %v3797_v44 }
 0xcaf   : > { %2129 = vmatpush.msra.mxu1 %v3798_v46  ;;  %v2044_v46 = vld [vmem:[#allocation19 + $0x8] sm:$0xff] }
 0xcb0   : > { %2243 = vmatpush.msrb.mxu3 %v2044_v46 }
 0xcb1   : > { %2130 = vmatpush.msra.mxu1 %v3799_v45 }
 0xd2e   : > { %v1995_v48 = vpop.f32.mrf.mxu3 }
 0xd2f   : > { %v1996_v49 = vadd.f32 %v3839_v47, %v1995_v48 }
 0xd31   : > { %v5286_v8 = vmul.f32 0.35355338, %v1996_v49 }
 0xd33   : > { %2135 = vrot.lane.b32.xlu0 %v5286_v8, %s4612_s3  ;;  %3515 = vmatmul.msk.f32.vlgmr.msrb.gmra.mxu0 %vm1212_vm1, %v5286_v8  ;;  %s5685_s3 = sld [smem:[#allocation73_spill]] }
 0xd34   : > { %2266 = vmatpush.msrb.mxu0 %v2043_v56 }
 0xda5   : > { %v2136_v50 = vpop.permute.xlu0 %2135 }
 0xda6   : > { %3519 = vmatmul.msk.f32.vlgmr.msra.gmra.mxu0 %vm1212_vm1, %v2136_v50 }
 0xdb0   : > { %v2077_v53 = vpop.f32.mrf.mxu0 }
 0xdb1   : > { %v2078_v54 = vadd.f32 %v2077_v53, %v5296_v52 }
 0xdb3   : > { %v2081_v55 = vsel %vm2080_vm8, %v2078_v54, -inf }
 0xdb4   : > { %2082 = vmax.xlane.f32.xlu2 %v2081_v55 }
 0xdcc   : > { %2275 = vrot.lane.b32.xlu2 %v5265_v28, %s4615_s19 }
 0xdd4   : > { %2389 = vrot.lane.b32.xlu2 %v5265_v28, %s4620_s16 }
 0xe23   : > { %v2164_v57 = vpop.f32.mrf.mxu0 }
 0xe24   : > { %v2165_v58 = vadd.f32 %v2164_v57, %v5296_v52 }
 0xe26   : > { %v2167_v16 = vsel %vm2080_vm8, %v2165_v58, -inf }
 0xe27   : > { %v2083_v59 = vpop.xlane.xlu2 %2082  ;;  %2168 = vmax.xlane.f32.xlu1 %v2167_v16 }
 0xe28   : > { %v2084_v60 = vsub.f32 %v2078_v54, %v2083_v59 }
 0xe2a   : > { %v2085_v61 = vmul.f32 1.442695, %v2084_v60 }
 0xe2c   : > { %3883 = vpow2.f32 %v2085_v61 }
 0xe2f   : > { %v2276_v62 = vpop.permute.xlu2 %2275 }
 0xe32   : > { %v3884_v63 = vpop.eup %3883 }
 0xe33   : > { %v2087_v0 = vsel %vm2080_vm8, %v3884_v63, 0.0 }
 0xe34   : > { %2088 = vadd.xlane.f32.xlu0 %v2087_v0 }
 0xe37   : > { %v2390_v1 = vpop.permute.xlu2 %2389 }
 0xe38   : > { %3528 = vmatpush.xpose.msk.msra.mxu0 %vm1212_vm1, %v2390_v1 }
 0xe40   : > { %2271 = vrot.lane.b32.xlu1 %v5286_v8, %s4615_s19 }
 0xe48   : > { %3801 = vrot.lane.b32.xlu0 %v5275_v32, %s4616_s4  ;;  %s5322_s4 = scalar_lea.vmem %s5685_s3, %s3474_s28  ;;  %s5687_s28 = smov 24  }
 0xe50   : > { %2273 = vrot.lane.b32.xlu0 %v5261_v25, %s4615_s19 }
 0xe58   : > { %2387 = vrot.lane.b32.xlu0 %v5261_v25, %s4620_s16 }
 0xe9a   : > { %v2169_v2 = vpop.xlane.xlu1 %2168 }
 0xe9b   : > { %v2170_v3 = vsub.f32 %v2165_v58, %v2169_v2 }
 0xe9d   : > { %v2171_v5 = vmul.f32 1.442695, %v2170_v3 }
 0xe9f   : > { %3885 = vpow2.f32 %v2171_v5  ;;  %v2045_v5 = vld [vmem:[#allocation19 + $0x10] sm:$0xff] }
 0xea0   : > { %2379 = vmatpush.msra.mxu2 %v2045_v5 }
 0xea5   : > { %v3886_v6 = vpop.eup %3885 }
 0xea6   : > { %v2173_v7 = vsel %vm2080_vm8, %v3886_v6, 0.0 }
 0xea7   : > { %v2089_v12 = vpop.xlane.xlu0 %2088  ;;  %2174 = vadd.xlane.f32.xlu2 %v2173_v7  ;;  %v2046_v7 = vld [vmem:[#allocation19 + $0x18] sm:$0xff] }
 0xea8   : > { %3887 = vrcp.f32 %v2089_v12  ;;  %v2101_v11 = vand.u32 2147483648, %v2089_v12  ;;  %v2099_v15 = vand.u32 2147483647, %v2089_v12  ;;  %vm2095_vm10 = vweird.f32 %v2089_v12 }
 0xeaa   : > { %v2102_v19 = vor.u32 1.1754944e-38, %v2101_v11  ;;  %vm2100_vm12 = vcmp.eq.f32.partialorder %v2099_v15, 8.507059e+37 }
 0xeae   : > { %v3888_v13 = vpop.eup %3887 }
 0xeaf   : > { %v2091_v9 = vmul.f32 %v3888_v13, %v2089_v12  ;;  %vm2096_vm9 = vweird.f32 %v3888_v13 }
 0xeb0   : > { %vm2097_vm11 = vmor %vm2095_vm10, %vm2096_vm9 }
 0xeb1   : > { %v2092_v10 = vsub.f32 1.0, %v2091_v9 }
 0xeb2   : > { %v2272_v43 = vpop.permute.xlu1 %2271 }
 0xeb3   : > { %v2093_v14 = vmul.f32 %v3888_v13, %v2092_v10 }
 0xeb5   : > { %v2094_v18 = vadd.f32 %v3888_v13, %v2093_v14 }
 0xeb7   : > { %v2098_v20 = vsel %vm2097_vm11, %v3888_v13, %v2094_v18 }
 0xeb8   : > { %v2103_v21 = vsel %vm2100_vm12, %v2102_v19, %v2098_v20 }
 0xeb9   : > { %v2104_v22 = vmul.f32 %v3884_v63, %v2103_v21 }
 0xeba   : > { %v3802_v23 = vpop.permute.xlu0 %3801 }
 0xebb   : > { %v3803_v24 = vunpack.i.l.bf16 %v3802_v23  ;;  %3516 = vmatmul.msk.f32.vlgmr.msra.gmra.mxu1 %vm2080_vm8, %v2104_v22  ;;  %2105 = vst.msk [vmem:[%s5322_s4] sm:$0xff] %vm2080_vm8, %v2104_v22  ;;  %v3804_v26 = vunpack.i.h.bf16 %v3802_v23 }
 0xebd   : > { %2219 = vmatpush.msrb.mxu1 %v3803_v24 }
 0xebf   : > { %2385 = vrot.lane.b32.xlu2 %v5286_v8, %s4620_s16  ;;  %2220 = vmatpush.msrb.mxu1 %v3804_v26  ;;  %s1113_s16 = scalar_lea.vmem [#allocation32], %s5006_s9 }
 0xec1   : > { %3523 = vmatpush.xpose.msk.msra.mxu1 %vm1212_vm1, %v2276_v62 }
 0xec2   : > { %v2274_v27 = vpop.permute.xlu0 %2273 }
 0xec5   : > { %3524 = vmatpush.xpose.msk.msra.mxu1 %vm1212_vm1, %v2274_v27 }
 0xeca   : > { %v2388_v29 = vpop.permute.xlu0 %2387 }
 0xecb   : > { %3529 = vmatpush.xpose.msk.msra.mxu0 %vm1212_vm1, %v2388_v29 }
 0xf1a   : > { %v2175_v30 = vpop.xlane.xlu2 %2174 }
 0xf1b   : > { %3889 = vrcp.f32 %v2175_v30  ;;  %v2187_v35 = vand.u32 2147483648, %v2175_v30  ;;  %v2185_v36 = vand.u32 2147483647, %v2175_v30  ;;  %vm2181_vm14 = vweird.f32 %v2175_v30 }
 0xf1d   : > { %v2188_v38 = vor.u32 1.1754944e-38, %v2187_v35  ;;  %vm2186_vm2 = vcmp.eq.f32.partialorder %v2185_v36, 8.507059e+37 }
 0xf21   : > { %v3890_v31 = vpop.eup %3889 }
 0xf22   : > { %v2177_v33 = vmul.f32 %v3890_v31, %v2175_v30  ;;  %vm2182_vm13 = vweird.f32 %v3890_v31  ;;  %v2386_v45 = vpop.permute.xlu2 %2385 }
 0xf23   : > { %vm2183_vm15 = vmor %vm2181_vm14, %vm2182_vm13 }
 0xf24   : > { %v2178_v34 = vsub.f32 1.0, %v2177_v33 }
 0xf26   : > { %v2179_v17 = vmul.f32 %v3890_v31, %v2178_v34 }
 0xf28   : > { %v2180_v37 = vadd.f32 %v3890_v31, %v2179_v17 }
 0xf2a   : > { %v2184_v39 = vsel %vm2183_vm15, %v3890_v31, %v2180_v37 }
 0xf2b   : > { %v2189_v40 = vsel %vm2186_vm2, %v2188_v38, %v2184_v39 }
 0xf2c   : > { %v5332_v42 = vmul.f32 %v3886_v6, %v2189_v40 }
 0xf2e   : > { %3520 = vmatmul.msk.f32.vlgmr.msrb.gmra.mxu1 %vm2080_vm8, %v5332_v42 }
 0xf36   : > { %3525 = vmatmul.msk.f32.vlgmr.msra.gmra.mxu1 %vm1212_vm1, %v2272_v43 }
 0xf38   : > { %v2132_v44 = vpop.f32.mrf.mxu1 }
 0xf39   : > { %3522 = vmatmul.msk.f32.vlgmr.msrb.gmra.mxu0 %vm1212_vm1, %v2132_v44 }
 0xf41   : > { %3530 = vmatmul.msk.f32.vlgmr.msra.gmra.mxu0 %vm1212_vm1, %v2386_v45 }
 0xfab   : > { %v2222_v47 = vpop.f32.mrf.mxu1 }
 0xfac   : > { %3521 = vmatmul.msk.f32.vlgmr.msrb.gmra.mxu3 %vm1212_vm1, %v2222_v47 }
 0xfb3   : > { %v2300_v48 = vpop.f32.mrf.mxu1 }
 0xfb4   : > { %v2301_v49 = vadd.f32 %v2300_v48, %v5296_v52 }
 0xfb6   : > { %v5341_v50 = vpop.f32.mrf.mxu0  ;;  %v2303_v51 = vsel %vm2080_vm8, %v2301_v49, -inf }
 0xfb7   : > { %2304 = vmax.xlane.f32.xlu0 %v2303_v51 }
 0xfbe   : > { %v2414_v53 = vpop.f32.mrf.mxu0 }
 0xfbf   : > { %v2415_v54 = vadd.f32 %v2414_v53, %v5296_v52 }
 0xfc1   : > { %v2417_v55 = vsel %vm2080_vm8, %v2415_v54, -inf }
 0xfc2   : > { %2418 = vmax.xlane.f32.xlu2 %v2417_v55 }
 0xfda   : > { %3806 = vrot.lane.b32.xlu2 %v5275_v32, %s4614_s6 }
 0xfe2   : > { %2501 = vrot.lane.b32.xlu2 %v5261_v25, %s4621_s29 }
 0xfea   : > { %2613 = vrot.lane.b32.xlu2 %v5286_v8, %s4622_s24 }
0x102a   : > { %v2305_v56 = vpop.xlane.xlu0 %2304 }
0x102b   : > { %v2306_v57 = vsub.f32 %v2301_v49, %v2305_v56 }
0x102d   : > { %v2307_v58 = vmul.f32 1.442695, %v2306_v57 }
0x102f   : > { %3891 = vpow2.f32 %v2307_v58  ;;  %v2245_v45 = vpop.f32.mrf.mxu3 }
0x1030   : > { %v2269_v53 = vadd.f32 %v5341_v50, %v2245_v45 }
0x1035   : > { %v3892_v16 = vpop.eup %3891  ;;  %v2419_v59 = vpop.xlane.xlu2 %2418 }
0x1036   : > { %v2420_v60 = vsub.f32 %v2415_v54, %v2419_v59  ;;  %v2309_v61 = vsel %vm2080_vm8, %v3892_v16, 0.0 }
0x1037   : > { %2310 = vadd.xlane.f32.xlu1 %v2309_v61 }
0x1038   : > { %v2421_v62 = vmul.f32 1.442695, %v2420_v60 }
0x103a   : > { %3893 = vpow2.f32 %v2421_v62 }
0x103d   : > { %v3807_v63 = vpop.permute.xlu2 %3806 }
0x103e   : > { %v3808_v0 = vunpack.i.l.bf16 %v3807_v63  ;;  %v3809_v2 = vunpack.i.h.bf16 %v3807_v63 }
0x1040   : > { %v3894_v1 = vpop.eup %3893  ;;  %2355 = vmatpush.msra.mxu3 %v3808_v0 }
0x1041   : > { %v2423_v3 = vsel %vm2080_vm8, %v3894_v1, 0.0 }
0x1042   : > { %2356 = vmatpush.msra.mxu3 %v3809_v2  ;;  %2424 = vadd.xlane.f32.xlu0 %v2423_v3 }
0x1044   : > { %2493 = vmatpush.msrb.mxu3 %v2046_v7 }
0x1045   : > { %v2502_v34 = vpop.permute.xlu2 %2501 }
0x104d   : > { %v2614_v49 = vpop.permute.xlu2 %2613 }
0x1050   : > { %2503 = vrot.lane.b32.xlu1 %v5265_v28, %s4621_s29 }
0x1056   : > { %3811 = vrot.lane.b32.xlu0 %v5275_v32, %s4619_s12  ;;  %s5688_s12 = smov 16  }
0x1058   : > { %2615 = vrot.lane.b32.xlu1 %v5261_v25, %s4622_s24 }
0x105e   : > { %2617 = vrot.lane.b32.xlu0 %v5265_v28, %s4622_s24 }
0x1066   : > { %2499 = vrot.lane.b32.xlu0 %v5286_v8, %s4621_s29 }
0x10aa   : > { %v2311_v6 = vpop.xlane.xlu1 %2310 }
0x10ab   : > { %3895 = vrcp.f32 %v2311_v6  ;;  %v2323_v10 = vand.u32 2147483648, %v2311_v6  ;;  %v2321_v15 = vand.u32 2147483647, %v2311_v6  ;;  %vm2317_vm4 = vweird.f32 %v2311_v6 }
0x10ad   : > { %v2324_v19 = vor.u32 1.1754944e-38, %v2323_v10  ;;  %vm2322_vm6 = vcmp.eq.f32.partialorder %v2321_v15, 8.507059e+37  ;;  %v2048_v10 = vld [vmem:[#allocation19 + $0x28] sm:$0xff] }
0x10b1   : > { %v3896_v12 = vpop.eup %3895 }
0x10b2   : > { %v2313_v13 = vmul.f32 %v3896_v12, %v2311_v6  ;;  %vm2318_vm3 = vweird.f32 %v3896_v12 }
0x10b3   : > { %vm2319_vm5 = vmor %vm2317_vm4, %vm2318_vm3 }
0x10b4   : > { %v2314_v9 = vsub.f32 1.0, %v2313_v13 }
0x10b5   : > { %v2425_v11 = vpop.xlane.xlu0 %2424 }
0x10b6   : > { %v2315_v14 = vmul.f32 %v3896_v12, %v2314_v9  ;;  %3897 = vrcp.f32 %v2425_v11  ;;  %v2437_v31 = vand.u32 2147483648, %v2425_v11  ;;  %vm2431_vm9 = vweird.f32 %v2425_v11 }
0x10b7   : > { %v2435_v33 = vand.u32 2147483647, %v2425_v11 }
0x10b8   : > { %v2316_v18 = vadd.f32 %v3896_v12, %v2315_v14  ;;  %v2438_v17 = vor.u32 1.1754944e-38, %v2437_v31 }
0x10b9   : > { %vm2436_vm11 = vcmp.eq.f32.partialorder %v2435_v33, 8.507059e+37 }
0x10ba   : > { %v2320_v20 = vsel %vm2319_vm5, %v3896_v12, %v2316_v18 }
0x10bb   : > { %v2325_v21 = vsel %vm2322_vm6, %v2324_v19, %v2320_v20  ;;  %vm2195_vm6 = vcmask 261248  }
0x10bc   : > { %v3898_v22 = vpop.eup %3897  ;;  %v5364_v23 = vmul.f32 %v3892_v16, %v2325_v21 }
0x10bd   : > { %v2427_v24 = vmul.f32 %v3898_v22, %v2425_v11  ;;  %vm2432_vm7 = vweird.f32 %v3898_v22  ;;  %v2047_v11 = vld [vmem:[#allocation19 + $0x20] sm:$0xff] }
0x10be   : > { %3526 = vmatmul.msk.f32.vlgmr.msra.gmra.mxu3 %vm2080_vm8, %v5364_v23  ;;  %vm2433_vm10 = vmor %vm2431_vm9, %vm2432_vm7 }
0x10bf   : > { %v2428_v26 = vsub.f32 1.0, %v2427_v24 }
0x10c1   : > { %v2429_v27 = vmul.f32 %v3898_v22, %v2428_v26 }
0x10c2   : > { %v2504_v29 = vpop.permute.xlu1 %2503 }
0x10c3   : > { %v2430_v30 = vadd.f32 %v3898_v22, %v2429_v27  ;;  %3533 = vmatpush.xpose.msk.msrb.mxu2 %vm1212_vm1, %v2504_v29 }
0x10c5   : > { %v2434_v35 = vsel %vm2433_vm10, %v3898_v22, %v2430_v30 }
0x10c6   : > { %v2439_v37 = vsel %vm2436_vm11, %v2438_v17, %v2434_v35 }
0x10c7   : > { %3534 = vmatpush.xpose.msk.msrb.mxu2 %vm1212_vm1, %v2502_v34  ;;  %v5370_v40 = vmul.f32 %v3894_v1, %v2439_v37 }
0x10c8   : > { %v3812_v36 = vpop.permute.xlu0 %3811 }
0x10c9   : > { %v3813_v38 = vunpack.i.l.bf16 %v3812_v36  ;;  %v3814_v39 = vunpack.i.h.bf16 %v3812_v36 }
0x10ca   : > { %v2616_v44 = vpop.permute.xlu1 %2615 }
0x10cb   : > { %2469 = vmatpush.msrb.mxu1 %v3813_v38 }
0x10cd   : > { %2470 = vmatpush.msrb.mxu1 %v3814_v39 }
0x10ce   : > { %3531 = vmatmul.msk.f32.vlgmr.msrb.gmra.mxu1 %vm2080_vm8, %v5370_v40 }
0x10cf   : > { %2607 = vmatpush.msra.mxu1 %v2047_v11 }
0x10d0   : > { %v2618_v43 = vpop.permute.xlu0 %2617 }
0x10d1   : > { %3538 = vmatpush.xpose.msk.msra.mxu3 %vm1212_vm1, %v2618_v43 }
0x10d5   : > { %3539 = vmatpush.xpose.msk.msra.mxu3 %vm1212_vm1, %v2616_v44 }
0x10d8   : > { %v2500_v47 = vpop.permute.xlu0 %2499 }
0x1141   : > { %v2358_v46 = vpop.f32.mrf.mxu3 }
0x1142   : > { %3527 = vmatmul.msk.f32.vlgmr.msra.gmra.mxu2 %vm1212_vm1, %v2358_v46 }
0x114a   : > { %3535 = vmatmul.msk.f32.vlgmr.msrb.gmra.mxu2 %vm1212_vm1, %v2500_v47 }
0x114b   : > { %v2472_v48 = vpop.f32.mrf.mxu1 }
0x114c   : > { %3532 = vmatmul.msk.f32.vlgmr.msrb.gmra.mxu3 %vm1212_vm1, %v2472_v48 }
0x1154   : > { %3540 = vmatmul.msk.f32.vlgmr.msra.gmra.mxu3 %vm1212_vm1, %v2614_v49 }
0x11c5   : > { %v2381_v51 = vpop.f32.mrf.mxu2 }
0x11c6   : > { %v2384_v55 = vadd.f32 %v2381_v51, %v2269_v53 }
0x11cd   : > { %v2528_v54 = vpop.f32.mrf.mxu2 }
0x11ce   : > { %v2529_v56 = vadd.f32 %v2528_v54, %v5296_v52 }
0x11cf   : > { %v2495_v57 = vpop.f32.mrf.mxu3 }
0x11d0   : > { %v5382_v58 = vadd.f32 %v2495_v57, %v2384_v55  ;;  %v2531_v16 = vsel %vm2080_vm8, %v2529_v56, -inf }
0x11d1   : > { %2532 = vmax.xlane.f32.xlu1 %v2531_v16 }
0x11d7   : > { %v2642_v59 = vpop.f32.mrf.mxu3 }
0x11d8   : > { %v2643_v60 = vadd.f32 %v2642_v59, %v5296_v52 }
0x11da   : > { %v2645_v61 = vsel %vm2080_vm8, %v2643_v60, -inf }
0x11db   : > { %2646 = vmax.xlane.f32.xlu0 %v2645_v61 }
0x11ef   : > { %3816 = vrot.lane.b32.xlu0 %v5275_v32, %s4617_s5 }
0x11f7   : > { %2729 = vrot.lane.b32.xlu0 %v5261_v25, %s4624_s7 }
0x11ff   : > { %2845 = vrot.lane.b32.xlu0 %v5265_v28, %s5686_s27 }
0x1244   : > { %v2533_v50 = vpop.xlane.xlu1 %2532 }
0x1245   : > { %v2534_v62 = vsub.f32 %v2529_v56, %v2533_v50 }
0x1247   : > { %v2535_v63 = vmul.f32 1.442695, %v2534_v62 }
0x1249   : > { %3899 = vpow2.f32 %v2535_v63 }
0x124e   : > { %v2647_v0 = vpop.xlane.xlu0 %2646 }
0x124f   : > { %v3900_v1 = vpop.eup %3899  ;;  %v2648_v2 = vsub.f32 %v2643_v60, %v2647_v0 }
0x1250   : > { %v2537_v3 = vsel %vm2080_vm8, %v3900_v1, 0.0 }
0x1251   : > { %v2649_v5 = vmul.f32 1.442695, %v2648_v2  ;;  %2538 = vadd.xlane.f32.xlu2 %v2537_v3 }
0x1253   : > { %3901 = vpow2.f32 %v2649_v5 }
0x1259   : > { %v3902_v6 = vpop.eup %3901 }
0x125a   : > { %v2651_v7 = vsel %vm2080_vm8, %v3902_v6, 0.0 }
0x125b   : > { %2652 = vadd.xlane.f32.xlu1 %v2651_v7 }
0x1261   : > { %v3817_v12 = vpop.permute.xlu0 %3816 }
0x1262   : > { %v3818_v13 = vunpack.i.l.bf16 %v3817_v12  ;;  %v3819_v9 = vunpack.i.h.bf16 %v3817_v12 }
0x1264   : > { %2583 = vmatpush.msrb.mxu0 %v3818_v13 }
0x1266   : > { %2584 = vmatpush.msrb.mxu0 %v3819_v9 }
0x1268   : > { %2721 = vmatpush.msra.mxu0 %v2048_v10 }
0x1269   : > { %3821 = vrot.lane.b32.xlu2 %v5275_v32, %s5687_s28  ;;  %v2730_v21 = vpop.permute.xlu0 %2729 }
0x1271   : > { %2727 = vrot.lane.b32.xlu2 %v5286_v8, %s4624_s7  ;;  %v2846_v17 = vpop.permute.xlu0 %2845 }
0x1274   : > { %2731 = vrot.lane.b32.xlu1 %v5265_v28, %s4624_s7 }
0x1279   : > { %2841 = vrot.lane.b32.xlu2 %v5286_v8, %s5686_s27 }
0x127c   : > { %2843 = vrot.lane.b32.xlu1 %v5261_v25, %s5686_s27  ;;  %s3555_s27 = sshll.u32 %s4782_s8, 3 }
0x12c4   : > { %v2539_v14 = vpop.xlane.xlu2 %2538 }
0x12c5   : > { %3903 = vrcp.f32 %v2539_v14  ;;  %v2551_v28 = vand.u32 2147483648, %v2539_v14  ;;  %v2549_v25 = vand.u32 2147483647, %v2539_v14  ;;  %vm2545_vm13 = vweird.f32 %v2539_v14 }
0x12c7   : > { %v2552_v29 = vor.u32 1.1754944e-38, %v2551_v28  ;;  %vm2550_vm15 = vcmp.eq.f32.partialorder %v2549_v25, 8.507059e+37 }
0x12cb   : > { %v3904_v15 = vpop.eup %3903 }
0x12cc   : > { %v2541_v18 = vmul.f32 %v3904_v15, %v2539_v14  ;;  %v3822_v19 = vpop.permute.xlu2 %3821  ;;  %vm2546_vm12 = vweird.f32 %v3904_v15 }
0x12cd   : > { %v3823_v20 = vunpack.i.l.bf16 %v3822_v19  ;;  %v3824_v26 = vunpack.i.h.bf16 %v3822_v19  ;;  %vm2547_vm14 = vmor %vm2545_vm13, %vm2546_vm12 }
0x12ce   : > { %v2542_v22 = vsub.f32 1.0, %v2541_v18  ;;  %v2653_v24 = vpop.xlane.xlu1 %2652 }
0x12cf   : > { %3905 = vrcp.f32 %v2653_v24  ;;  %2697 = vmatpush.msra.mxu2 %v3823_v20  ;;  %v2665_v37 = vand.u32 2147483648, %v2653_v24  ;;  %v2663_v39 = vand.u32 2147483647, %v2653_v24  ;;  %vm2659_vm3 = vweird.f32 %v2653_v24 }
0x12d0   : > { %v2543_v8 = vmul.f32 %v3904_v15, %v2542_v22 }
0x12d1   : > { %2698 = vmatpush.msra.mxu2 %v3824_v26  ;;  %v2666_v44 = vor.u32 1.1754944e-38, %v2665_v37  ;;  %vm2664_vm5 = vcmp.eq.f32.partialorder %v2663_v39, 8.507059e+37 }
0x12d2   : > { %v2544_v27 = vadd.f32 %v3904_v15, %v2543_v8 }
0x12d4   : > { %v2548_v30 = vsel %vm2547_vm14, %v3904_v15, %v2544_v27  ;;  %v2728_v53 = vpop.permute.xlu2 %2727 }
0x12d5   : > { %v3906_v31 = vpop.eup %3905  ;;  %v2553_v33 = vsel %vm2550_vm15, %v2552_v29, %v2548_v30 }
0x12d6   : > { %v2655_v34 = vmul.f32 %v3906_v31, %v2653_v24  ;;  %v2554_v35 = vmul.f32 %v3900_v1, %v2553_v33  ;;  %vm2660_vm2 = vweird.f32 %v3906_v31 }
0x12d7   : > { %vm2661_vm4 = vmor %vm2659_vm3, %vm2660_vm2  ;;  %vm2331_vm3 = vcmask 392448  }
0x12d8   : > { %v2656_v36 = vsub.f32 1.0, %v2655_v34  ;;  %3536 = vmatmul.msk.f32.vlgmr.msrb.gmra.mxu0 %vm2080_vm8, %v2554_v35 }
0x12d9   : > { %3548 = vmatpush.xpose.msk.msrb.mxu0 %vm1212_vm1, %v2846_v17 }
0x12da   : > { %v2657_v38 = vmul.f32 %v3906_v31, %v2656_v36 }
0x12dc   : > { %v2658_v43 = vadd.f32 %v3906_v31, %v2657_v38  ;;  %v2842_v55 = vpop.permute.xlu2 %2841 }
0x12de   : > { %v2662_v45 = vsel %vm2661_vm4, %v3906_v31, %v2658_v43  ;;  %vm2445_vm4 = vcmask 523648  }
0x12df   : > { %v2667_v46 = vsel %vm2664_vm5, %v2666_v44, %v2662_v45  ;;  %v2049_v44 = vld [vmem:[#allocation19 + $0x30] sm:$0xff]  ;;  %v2050_v45 = vld [vmem:[#allocation19 + $0x38] sm:$0xff]  ;;  %vm2559_vm5 = vcmask 654848  }
0x12e0   : > { %v5407_v47 = vmul.f32 %v3902_v6, %v2667_v46  ;;  %2835 = vmatpush.msrb.mxu2 %v2049_v44 }
0x12e2   : > { %3541 = vmatmul.msk.f32.vlgmr.msra.gmra.mxu2 %vm2080_vm8, %v5407_v47 }
0x12e6   : > { %v2732_v48 = vpop.permute.xlu1 %2731 }
0x12e7   : > { %3543 = vmatpush.xpose.msk.msrb.mxu1 %vm1212_vm1, %v2732_v48 }
0x12eb   : > { %3544 = vmatpush.xpose.msk.msrb.mxu1 %vm1212_vm1, %v2730_v21 }
0x12ee   : > { %v2844_v49 = vpop.permute.xlu1 %2843 }
0x12ef   : > { %3549 = vmatpush.xpose.msk.msrb.mxu0 %vm1212_vm1, %v2844_v49 }
0x1355   : > { %v2586_v51 = vpop.f32.mrf.mxu0 }
0x1356   : > { %3537 = vmatmul.msk.f32.vlgmr.msra.gmra.mxu1 %vm1212_vm1, %v2586_v51 }
0x135e   : > { %3545 = vmatmul.msk.f32.vlgmr.msrb.gmra.mxu1 %vm1212_vm1, %v2728_v53  ;;  %v3840_v53 = vld [vmem:[#allocation20] ss:$0 sm:$0xff] }
0x1365   : > { %v2700_v54 = vpop.f32.mrf.mxu2 }
0x1366   : > { %3542 = vmatmul.msk.f32.vlgmr.msra.gmra.mxu0 %vm1212_vm1, %v2700_v54 }
0x136e   : > { %3550 = vmatmul.msk.f32.vlgmr.msrb.gmra.mxu0 %vm1212_vm1, %v2842_v55 }
0x13d3   : > { %v2609_v56 = vpop.f32.mrf.mxu1 }
0x13d4   : > { %v2612_v57 = vadd.f32 %v2609_v56, %v5382_v58 }
0x13db   : > { %v2756_v16 = vpop.f32.mrf.mxu1 }
0x13dc   : > { %v2757_v59 = vadd.f32 %v2756_v16, %v5296_v52 }
0x13de   : > { %v2759_v60 = vsel %vm2080_vm8, %v2757_v59, -inf }
0x13df   : > { %2760 = vmax.xlane.f32.xlu0 %v2759_v60 }
0x13e3   : > { %v2723_v61 = vpop.f32.mrf.mxu0 }
0x13e4   : > { %v5421_v50 = vadd.f32 %v2723_v61, %v2612_v57 }
0x13eb   : > { %v2870_v62 = vpop.f32.mrf.mxu0 }
0x13ec   : > { %v2871_v63 = vadd.f32 %v2870_v62, %v5296_v52 }
0x13ee   : > { %v2873_v0 = vsel %vm2080_vm8, %v2871_v63, -inf }
0x13ef   : > { %2874 = vmax.xlane.f32.xlu1 %v2873_v0 }
0x1408   : > { %3826 = vrot.lane.b32.xlu1 %v5275_v32, %s5688_s12 }
0x1410   : > { %2192 = vrot.lane.b32.xlu1 %v5332_v42, %s5688_s12 }
0x1418   : > { %2442 = vrot.lane.b32.xlu1 %v5370_v40, %s4614_s6  ;;  %s5689_s6 = smov 8  }
0x1420   : > { %2556 = vrot.lane.b32.xlu1 %v2554_v35, %s4611_s22 }
0x1452   : > { %v2761_v58 = vpop.xlane.xlu0 %2760 }
0x1453   : > { %v2762_v1 = vsub.f32 %v2757_v59, %v2761_v58 }
0x1455   : > { %v2763_v2 = vmul.f32 1.442695, %v2762_v1 }
0x1457   : > { %3907 = vpow2.f32 %v2763_v2 }
0x145d   : > { %v3908_v3 = vpop.eup %3907 }
0x145e   : > { %v2765_v52 = vsel %vm2080_vm8, %v3908_v3, 0.0 }
0x145f   : > { %2766 = vadd.xlane.f32.xlu2 %v2765_v52 }
0x1462   : > { %v2875_v5 = vpop.xlane.xlu1 %2874 }
0x1463   : > { %v2876_v6 = vsub.f32 %v2871_v63, %v2875_v5 }
0x1465   : > { %v2877_v7 = vmul.f32 1.442695, %v2876_v6  ;;  %v3841_v6 = vld [vmem:[#allocation22] ss:$0 sm:$0xff] }
0x1467   : > { %3909 = vpow2.f32 %v2877_v7 }
0x146d   : > { %v3910_v12 = vpop.eup %3909 }
0x146e   : > { %v2879_v42 = vsel %vm2080_vm8, %v3910_v12, 0.0 }
0x146f   : > { %2880 = vadd.xlane.f32.xlu0 %v2879_v42  ;;  %v3842_v42 = vld [vmem:[#allocation23] ss:$0 sm:$0xff] }
0x1477   : > { %3831 = vrot.lane.b32.xlu2 %v5275_v32, %s5689_s6  ;;  %s5691_s6 = sld [smem:[#allocation72_spill]] }
0x147a   : > { %v3827_v40 = vpop.permute.xlu1 %3826 }
0x147b   : > { %v3828_v13 = vunpack.i.l.bf16 %v3827_v40  ;;  %v3829_v9 = vunpack.i.h.bf16 %v3827_v40 }
0x147d   : > { %2811 = vmatpush.msrb.mxu3 %v3828_v13  ;;  %s5692_s22 = smov %s5691_s6 }
0x147e   : > { %s4509_s9 = scalar_lea.hbm %s5692_s22, 16 }
0x147f   : > { %2812 = vmatpush.msrb.mxu3 %v3829_v9 }
0x1481   : > { %2949 = vmatpush.msra.mxu3 %v2050_v45 }
0x1482   : > { %v2193_v10 = vpop.permute.xlu1 %2192 }
0x1483   : > { %2196 = vst.msk [vmem:[%s5322_s4] sm:$0xff] %vm2195_vm6, %v2193_v10  ;;  %vm2673_vm6 = vcmask 786048  }
0x14d2   : > { %v2767_v11 = vpop.xlane.xlu2 %2766 }
0x14d3   : > { %3911 = vrcp.f32 %v2767_v11  ;;  %v2779_v24 = vand.u32 2147483648, %v2767_v11  ;;  %v2777_v32 = vand.u32 2147483647, %v2767_v11  ;;  %vm2773_vm9 = vweird.f32 %v2767_v11 }
0x14d5   : > { %v2780_v26 = vor.u32 1.1754944e-38, %v2779_v24  ;;  %vm2778_vm11 = vcmp.eq.f32.partialorder %v2777_v32, 8.507059e+37  ;;  %v3032_v24 = vld [vmem:[#allocation28 + $0x38] sm:$0xff]  ;;  %v3031_v32 = vld [vmem:[#allocation28 + $0x30] sm:$0xff] }
0x14d6   : > { %3048 = vmatpush.msra.mxu2 %v3032_v24 }
0x14d8   : > { %3049 = vmatpush.msra.mxu2 %v3031_v32 }
0x14d9   : > { %v3912_v14 = vpop.eup %3911 }
0x14da   : > { %v2769_v15 = vmul.f32 %v3912_v14, %v2767_v11  ;;  %v3832_v18 = vpop.permute.xlu2 %3831  ;;  %vm2774_vm7 = vweird.f32 %v3912_v14 }
0x14db   : > { %v3833_v19 = vunpack.i.l.bf16 %v3832_v18  ;;  %v3834_v21 = vunpack.i.h.bf16 %v3832_v18  ;;  %vm2775_vm10 = vmor %vm2773_vm9, %vm2774_vm7  ;;  %vm2787_vm7 = vcmask 917248   ;;  %vm2901_vm9 = vcmask 1048448  }
0x14dc   : > { %v2770_v20 = vsub.f32 1.0, %v2769_v15 }
0x14dd   : > { %2925 = vmatpush.msra.mxu1 %v3833_v19 }
0x14de   : > { %v2771_v22 = vmul.f32 %v3912_v14, %v2770_v20 }
0x14df   : > { %2926 = vmatpush.msra.mxu1 %v3834_v21 }
0x14e0   : > { %v2772_v28 = vadd.f32 %v3912_v14, %v2771_v22 }
0x14e2   : > { %v2881_v8 = vpop.xlane.xlu0 %2880  ;;  %v2776_v25 = vsel %vm2775_vm10, %v3912_v14, %v2772_v28  ;;  %v3030_v28 = vld [vmem:[#allocation28 + $0x28] sm:$0xff] }
0x14e3   : > { %3913 = vrcp.f32 %v2881_v8  ;;  %v2781_v27 = vsel %vm2778_vm11, %v2780_v26, %v2776_v25  ;;  %v2893_v34 = vand.u32 2147483648, %v2881_v8  ;;  %v2891_v17 = vand.u32 2147483647, %v2881_v8  ;;  %3050 = vmatpush.msra.mxu2 %v3030_v28  ;;  %v3029_v26 = vld [vmem:[#allocation28 + $0x20] sm:$0xff]  ;;  %v3027_v25 = vld [vmem:[#allocation28 + $0x10] sm:$0xff] }
0x14e4   : > { %v2782_v29 = vmul.f32 %v3908_v3, %v2781_v27  ;;  %vm2887_vm13 = vweird.f32 %v2881_v8  ;;  %v3026_v27 = vld [vmem:[#allocation28 + $0x8] sm:$0xff] }
0x14e5   : > { %v2894_v37 = vor.u32 1.1754944e-38, %v2893_v34  ;;  %vm2892_vm15 = vcmp.eq.f32.partialorder %v2891_v17, 8.507059e+37  ;;  %3051 = vmatpush.msra.mxu2 %v3029_v26 }
0x14e6   : > { %2784 = vrot.lane.b32.xlu1 %v2782_v29, %s4621_s29  ;;  %3546 = vmatmul.msk.f32.vlgmr.msrb.gmra.mxu3 %vm2080_vm8, %v2782_v29  ;;  %v3025_v29 = vld [vmem:[#allocation28] sm:$0xff]  ;;  %s3120_s29 = sshll.u32 %s1113_s16, 4  ;;  %s3121_s29 = int_to_ptr.vmem [resolvable:$true] %s3120_s29 }
0x14e9   : > { %v3914_v30 = vpop.eup %3913 }
0x14ea   : > { %v2883_v31 = vmul.f32 %v3914_v30, %v2881_v8  ;;  %vm2888_vm12 = vweird.f32 %v3914_v30  ;;  %v3028_v8 = vld [vmem:[#allocation28 + $0x18] sm:$0xff] }
0x14eb   : > { %vm2889_vm14 = vmor %vm2887_vm13, %vm2888_vm12  ;;  %3052 = vmatpush.msra.mxu2 %v3028_v8 }
0x14ec   : > { %v2884_v33 = vsub.f32 1.0, %v2883_v31 }
0x14ed   : > { %3053 = vmatpush.msra.mxu2 %v3027_v25 }
0x14ee   : > { %v2885_v35 = vmul.f32 %v3914_v30, %v2884_v33 }
0x14ef   : > { %3054 = vmatpush.msra.mxu2 %v3026_v27 }
0x14f0   : > { %v2886_v36 = vadd.f32 %v3914_v30, %v2885_v35 }
0x14f1   : > { %3055 = vmatpush.msra.mxu2 %v3025_v29 }
0x14f2   : > { %v2890_v38 = vsel %vm2889_vm14, %v3914_v30, %v2886_v36 }
0x14f3   : > { %v2895_v39 = vsel %vm2892_vm15, %v2894_v37, %v2890_v38 }
0x14f4   : > { %v2896_v43 = vmul.f32 %v3910_v12, %v2895_v39 }
0x14f6   : > { %3551 = vmatmul.msk.f32.vlgmr.msra.gmra.mxu1 %vm2080_vm8, %v2896_v43 }
0x1569   : > { %v2814_v46 = vpop.f32.mrf.mxu3 }
0x156a   : > { %3547 = vmatmul.msk.f32.vlgmr.msrb.gmra.mxu2 %vm1212_vm1, %v2814_v46 }
0x1573   : > { %v2928_v48 = vpop.f32.mrf.mxu1 }
0x1574   : > { %3552 = vmatmul.msk.f32.vlgmr.msra.gmra.mxu3 %vm1212_vm1, %v2928_v48 }
0x15ed   : > { %v2837_v49 = vpop.f32.mrf.mxu2 }
0x15ee   : > { %v2840_v51 = vadd.f32 %v2837_v49, %v5421_v50 }
0x15f7   : > { %v2951_v54 = vpop.f32.mrf.mxu3 }
0x15f8   : > { %v2954_v55 = vadd.f32 %v2951_v54, %v2840_v51 }
0x15fa   : > { %v2959_v56 = vadd.f32 %v3840_v53, %v2954_v55 }
0x15fc   : > { %v2962_v57 = vsel %vm1153_vm0, %v2959_v56, 0.0 }
0x15fd   : > { %2963 = vadd.xlane.f32.xlu0 %v2962_v57  ;;  %v3843_v57 = vld [vmem:[#allocation25] ss:$0 sm:$0xff] }
0x1670   : > { %v2964_v16 = vpop.xlane.xlu0 %2963 }
0x1671   : > { %v2965_v59 = vmul.f32 %v2964_v16, %v5255_v4 }
0x1673   : > { %v2966_v60 = vsub.f32 %v2959_v56, %v2965_v59 }
0x1675   : > { %v2967_v61 = vmul.f32 %v2966_v60, %v2966_v60 }
0x1677   : > { %v2968_v62 = vsel %vm1153_vm0, %v2967_v61, 0.0 }
0x1678   : > { %2969 = vadd.xlane.f32.xlu0 %v2968_v62 }
0x16eb   : > { %v2970_v63 = vpop.xlane.xlu0 %2969 }
0x16ec   : > { %v2971_v0 = vmul.f32 %v2970_v63, %v5255_v4 }
0x16ee   : > { %v2972_v58 = vadd.f32 1e-05, %v2971_v0 }
0x16f0   : > { %3915 = vrsqrt.f32 %v2972_v58  ;;  %vm2979_vm8 = vweird.f32 %v2972_v58 }
0x16f6   : > { %v3916_v50 = vpop.eup %3915 }
0x16f7   : > { %v2974_v1 = vmul.f32 %v3916_v50, %v2972_v58  ;;  %vm2980_vm1 = vweird.f32 %v3916_v50 }
0x16f8   : > { %vm2981_vm2 = vmor %vm2979_vm8, %vm2980_vm1 }
0x16f9   : > { %v2975_v2 = vmul.f32 %v3916_v50, %v2974_v1 }
0x16fb   : > { %v2976_v3 = vmul.f32 0.5, %v2975_v2 }
0x16fd   : > { %v2977_v52 = vsub.f32 1.5, %v2976_v3 }
0x16ff   : > { %v2978_v5 = vmul.f32 %v3916_v50, %v2977_v52  ;;  %v3846_v52 = vld [vmem:[#allocation31] ss:$0 sm:$0xff] }
0x1701   : > { %v2982_v7 = vsel %vm2981_vm2, %v3916_v50, %v2978_v5  ;;  %v3845_v50 = vld [vmem:[#allocation29] ss:$0 sm:$0xff] }
0x1702   : > { %v2983_v12 = vmul.f32 %v2982_v7, %v2966_v60  ;;  %v3844_v60 = vld [vmem:[#allocation26] ss:$0 sm:$0xff] }
0x1704   : > { %v2987_v40 = vmul.f32 %v3841_v6, %v2983_v12 }
0x1706   : > { %v2991_v13 = vadd.f32 %v3842_v42, %v2987_v40 }
0x1708   : > { %v5448_v9 = vadd.f32 %v2991_v13, %v5280_v41 }
0x170a   : > { %v2995_v10 = vsel %vm1153_vm0, %v5448_v9, 0.0 }
0x170b   : > { %2996 = vadd.xlane.f32.xlu0 %v2995_v10 }
0x171f   : > { %2328 = vrot.lane.b32.xlu0 %v5364_v23, %s4617_s5  ;;  %v2443_v23 = vpop.permute.xlu1 %2442  ;;  %s5690_s5 = sld [smem:[#allocation70_spill]] }
0x1725   : > { %v3076_v30 = vld [vmem:[%s5690_s5 + $0x78] sm:$0xff]  ;;  %v3075_v31 = vld [vmem:[%s5690_s5 + $0x70] sm:$0xff]  ;;  %v3074_v33 = vld [vmem:[%s5690_s5 + $0x68] sm:$0xff] }
0x1726   : > { %3081 = vmatpush.msra.mxu0 %v3076_v30  ;;  %v3073_v17 = vld [vmem:[%s5690_s5 + $0x60] sm:$0xff]  ;;  %v3072_v37 = vld [vmem:[%s5690_s5 + $0x58] sm:$0xff]  ;;  %v3071_v38 = vld [vmem:[%s5690_s5 + $0x50] sm:$0xff] }
0x1727   : > { %2670 = vrot.lane.b32.xlu0 %v5407_v47, %s4624_s7  ;;  %v2557_v19 = vpop.permute.xlu1 %2556  ;;  %v3069_v39 = vld [vmem:[%s5690_s5 + $0x40] sm:$0xff]  ;;  %v3068_v44 = vld [vmem:[%s5690_s5 + $0x38] sm:$0xff]  ;;  %v3067_v46 = vld [vmem:[%s5690_s5 + $0x30] sm:$0xff]  ;;  %s3104_s7 = scalar_lea.sflag [#allocation4], %s4994_s13 }
0x1728   : > { %3082 = vmatpush.msra.mxu0 %v3075_v31  ;;  %v3066_v49 = vld [vmem:[%s5690_s5 + $0x28] sm:$0xff]  ;;  %v3065_v53 = vld [vmem:[%s5690_s5 + $0x20] sm:$0xff]  ;;  %v3064_v55 = vld [vmem:[%s5690_s5 + $0x18] sm:$0xff] }
0x1729   : > { %v3063_v63 = vld [vmem:[%s5690_s5 + $0x10] sm:$0xff]  ;;  %v3062_v0 = vld [vmem:[%s5690_s5 + $0x8] sm:$0xff]  ;;  %v3061_v58 = vld [vmem:[%s5690_s5] sm:$0xff] }
0x172a   : > { %3083 = vmatpush.msra.mxu0 %v3074_v33 }
0x172c   : > { %3084 = vmatpush.msra.mxu0 %v3073_v17 }
0x172e   : > { %3085 = vmatpush.msra.mxu0 %v3072_v37 }
0x172f   : > { %2898 = vrot.lane.b32.xlu0 %v2896_v43, %s4615_s19  ;;  %v2785_v21 = vpop.permute.xlu1 %2784  ;;  %s3118_s19 = scalar_lea.hbm %s5691_s6, %s3555_s27 }
0x1730   : > { %3086 = vmatpush.msra.mxu0 %v3071_v38  ;;  %s3122_s24 = sshll.u32 %s3118_s19, 4  ;;  %s3123_s24 = int_to_ptr.hbm [resolvable:$true] %s3122_s24 }
0x1731   : > { %s4503_s14 = sshra.s32 %s3123_s24, 4  ;;  %s4504_s14 = int_to_ptr.hbm [resolvable:$true] %s4503_s14 }
0x1732   : > { %s4505_s8 = scalar_lea.hbm %s4504_s14, 8  ;;  %p4510_p6 = scmp.lt.s32.totalorder %s4504_s14, %s5692_s22 }
0x1733   : > { %p4506_p1 = scmp.ne.s32.totalorder %s4504_s14, %s4505_s8  ;;  %p4511_p10 = scmp.lt.s32.totalorder %s4509_s9, %s4505_s8 }
0x1735   : > { %p4507_p12 = pnand %p4506_p1, %p4863_p5  ;;  %p4512_p11 = por %p4511_p10, %p4510_p6 }
0x1737   : > { %p4508_p8 = pneg %p4507_p12 }
0x1739   : > { %p4513_p13 = pnand %p4512_p11, %p4508_p8 }
0x177e   : > { %v2997_v11 = vpop.xlane.xlu0 %2996 }
0x177f   : > { %v2998_v14 = vmul.f32 %v2997_v11, %v5255_v4 }
0x1781   : > { %v5459_v41 = vsub.f32 %v5448_v9, %v2998_v14 }
0x1783   : > { %v3000_v15 = vmul.f32 %v5459_v41, %v5459_v41 }
0x1785   : > { %v3001_v18 = vsel %vm1153_vm0, %v3000_v15, 0.0 }
0x1786   : > { %3002 = vadd.xlane.f32.xlu2 %v3001_v18 }
0x1791   : > { %v2329_v47 = vpop.permute.xlu0 %2328 }
0x1792   : > { %2332 = vst.msk [vmem:[%s5322_s4] sm:$0xff] %vm2331_vm3, %v2329_v47 }
0x1793   : > { %2446 = vst.msk [vmem:[%s5322_s4] sm:$0xff] %vm2445_vm4, %v2443_v23 }
0x1794   : > { %2560 = vst.msk [vmem:[%s5322_s4] sm:$0xff] %vm2559_vm5, %v2557_v19 }
0x1799   : > { %v2671_v20 = vpop.permute.xlu0 %2670 }
0x179a   : > { %2674 = vst.msk [vmem:[%s5322_s4] sm:$0xff] %vm2673_vm6, %v2671_v20 }
0x179b   : > { %2788 = vst.msk [vmem:[%s5322_s4] sm:$0xff] %vm2787_vm7, %v2785_v21 }
0x17a1   : > { %v2899_v22 = vpop.permute.xlu0 %2898 }
0x17a2   : > { %2902 = vst.msk [vmem:[%s5322_s4] sm:$0xff] %vm2901_vm9, %v2899_v22 }
0x17f9   : > { %v3003_v34 = vpop.xlane.xlu2 %3002 }
0x17fa   : > { %v3004_v35 = vmul.f32 %v3003_v34, %v5255_v4  ;;  %v3070_v4 = vld [vmem:[%s5690_s5 + $0x48] sm:$0xff] }
0x17fb   : > { %3087 = vmatpush.msra.mxu0 %v3070_v4 }
0x17fc   : > { %v3005_v36 = vadd.f32 1e-05, %v3004_v35 }
0x17fd   : > { %3088 = vmatpush.msra.mxu0 %v3069_v39 }
0x17fe   : > { %3917 = vrsqrt.f32 %v3005_v36  ;;  %vm3012_vm11 = vweird.f32 %v3005_v36 }
0x17ff   : > { %3089 = vmatpush.msra.mxu0 %v3068_v44 }
0x1801   : > { %3090 = vmatpush.msra.mxu0 %v3067_v46 }
0x1803   : > { %3091 = vmatpush.msra.mxu0 %v3066_v49 }
0x1804   : > { %v3918_v43 = vpop.eup %3917 }
0x1805   : > { %v3007_v45 = vmul.f32 %v3918_v43, %v3005_v36  ;;  %vm3013_vm10 = vweird.f32 %v3918_v43  ;;  %3092 = vmatpush.msra.mxu0 %v3065_v53 }
0x1806   : > { %vm3014_vm12 = vmor %vm3012_vm11, %vm3013_vm10 }
0x1807   : > { %v3008_v48 = vmul.f32 %v3918_v43, %v3007_v45  ;;  %3093 = vmatpush.msra.mxu0 %v3064_v55 }
0x1809   : > { %v3009_v51 = vmul.f32 0.5, %v3008_v48  ;;  %3094 = vmatpush.msra.mxu0 %v3063_v63 }
0x180b   : > { %v3010_v54 = vsub.f32 1.5, %v3009_v51  ;;  %3095 = vmatpush.msra.mxu0 %v3062_v0 }
0x180d   : > { %v3011_v56 = vmul.f32 %v3918_v43, %v3010_v54  ;;  %3096 = vmatpush.msra.mxu0 %v3061_v58 }
0x180f   : > { %v3015_v16 = vsel %vm3014_vm12, %v3918_v43, %v3011_v56 }
0x1810   : > { %v3016_v59 = vmul.f32 %v3015_v16, %v5459_v41 }
0x1812   : > { %v3020_v61 = vmul.f32 %v3843_v57, %v3016_v59 }
0x1814   : > { %v3024_v62 = vadd.f32 %v3844_v60, %v3020_v61 }
0x1816   : > { %3553 = vmatmul.msk.f32.vlgmr.msra.gmra.mxu2 %vm1153_vm0, %v3024_v62 }
0x1899   : > { %v3057_v1 = vpop.f32.mrf.mxu2 }
0x189a   : > { %v3058_v2 = vadd.f32 %v3845_v50, %v3057_v1 }
0x189c   : > { %v3060_v3 = vmax.f32 %v3058_v2, 0.0 }
0x189e   : > { %3097 = vmatmul.f32.vlgmr.msra.gmra.mxu0 %v3060_v3 }
0x191b   : > { %v3098_v5 = vpop.f32.mrf.mxu0 }
0x191c   : > { %v3099_v6 = vadd.f32 %v3846_v52, %v3098_v5 }
0x191e   : > { %v3101_v7 = vadd.f32 %v3099_v6, %v5448_v9 }
0x1920   : > { %3102 = vst.msk [vmem:[%s1113_s16] sm:$0xff] %vm1153_vm0, %v3101_v7 }
0x1921   : > { %4516 = shalt.err (!%p4513_p13)
}
0x1922   : > { %3629 = dma.vmem_to_hbm [thread:$0]  (%p4863_p5), %s3121_s29, 128, %s3123_s24, %s3104_s7  }
0x1923 PF: > { %s5693_s13 = sld [smem:[#allocation44_spill]]  ;;  %p5695_p3 = scmp.ge.s32.totalorder %s4591_s30, 2 }
0x1925   : > { %p3691_p7 = pnand %p5695_p3, %p4867_p4 }
0x1927   : > { %p3692_p9 = pneg %p3691_p7 }
0x1929   : > { %s3137_s3 = sand.u32 1, %s5693_s13  }
0x192a   : > { %s3138_s4 = scalar_lea.sflag [#allocation4], %s3137_s3 }
0x192b   : > { %4574 = dma.done.wait (%p3692_p9), %s3138_s4, 128  }
0x192c   : > { %4576 = vsyncadd (%p3692_p9), %s3138_s4, 4294967168  ;;  %s5696_s30 = sld [smem:[#allocation47_spill]]  ;;  %s5699_s29 = smov %s4583_s2 }
0x192d   : > { %s5697_s27 = sld [smem:[#allocation45_spill]] }
0x192e   : > { %s5698_s6 = sld [smem:[#allocation48_spill]] }
0x1932   : > { %p50_p0 = scmp.ge.s32.totalorder %s5696_s30, 4  }
0x1933   : > { %s5700_s2 = smov %s5697_s27 }
0x1934   :  { %52 = sbr.rel (!%p50_p0) target bundleno = 40 (0x28), region = 264 }
0x1939   :  { %3151 = vsyncpa [#allocation3], 1 }
0x193a   :  { %3153 = vsyncpa [#allocation3 + $0x1], 1 }
0x193b   :  { %3154 = vsyncpa [#allocation6], 1 }
0x193c   :  { %3156 = vsyncpa [#allocation6 + $0x1], 1 }
0x193d   :  { %3157 = vsyncpa [#allocation9], 1 }
0x193e   :  { %3158 = vsyncpa [#allocation12], 1 }
0x193f   :  { %3159 = vsyncpa [#allocation15], 1 }
0x1940   :  { %3160 = vsyncpa [#allocation18], 1 }
0x1941   :  { %3161 = vsyncpa [#allocation21], 1 }
0x1942   :  { %3162 = vsyncpa [#allocation24], 1 }
0x1943   :  { %3163 = vsyncpa [#allocation27], 1 }
0x1944   :  { %3164 = vsyncpa [#allocation30], 1 }
0x1945   :  { %3165 = vsyncpa [#allocation4], 1 }
0x1946   :  { %3167 = vsyncpa [#allocation4 + $0x1], 1 }

</bundles_post_ra>
